<compile_context>
chip_gen: v7x
topology: tpu7x:2x2x1
jax: 0.10.0
libtpu: 0.0.40
codegen_flags: <defaults>
</compile_context>

<pallas_src>
import jax
import jax.numpy as jnp
from jax.experimental import pallas as pl
from jax.experimental.pallas import tpu as pltpu

NUM_CLASSES = (6, 18, 128)
HIDDEN = 1000
HIDDEN_PAD = 1024                      # 1000 -> 1024: clean 8x128 K tiles
OUT_PAD = 256                          # 6+18+128 = 152 -> 256: lane-dense stores
TXT_DIM = 768
BIAS_PACK = TXT_DIM + HIDDEN_PAD + OUT_PAD   # packed bias slab = 2048


# ----------------------------- Pallas kernel ------------------------------ #
def _thln_kernel(pooled_ref, x_txt_ref, tc1_w_ref, tc2_w_ref,
                 wc_ref, ws_ref, bias_ref, out_ref):
    f32 = jnp.float32
    bf16 = jnp.bfloat16

    def dot(a, b):
        return jnp.dot(a, b, preferred_element_type=f32)

    # Packed biases: [tc1_b (768) | tc2_b (1024) | b_all (256)], all f32.
    b_tc1 = bias_ref[:, 0:TXT_DIM]
    b_tc2 = bias_ref[:, TXT_DIM:TXT_DIM + HIDDEN_PAD]
    b_out = bias_ref[:, TXT_DIM + HIDDEN_PAD:]

    # ---- text stage ----  (Dropout1d(p=0.35) is identity at inference)
    h = jnp.maximum(dot(x_txt_ref[...], tc1_w_ref[...]) + b_tc1, 0.0)
    h = jnp.maximum(dot(h.astype(bf16), tc2_w_ref[...]) + b_tc2, 0.0)

    # ---- fused heads + final classifier (and image stem) ----
    #   out = h @ Wc + pooled @ Ws + b_all
    # where Wc = heads_w @ F, Ws = stem_w @ Wc, b_all = stem_b@Wc + 2*heads_b@F + fb
    out_ref[...] = (dot(h.astype(bf16), wc_ref[...])
                    + dot(pooled_ref[...], ws_ref[...])
                    + b_out)


# ------------------------------- wrapper ----------------------------------- #
@jax.jit
def thln_forward(x_img, x_txt, pp):
    nc1, nc2, nc3 = NUM_CLASSES
    B, C, H, W = x_img.shape
    cpad = pp["ws"].shape[0]

    # GAP hoisted out of the kernel (per review): kernel only sees (B, cpad).
    pooled = x_img.reshape(B, C, H * W).astype(jnp.float32).mean(axis=-1)
    pooled = jnp.pad(pooled, ((0, 0), (0, cpad - C))).astype(jnp.bfloat16)
    xt = x_txt.astype(jnp.bfloat16)

    # Batch grid: weights stay VMEM-resident (constant index_maps) while
    # activation/output tiles are pipelined across batch tiles.
    TB = B if B <= 256 else 256
    Bp = -(-B // TB) * TB
    if Bp != B:
        pooled = jnp.pad(pooled, ((0, Bp - B), (0, 0)))
        xt = jnp.pad(xt, ((0, Bp - B), (0, 0)))
    grid = (Bp // TB,)

    out = pl.pallas_call(
        _thln_kernel,
        out_shape=jax.ShapeDtypeStruct((Bp, OUT_PAD), jnp.float32),
        grid_spec=pltpu.PrefetchScalarGridSpec(
            num_scalar_prefetch=0,
            grid=grid,
            in_specs=[
                pl.BlockSpec((TB, cpad), lambda i: (i, 0)),          # pooled
                pl.BlockSpec((TB, TXT_DIM), lambda i: (i, 0)),       # x_txt
                pl.BlockSpec((TXT_DIM, TXT_DIM), lambda i: (0, 0)),  # tc1_w
                pl.BlockSpec((TXT_DIM, HIDDEN_PAD), lambda i: (0, 0)),  # tc2_w
                pl.BlockSpec((HIDDEN_PAD, OUT_PAD), lambda i: (0, 0)),  # Wc
                pl.BlockSpec((cpad, OUT_PAD), lambda i: (0, 0)),     # Ws
                pl.BlockSpec((1, BIAS_PACK), lambda i: (0, 0)),      # biases
            ],
            out_specs=pl.BlockSpec((TB, OUT_PAD), lambda i: (i, 0)),
        ),
        compiler_params=pltpu.CompilerParams(
            dimension_semantics=("parallel",)),   # v7x: shard batch over both TCs
    )(pooled, xt, pp["tc1_w"], pp["tc2_w"], pp["wc"], pp["ws"], pp["biases"])

    return (out[:B, :nc1],
            out[:B, nc1:nc1 + nc2],
            out[:B, nc1 + nc2:nc1 + nc2 + nc3])


# -------------------- one-time parameter preprocessing ---------------------- #
def prepare_params(p):
    """Fold / fuse / pad / cast raw module params once (off the call path)."""
    nc1, nc2, nc3 = NUM_CLASSES
    f32, bf16 = jnp.float32, jnp.bfloat16

    def pad_cols(a, n):
        return jnp.pad(a, ((0, 0), (0, n - a.shape[1])))

    def pad_rows(a, n):
        return jnp.pad(a, ((0, n - a.shape[0]), (0, 0)))

    # ---- softmax_reg1 -> reg2 -> reg3 chain folded into one affine (F, fb) ----
    #   cat1 = c1@W1 + b1
    #   cat2 = c1@(W1@Wa) + c2@Wb + (b1@Wa + b2)
    #   cat3 = c1@(W1@Va + (W1@Wa)@Vb) + c2@(Wb@Vb) + c3@Vc + (b1@Va + B2@Vb + b3)
    W1, b1 = p["sr1_w"], p["sr1_b"]
    Wa, Wb = p["sr2_w"][:nc1], p["sr2_w"][nc1:]
    b2 = p["sr2_b"]
    Va = p["sr3_w"][:nc1]
    Vb = p["sr3_w"][nc1:nc1 + nc2]
    Vc = p["sr3_w"][nc1 + nc2:]
    b3 = p["sr3_b"]

    G = W1 @ Wa
    row1 = jnp.concatenate([W1, G, W1 @ Va + G @ Vb], axis=1)                  # (6, 152)
    row2 = jnp.concatenate([jnp.zeros((nc2, nc1), f32), Wb, Wb @ Vb], axis=1)  # (18, 152)
    row3 = jnp.concatenate([jnp.zeros((nc3, nc1 + nc2), f32), Vc], axis=1)     # (128, 152)
    F = jnp.concatenate([row1, row2, row3], axis=0)                            # (152, 152)
    B2 = b1 @ Wa + b2
    fb = jnp.concatenate([b1, B2, b1 @ Va + B2 @ Vb + b3], axis=1)             # (1, 152)

    # ---- fold the shared level heads through F (bias counted twice: img+txt) --
    heads_w = jnp.concatenate([p["l1_w"], p["l2_w"], p["l3_w"]], axis=1)       # (1000, 152)
    heads_b = jnp.concatenate([p["l1_b"], p["l2_b"], p["l3_b"]], axis=1)       # (1, 152)
    Wc = heads_w @ F                                                           # (1000, 152)
    bc = (2.0 * heads_b) @ F + fb                                              # (1, 152)

    # ---- fold the image stem (backbone stand-in) through Wc ----
    Ws = p["stem_w"] @ Wc                                                      # (C, 152)
    b_all = p["stem_b"] @ Wc + bc                                              # (1, 152)

    C = Ws.shape[0]
    cpad = max(8, -(-C // 8) * 8)

    pp = {}
    pp["tc1_w"] = p["tc1_w"].astype(bf16)                                      # (768, 768)
    pp["tc2_w"] = pad_cols(p["tc2_w"], HIDDEN_PAD).astype(bf16)                # (768, 1024)
    pp["wc"] = pad_cols(pad_rows(Wc, HIDDEN_PAD), OUT_PAD).astype(bf16)        # (1024, 256)
    pp["ws"] = pad_cols(pad_rows(Ws, cpad), OUT_PAD).astype(bf16)              # (cpad, 256)
    pp["biases"] = jnp.concatenate(
        [p["tc1_b"],
         pad_cols(p["tc2_b"], HIDDEN_PAD),
         pad_cols(b_all, OUT_PAD)], axis=1).astype(f32)                        # (1, 2048)
    return {k: jax.device_put(v) for k, v in pp.items()}


# -------------------------- parameter construction ------------------------- #
def init_params(key, img_channels=4, num_classes=NUM_CLASSES):
    nc1, nc2, nc3 = num_classes

    def lin(k, fan_in, fan_out):
        kw, kb = jax.random.split(k)
        s = 1.0 / jnp.sqrt(jnp.float32(fan_in))
        w = jax.random.uniform(kw, (fan_in, fan_out), jnp.float32, -s, s)
        b = jax.random.uniform(kb, (1, fan_out), jnp.float32, -s, s)
        return w, b

    ks = jax.random.split(key, 9)
    p = {}
    p["stem_w"], p["stem_b"] = lin(ks[0], img_channels, HIDDEN)   # backbone stand-in
    p["tc1_w"], p["tc1_b"] = lin(ks[1], TXT_DIM, TXT_DIM)         # txt_classifier1
    p["tc2_w"], p["tc2_b"] = lin(ks[2], TXT_DIM, HIDDEN)          # txt_classifier2
    p["l1_w"], p["l1_b"] = lin(ks[3], HIDDEN, nc1)                # linear_lvl1_img
    p["l2_w"], p["l2_b"] = lin(ks[4], HIDDEN, nc2)                # linear_lvl2_img
    p["l3_w"], p["l3_b"] = lin(ks[5], HIDDEN, nc3)                # linear_lvl3_img
    p["sr1_w"], p["sr1_b"] = lin(ks[6], nc1, nc1)                 # softmax_reg1
    p["sr2_w"], p["sr2_b"] = lin(ks[7], nc1 + nc2, nc2)           # softmax_reg2
    p["sr3_w"], p["sr3_b"] = lin(ks[8], nc1 + nc2 + nc3, nc3)     # softmax_reg3
    return p


# ---------------------------- pure-JAX references --------------------------- #
def thln_reference_f32(x_img, x_txt, p):
    """Original (unfused, unpadded, f32) formulation of the module forward."""
    B, C, H, W = x_img.shape
    pooled = x_img.reshape(B, C, -1).mean(-1)
    xi = pooled @ p["stem_w"] + p["stem_b"]
    img1 = xi @ p["l1_w"] + p["l1_b"]
    img2 = xi @ p["l2_w"] + p["l2_b"]
    img3 = xi @ p["l3_w"] + p["l3_b"]

    xt = jax.nn.relu(x_txt @ p["tc1_w"] + p["tc1_b"])
    xt = jax.nn.relu(xt @ p["tc2_w"] + p["tc2_b"])
    txt1 = xt @ p["l1_w"] + p["l1_b"]
    txt2 = xt @ p["l2_w"] + p["l2_b"]
    txt3 = xt @ p["l3_w"] + p["l3_b"]

    c1, c2, c3 = img1 + txt1, img2 + txt2, img3 + txt3
    cat1 = c1 @ p["sr1_w"] + p["sr1_b"]
    cat2 = jnp.concatenate([cat1, c2], axis=1) @ p["sr2_w"] + p["sr2_b"]
    cat3 = jnp.concatenate([cat1, cat2, c3], axis=1) @ p["sr3_w"] + p["sr3_b"]
    return cat1, cat2, cat3


def thln_reference_prepped(x_img, x_txt, pp):
    """Mirror of the kernel math (same folding / padding / dtypes) in plain jnp."""
    nc1, nc2, nc3 = NUM_CLASSES
    f32, bf16 = jnp.float32, jnp.bfloat16
    B, C, H, W = x_img.shape
    cpad = pp["ws"].shape[0]
    d = lambda a, b: jnp.dot(a, b, preferred_element_type=f32)

    pooled = x_img.reshape(B, C, -1).astype(f32).mean(-1)
    pooled = jnp.pad(pooled, ((0, 0), (0, cpad - C))).astype(bf16)
    bias = pp["biases"]
    b_tc1 = bias[:, :TXT_DIM]
    b_tc2 = bias[:, TXT_DIM:TXT_DIM + HIDDEN_PAD]
    b_out = bias[:, TXT_DIM + HIDDEN_PAD:]

    h = jnp.maximum(d(x_txt.astype(bf16), pp["tc1_w"]) + b_tc1, 0.0)
    h = jnp.maximum(d(h.astype(bf16), pp["tc2_w"]) + b_tc2, 0.0)
    out = d(h.astype(bf16), pp["wc"]) + d(pooled, pp["ws"]) + b_out
    return (out[:, :nc1],
            out[:, nc1:nc1 + nc2],
            out[:, nc1 + nc2:nc1 + nc2 + nc3])


if __name__ == "__main__":
    key = jax.random.PRNGKey(0)
    k_img, k_txt, k_param = jax.random.split(key, 3)

    B, C, H, W = 2, 4, 16, 16
    x_img = jax.random.normal(k_img, (B, C, H, W), jnp.float32)   # NCHW like PyTorch
    x_txt = jax.random.normal(k_txt, (B, TXT_DIM), jnp.float32)

    params = init_params(k_param, img_channels=C)
    prepped = prepare_params(params)                               # one-time prep

    cat1, cat2, cat3 = jax.block_until_ready(thln_forward(x_img, x_txt, prepped))

    assert cat1.shape == (B, 6) and cat2.shape == (B, 18) and cat3.shape == (B, 128)

    # Exact-structure check against a same-precision jnp mirror of the kernel.
    p1, p2, p3 = thln_reference_prepped(x_img, x_txt, prepped)
    assert jnp.allclose(cat1, p1, atol=1e-2, rtol=1e-2)
    assert jnp.allclose(cat2, p2, atol=1e-2, rtol=1e-2)
    assert jnp.allclose(cat3, p3, atol=1e-2, rtol=1e-2)

    # Semantics check against the original unfused f32 formulation
    # (loose tolerance: weights/activations are bf16 in the kernel).
    r1, r2, r3 = thln_reference_f32(x_img, x_txt, params)
    assert jnp.allclose(cat1, r1, atol=5e-2, rtol=5e-2)
    assert jnp.allclose(cat2, r2, atol=5e-2, rtol=5e-2)
    assert jnp.allclose(cat3, r3, atol=5e-2, rtol=5e-2)

    print("KERNEL_OK")
</pallas_src>

<mosaic_0001>
module attributes {stable_mosaic.version = 11 : i64} {
  func.func @_thln_kernel(%arg0: i32, %arg1: memref<2x8xbf16, #tpu.memory_space<vmem>>, %arg2: memref<2x768xbf16, #tpu.memory_space<vmem>>, %arg3: memref<768x768xbf16, #tpu.memory_space<vmem>>, %arg4: memref<768x1024xbf16, #tpu.memory_space<vmem>>, %arg5: memref<1024x256xbf16, #tpu.memory_space<vmem>>, %arg6: memref<8x256xbf16, #tpu.memory_space<vmem>>, %arg7: memref<1x2048xf32, #tpu.memory_space<vmem>>, %arg8: memref<2x256xf32, #tpu.memory_space<vmem>>) attributes {dimension_semantics = [#tpu.dimension_semantics<parallel>], iteration_bounds = array<i64: 1>, scalar_prefetch = 0 : i64, scratch_operands = 0 : i64, tpu.core_type = #tpu.core_type<tc>, window_params = [{transform_indices = @transform_0, window_bounds = array<i64: 2, 8>}, {transform_indices = @transform_1, window_bounds = array<i64: 2, 768>}, {pipeline_mode = #tpu.pipeline_mode<synchronous>, transform_indices = @transform_2, window_bounds = array<i64: 768, 768>}, {pipeline_mode = #tpu.pipeline_mode<synchronous>, transform_indices = @transform_3, window_bounds = array<i64: 768, 1024>}, {pipeline_mode = #tpu.pipeline_mode<synchronous>, transform_indices = @transform_4, window_bounds = array<i64: 1024, 256>}, {pipeline_mode = #tpu.pipeline_mode<synchronous>, transform_indices = @transform_5, window_bounds = array<i64: 8, 256>}, {pipeline_mode = #tpu.pipeline_mode<synchronous>, transform_indices = @transform_6, window_bounds = array<i64: 1, 2048>}, {transform_indices = @transform_7, window_bounds = array<i64: 2, 256>}]} {
    %c0 = arith.constant 0 : index
    %c0_0 = arith.constant 0 : index
    %0 = vector.load %arg7[%c0, %c0_0] : memref<1x2048xf32, #tpu.memory_space<vmem>>, vector<1x768xf32>
    %c0_1 = arith.constant 0 : index
    %c768 = arith.constant 768 : index
    %1 = vector.load %arg7[%c0_1, %c768] : memref<1x2048xf32, #tpu.memory_space<vmem>>, vector<1x1024xf32>
    %c0_2 = arith.constant 0 : index
    %c1792 = arith.constant 1792 : index
    %2 = vector.load %arg7[%c0_2, %c1792] : memref<1x2048xf32, #tpu.memory_space<vmem>>, vector<1x256xf32>
    %c0_3 = arith.constant 0 : index
    %c0_4 = arith.constant 0 : index
    %3 = vector.load %arg2[%c0_3, %c0_4] : memref<2x768xbf16, #tpu.memory_space<vmem>>, vector<2x768xbf16>
    %c0_5 = arith.constant 0 : index
    %c0_6 = arith.constant 0 : index
    %4 = vector.load %arg3[%c0_5, %c0_6] : memref<768x768xbf16, #tpu.memory_space<vmem>>, vector<768x768xbf16>
    %cst = arith.constant dense<0.000000e+00> : vector<2x768xf32>
    %5 = tpu.matmul %3, %4, %cst {dimension_numbers = #tpu.dot_dimension_numbers<[1], [0], [0], [1], [0, 0, 1, 1], [], []>} : vector<2x768xbf16>, vector<768x768xbf16>, vector<2x768xf32> -> vector<2x768xf32>
    %6 = vector.broadcast %0 : vector<1x768xf32> to vector<2x768xf32>
    %7 = arith.addf %5, %6 : vector<2x768xf32>
    %cst_7 = arith.constant 0.000000e+00 : f32
    %8 = vector.broadcast %cst_7 : f32 to vector<2x768xf32>
    %9 = arith.maximumf %7, %8 : vector<2x768xf32>
    %10 = arith.truncf %9 : vector<2x768xf32> to vector<2x768xbf16>
    %c0_8 = arith.constant 0 : index
    %c0_9 = arith.constant 0 : index
    %11 = vector.load %arg4[%c0_8, %c0_9] : memref<768x1024xbf16, #tpu.memory_space<vmem>>, vector<768x1024xbf16>
    %cst_10 = arith.constant dense<0.000000e+00> : vector<2x1024xf32>
    %12 = tpu.matmul %10, %11, %cst_10 {dimension_numbers = #tpu.dot_dimension_numbers<[1], [0], [0], [1], [0, 0, 1, 1], [], []>} : vector<2x768xbf16>, vector<768x1024xbf16>, vector<2x1024xf32> -> vector<2x1024xf32>
    %13 = vector.broadcast %1 : vector<1x1024xf32> to vector<2x1024xf32>
    %14 = arith.addf %12, %13 : vector<2x1024xf32>
    %cst_11 = arith.constant 0.000000e+00 : f32
    %15 = vector.broadcast %cst_11 : f32 to vector<2x1024xf32>
    %16 = arith.maximumf %14, %15 : vector<2x1024xf32>
    %17 = arith.truncf %16 : vector<2x1024xf32> to vector<2x1024xbf16>
    %c0_12 = arith.constant 0 : index
    %c0_13 = arith.constant 0 : index
    %18 = vector.load %arg5[%c0_12, %c0_13] : memref<1024x256xbf16, #tpu.memory_space<vmem>>, vector<1024x256xbf16>
    %cst_14 = arith.constant dense<0.000000e+00> : vector<2x256xf32>
    %19 = tpu.matmul %17, %18, %cst_14 {dimension_numbers = #tpu.dot_dimension_numbers<[1], [0], [0], [1], [0, 0, 1, 1], [], []>} : vector<2x1024xbf16>, vector<1024x256xbf16>, vector<2x256xf32> -> vector<2x256xf32>
    %c0_15 = arith.constant 0 : index
    %c0_16 = arith.constant 0 : index
    %20 = vector.load %arg1[%c0_15, %c0_16] : memref<2x8xbf16, #tpu.memory_space<vmem>>, vector<2x8xbf16>
    %c0_17 = arith.constant 0 : index
    %c0_18 = arith.constant 0 : index
    %21 = vector.load %arg6[%c0_17, %c0_18] : memref<8x256xbf16, #tpu.memory_space<vmem>>, vector<8x256xbf16>
    %cst_19 = arith.constant dense<0.000000e+00> : vector<2x256xf32>
    %22 = tpu.matmul %20, %21, %cst_19 {dimension_numbers = #tpu.dot_dimension_numbers<[1], [0], [0], [1], [0, 0, 1, 1], [], []>} : vector<2x8xbf16>, vector<8x256xbf16>, vector<2x256xf32> -> vector<2x256xf32>
    %23 = arith.addf %19, %22 : vector<2x256xf32>
    %24 = vector.broadcast %2 : vector<1x256xf32> to vector<2x256xf32>
    %25 = arith.addf %23, %24 : vector<2x256xf32>
    %c0_20 = arith.constant 0 : index
    %c0_21 = arith.constant 0 : index
    %26 = vector.load %arg8[%c0_20, %c0_21] : memref<2x256xf32, #tpu.memory_space<vmem>>, vector<2x256xf32>
    tpu.vector_store %arg8[%c0_20, %c0_21], %25 {strides = array<i32>} : memref<2x256xf32, #tpu.memory_space<vmem>>, vector<2x256xf32>,
    return
  }
  func.func @transform_0(%arg0: i32) -> (i32, i32) {
    %c0_i32 = arith.constant 0 : i32
    %c0_i32_0 = arith.constant 0 : i32
    return %arg0, %c0_i32 : i32, i32
  }
  func.func @transform_1(%arg0: i32) -> (i32, i32) {
    %c0_i32 = arith.constant 0 : i32
    %c0_i32_0 = arith.constant 0 : i32
    return %arg0, %c0_i32 : i32, i32
  }
  func.func @transform_2(%arg0: i32) -> (i32, i32) {
    %c0_i32 = arith.constant 0 : i32
    %c0_i32_0 = arith.constant 0 : i32
    %c0_i32_1 = arith.constant 0 : i32
    return %c0_i32, %c0_i32_0 : i32, i32
  }
  func.func @transform_3(%arg0: i32) -> (i32, i32) {
    %c0_i32 = arith.constant 0 : i32
    %c0_i32_0 = arith.constant 0 : i32
    %c0_i32_1 = arith.constant 0 : i32
    return %c0_i32, %c0_i32_0 : i32, i32
  }
  func.func @transform_4(%arg0: i32) -> (i32, i32) {
    %c0_i32 = arith.constant 0 : i32
    %c0_i32_0 = arith.constant 0 : i32
    %c0_i32_1 = arith.constant 0 : i32
    return %c0_i32, %c0_i32_0 : i32, i32
  }
  func.func @transform_5(%arg0: i32) -> (i32, i32) {
    %c0_i32 = arith.constant 0 : i32
    %c0_i32_0 = arith.constant 0 : i32
    %c0_i32_1 = arith.constant 0 : i32
    return %c0_i32, %c0_i32_0 : i32, i32
  }
  func.func @transform_6(%arg0: i32) -> (i32, i32) {
    %c0_i32 = arith.constant 0 : i32
    %c0_i32_0 = arith.constant 0 : i32
    %c0_i32_1 = arith.constant 0 : i32
    return %c0_i32, %c0_i32_0 : i32, i32
  }
  func.func @transform_7(%arg0: i32) -> (i32, i32) {
    %c0_i32 = arith.constant 0 : i32
    %c0_i32_0 = arith.constant 0 : i32
    return %arg0, %c0_i32 : i32, i32
  }
}

</mosaic_0001>

<bundles_post_ra>
// kernel: thln_forward.1
= control target key start
LH: loop header
LB: loop body
LE: loop exit
PB: predicated region body
PF: predicated region fallthrough
CT: control target
= control target key end

     0   :  { %12 = vsyncpa [#allocation3], 0  ;;  %s8077_s0 = inlined_call_operand.vmem [shape: bf16[2,8], index: 0, kind: input, shape index: {}]   ;;  %s8078_s1 = inlined_call_operand.vmem [shape: bf16[2,768], index: 1, kind: input, shape index: {}]   ;;  %s8079_s2 = inlined_call_operand.hbm [shape: bf16[768,768], index: 2, kind: input, shape index: {}]   ;;  %s8080_s3 = inlined_call_operand.hbm [shape: bf16[768,1024], index: 3, kind: input, shape index: {}]   ;;  %s8081_s4 = inlined_call_operand.hbm [shape: bf16[1024,256], index: 4, kind: input, shape index: {}]   ;;  %s8082_s5 = inlined_call_operand.hbm [shape: bf16[8,256], index: 5, kind: input, shape index: {}]   ;;  %s8083_s6 = inlined_call_operand.hbm [shape: f32[1,2048], index: 6, kind: input, shape index: {}]   ;;  %s8084_s7 = inlined_call_operand.vmem [shape: f32[2,256], index: 7, kind: output, shape index: {}]  }
   0x1   :  { %13 = vsyncpa [#allocation5], 0 }
   0x2   :  { %14 = vsyncpa [#allocation8], 0  ;;  %s7796_s24 = smov [#allocation4]   ;;  %s7680_s28 = scalar_lea.hbm %s8080_s3, 49152 }
   0x3   :  { %s36_s25 = sshll.u32 %s7796_s24, 4  ;;  %p7681_p0 = scmp.ne.s32.totalorder %s8080_s3, %s7680_s28  ;;  %s37_s25 = int_to_ptr.vmem [resolvable:$true] %s36_s25 }
   0x4   :  { %p7684_p1 = scmp.lt.u32.totalorder %s7680_s28, %s8080_s3 }
   0x6   :  { %p7686_p2 = pnand %p7684_p1, %p7681_p0 }
   0x8   :  { %7689 = shalt.err (!%p7686_p2)
}
   0x9   :  { %s7690_s10 = scalar_lea.vmem %s37_s25, 49152  ;;  %p7695_p4 = scmp.lt.s32.totalorder %s37_s25, %s37_s25 }
   0xa   :  { %p7691_p3 = scmp.ne.s32.totalorder %s37_s25, %s7690_s10  ;;  %p7696_p5 = scmp.lt.s32.totalorder %s7690_s10, %s7690_s10 }
   0xc   :  { %p7697_p6 = por %p7696_p5, %p7695_p4 }
   0xe   :  { %p7698_p7 = pnand %p7697_p6, %p7691_p3 }
  0x10   :  { %7701 = shalt.err (!%p7698_p7)
}
  0x11   :  { %s7797_s11 = smov 512   ;;  %s7798_s12 = smov 32  }
  0x12   :  { %42 = dma.hbm_to_vmem [thread:$0]  %s8080_s3, 49152, %s37_s25, [#allocation5], %s7797_s11, %s7797_s11, %s7798_s12  }
  0x13   :  { %s7799_s15 = smov [#allocation7]   ;;  %s7800_s17 = smov [#allocation2]  }
  0x14   :  { %s61_s16 = sshll.u32 %s7799_s15, 4  ;;  %s24_s18 = sshll.u32 %s7800_s17, 4  ;;  %s62_s16 = int_to_ptr.vmem [resolvable:$true] %s61_s16  ;;  %s25_s18 = int_to_ptr.vmem [resolvable:$true] %s24_s18 }
  0x15   :  { %s7702_s21 = scalar_lea.hbm %s8082_s5, 128 }
  0x16   :  { %p7703_p8 = scmp.ne.s32.totalorder %s8082_s5, %s7702_s21  ;;  %p7706_p9 = scmp.lt.u32.totalorder %s7702_s21, %s8082_s5 }
  0x18   :  { %p7708_p10 = pnand %p7706_p9, %p7703_p8 }
  0x1a   :  { %7711 = shalt.err (!%p7708_p10)
}
  0x1b   :  { %s7712_s3 = scalar_lea.vmem %s62_s16, 128  ;;  %p7717_p12 = scmp.lt.s32.totalorder %s62_s16, %s62_s16 }
  0x1c   :  { %p7713_p11 = scmp.ne.s32.totalorder %s62_s16, %s7712_s3  ;;  %p7718_p13 = scmp.lt.s32.totalorder %s7712_s3, %s7712_s3 }
  0x1e   :  { %p7719_p0 = por %p7718_p13, %p7717_p12 }
  0x20   :  { %p7720_p1 = pnand %p7719_p0, %p7713_p11 }
  0x22   :  { %7723 = shalt.err (!%p7720_p1)
}
  0x23   :  { %64 = dma.hbm_to_vmem [thread:$0]  %s8082_s5, 128, %s62_s16, [#allocation8]  }
  0x24   :  { %s7724_s30 = scalar_lea.hbm %s8079_s2, 36864 }
  0x25   :  { %p7725_p2 = scmp.ne.s32.totalorder %s8079_s2, %s7724_s30  ;;  %p7728_p3 = scmp.lt.u32.totalorder %s7724_s30, %s8079_s2 }
  0x27   :  { %p7730_p4 = pnand %p7728_p3, %p7725_p2 }
  0x29   :  { %7733 = shalt.err (!%p7730_p4)
}
  0x2a   :  { %s7734_s12 = scalar_lea.vmem %s25_s18, 36864  ;;  %p7739_p6 = scmp.lt.s32.totalorder %s25_s18, %s25_s18 }
  0x2b   :  { %p7735_p5 = scmp.ne.s32.totalorder %s25_s18, %s7734_s12  ;;  %p7740_p7 = scmp.lt.s32.totalorder %s7734_s12, %s7734_s12 }
  0x2d   :  { %p7741_p8 = por %p7740_p7, %p7739_p6 }
  0x2f   :  { %p7742_p9 = pnand %p7741_p8, %p7735_p5 }
  0x31   :  { %7745 = shalt.err (!%p7742_p9)
}
  0x32   :  { %s7801_s5 = smov 384   ;;  %s7802_s13 = smov 24  }
  0x33   :  { %30 = dma.hbm_to_vmem [thread:$0]  %s8079_s2, 36864, %s25_s18, [#allocation3], %s7801_s5, %s7801_s5, %s7802_s13  }
  0x34   :  { %s7803_s16 = smov [#allocation6]   ;;  %s7746_s21 = scalar_lea.hbm %s8081_s4, 16384 }
  0x35   :  { %s48_s17 = sshll.u32 %s7803_s16, 4  ;;  %p7747_p10 = scmp.ne.s32.totalorder %s8081_s4, %s7746_s21  ;;  %s49_s17 = int_to_ptr.vmem [resolvable:$true] %s48_s17 }
  0x36   :  { %p7750_p11 = scmp.lt.u32.totalorder %s7746_s21, %s8081_s4 }
  0x38   :  { %p7752_p12 = pnand %p7750_p11, %p7747_p10 }
  0x3a   :  { %7755 = shalt.err (!%p7752_p12)
}
  0x3b   :  { %s7756_s3 = scalar_lea.vmem %s49_s17, 16384  ;;  %p7761_p0 = scmp.lt.s32.totalorder %s49_s17, %s49_s17 }
  0x3c   :  { %p7757_p13 = scmp.ne.s32.totalorder %s49_s17, %s7756_s3  ;;  %p7762_p1 = scmp.lt.s32.totalorder %s7756_s3, %s7756_s3 }
  0x3e   :  { %p7763_p2 = por %p7762_p1, %p7761_p0 }
  0x40   :  { %p7764_p3 = pnand %p7763_p2, %p7757_p13 }
  0x42   :  { %7767 = shalt.err (!%p7764_p3)
}
  0x43   :  { %s7804_s2 = smov 128   ;;  %s7805_s18 = smov 8  }
  0x44   :  { %54 = dma.hbm_to_vmem [thread:$0]  %s8081_s4, 16384, %s49_s17, [#allocation5], %s7804_s2, %s7804_s2, %s7805_s18  }
  0x45   :  { %s7806_s28 = smov [#allocation9]   ;;  %s7768_s9 = scalar_lea.hbm %s8083_s6, 256 }
  0x46   :  { %s71_s29 = sshll.u32 %s7806_s28, 4  ;;  %p7769_p4 = scmp.ne.s32.totalorder %s8083_s6, %s7768_s9  ;;  %s72_s29 = int_to_ptr.vmem [resolvable:$true] %s71_s29 }
  0x47   :  { %p7772_p5 = scmp.lt.u32.totalorder %s7768_s9, %s8083_s6 }
  0x49   :  { %p7774_p6 = pnand %p7772_p5, %p7769_p4 }
  0x4b   :  { %7777 = shalt.err (!%p7774_p6)
}
  0x4c   :  { %s7778_s13 = scalar_lea.vmem %s72_s29, 256  ;;  %p7783_p8 = scmp.lt.s32.totalorder %s72_s29, %s72_s29 }
  0x4d   :  { %p7779_p7 = scmp.ne.s32.totalorder %s72_s29, %s7778_s13  ;;  %p7784_p9 = scmp.lt.s32.totalorder %s7778_s13, %s7778_s13 }
  0x4f   :  { %p7785_p10 = por %p7784_p9, %p7783_p8 }
  0x51   :  { %p7786_p11 = pnand %p7785_p10, %p7779_p7 }
  0x53   :  { %7789 = shalt.err (!%p7786_p11)
}
  0x54   :  { %74 = dma.hbm_to_vmem [thread:$0]  %s8083_s6, 256, %s72_s29, [#allocation8]  }
  0x55   :  { %7790 = dma.done.wait [#allocation3], 36864  }
  0x56   :  { %7791 = vsyncadd [#allocation3], 4294930432 }
  0x57   :  { %7792 = dma.done.wait [#allocation5], 65536  }
  0x58   :  { %7793 = vsyncadd [#allocation5], 4294901760 }
  0x59   :  { %7794 = dma.done.wait [#allocation8], 384  }
  0x5a   :  { %7795 = vsyncadd [#allocation8], 4294966912  ;;  %v7053_v0 = vld [vmem:[#allocation2 + $0x4] ss:$24 sps:$4 sm:$0xff]   ;;  %v7057_v2 = vld [vmem:[#allocation2] ss:$24 sps:$4 sm:$0xff]   ;;  %v384_v36 = vlaneseq }
  0x5b   :  { %v7055_v1 = vld [vmem:[#allocation2 + $0xc] ss:$24 sps:$4 sm:$0xff]   ;;  %1908 = vmatprep.subr.bf16.mxu0 %v7053_v0  ;;  %v7058_v3 = vld [vmem:[#allocation2 + $0x8] ss:$24 sps:$4 sm:$0xff]   ;;  %v7061_v5 = vld [vmem:[#allocation2 + $0x3c] ss:$24 sps:$4 sm:$0xff]  }
  0x5c   :  { %2031 = vmatprep.subr.bf16.mxu1 %v7055_v1  ;;  %v7059_v4 = vld [vmem:[#allocation2 + $0x34] ss:$24 sps:$4 sm:$0xff]   ;;  %1909 = vmatpush1.bf16.msra.mxu0 %v7057_v2  ;;  %v7063_v6 = vld [vmem:[#allocation2 + $0x30] ss:$24 sps:$4 sm:$0xff]   ;;  %v7065_v8 = vld [vmem:[#allocation2 + $0x64] ss:$24 sps:$4 sm:$0xff]  }
  0x5d   :  { %2032 = vmatpush1.bf16.msra.mxu1 %v7058_v3  ;;  %1910 = vmatprep.subr.bf16.mxu0 %v7059_v4  ;;  %v7064_v7 = vld [vmem:[#allocation2 + $0x38] ss:$24 sps:$4 sm:$0xff]   ;;  %v7067_v9 = vld [vmem:[#allocation2 + $0x6c] ss:$24 sps:$4 sm:$0xff]   ;;  %v7070_v11 = vld [vmem:[#allocation2 + $0x68] ss:$24 sps:$4 sm:$0xff]  }
  0x5e   :  { %2033 = vmatprep.subr.bf16.mxu1 %v7061_v5  ;;  %v7069_v10 = vld [vmem:[#allocation2 + $0x60] ss:$24 sps:$4 sm:$0xff]   ;;  %v7071_v12 = vld [vmem:[#allocation2 + $0x94] ss:$24 sps:$4 sm:$0xff]   ;;  %v7075_v14 = vld [vmem:[#allocation2 + $0x90] ss:$24 sps:$4 sm:$0xff]  }
  0x5f   :  { %v7073_v13 = vld [vmem:[#allocation2 + $0x9c] ss:$24 sps:$4 sm:$0xff]   ;;  %v7076_v15 = vld [vmem:[#allocation2 + $0x98] ss:$24 sps:$4 sm:$0xff]   ;;  %v7079_v17 = vld [vmem:[#allocation2 + $0xcc] ss:$24 sps:$4 sm:$0xff]  }
  0x60   :  { %1911 = vmatpush1.bf16.msra.mxu0 %v7063_v6  ;;  %v7077_v16 = vld [vmem:[#allocation2 + $0xc4] ss:$24 sps:$4 sm:$0xff]   ;;  %v7081_v18 = vld [vmem:[#allocation2 + $0xc0] ss:$24 sps:$4 sm:$0xff]   ;;  %v7083_v20 = vld [vmem:[#allocation2 + $0xf4] ss:$24 sps:$4 sm:$0xff]  }
  0x61   :  { %2034 = vmatpush1.bf16.msra.mxu1 %v7064_v7  ;;  %1912 = vmatprep.subr.bf16.mxu0 %v7065_v8  ;;  %v7082_v19 = vld [vmem:[#allocation2 + $0xc8] ss:$24 sps:$4 sm:$0xff]   ;;  %v7085_v21 = vld [vmem:[#allocation2 + $0xfc] ss:$24 sps:$4 sm:$0xff]   ;;  %v7088_v23 = vld [vmem:[#allocation2 + $0xf8] ss:$24 sps:$4 sm:$0xff]  }
  0x62   :  { %2035 = vmatprep.subr.bf16.mxu1 %v7067_v9  ;;  %v7087_v22 = vld [vmem:[#allocation2 + $0xf0] ss:$24 sps:$4 sm:$0xff]   ;;  %v7089_v24 = vld [vmem:[#allocation2 + $0x124] ss:$24 sps:$4 sm:$0xff]   ;;  %v7093_v26 = vld [vmem:[#allocation2 + $0x120] ss:$24 sps:$4 sm:$0xff]  }
  0x63   :  { %v7091_v25 = vld [vmem:[#allocation2 + $0x12c] ss:$24 sps:$4 sm:$0xff]   ;;  %v7094_v27 = vld [vmem:[#allocation2 + $0x128] ss:$24 sps:$4 sm:$0xff]   ;;  %v7097_v29 = vld [vmem:[#allocation2 + $0x15c] ss:$24 sps:$4 sm:$0xff]  }
  0x64   :  { %1913 = vmatpush1.bf16.msra.mxu0 %v7069_v10  ;;  %v7095_v28 = vld [vmem:[#allocation2 + $0x154] ss:$24 sps:$4 sm:$0xff]   ;;  %v7099_v30 = vld [vmem:[#allocation2 + $0x150] ss:$24 sps:$4 sm:$0xff]   ;;  %v7101_v32 = vld [vmem:[#allocation2 + $0x184] ss:$24 sps:$4 sm:$0xff]  }
  0x65   :  { %2036 = vmatpush1.bf16.msra.mxu1 %v7070_v11  ;;  %1914 = vmatprep.subr.bf16.mxu0 %v7071_v12  ;;  %v7100_v31 = vld [vmem:[#allocation2 + $0x158] ss:$24 sps:$4 sm:$0xff]   ;;  %v7103_v33 = vld [vmem:[#allocation2 + $0x18c] ss:$24 sps:$4 sm:$0xff]   ;;  %v7106_v35 = vld [vmem:[#allocation2 + $0x188] ss:$24 sps:$4 sm:$0xff]  }
  0x66   :  { %2037 = vmatprep.subr.bf16.mxu1 %v7073_v13  ;;  %v7105_v34 = vld [vmem:[#allocation2 + $0x180] ss:$24 sps:$4 sm:$0xff]   ;;  %v7807_v37 = vmov 1966171168   ;;  %v7107_v39 = vld [vmem:[#allocation2 + $0x1b4] ss:$24 sps:$4 sm:$0xff]  }
  0x67   :  { %v417_v38 = vunpack.c.l.s4 %v7807_v37  ;;  %v7109_v40 = vld [vmem:[#allocation2 + $0x1bc] ss:$24 sps:$4 sm:$0xff]   ;;  %v7111_v41 = vld [vmem:[#allocation2 + $0x1b0] ss:$24 sps:$4 sm:$0xff]   ;;  %v7909_v42 = vshrl.u32 %v384_v36, 7  ;;  %vm5281_vm0 = vcmask 1043456  }
  0x68   :  { %1915 = vmatpush1.bf16.msra.mxu0 %v7075_v14  ;;  %v7112_v44 = vld [vmem:[#allocation2 + $0x1b8] ss:$24 sps:$4 sm:$0xff]   ;;  %v7113_v45 = vld [vmem:[#allocation2 + $0x1e4] ss:$24 sps:$4 sm:$0xff]   ;;  %v7118_v48 = vld [vmem:[#allocation2 + $0x1e8] ss:$24 sps:$4 sm:$0xff]  }
  0x69   :  { %2038 = vmatpush1.bf16.msra.mxu1 %v7076_v15  ;;  %1916 = vmatprep.subr.bf16.mxu0 %v7077_v16  ;;  %v418_v43 = vunpack.c.0.s8 %v417_v38  ;;  %v7115_v46 = vld [vmem:[#allocation2 + $0x1ec] ss:$24 sps:$4 sm:$0xff]   ;;  %v7117_v47 = vld [vmem:[#allocation2 + $0x1e0] ss:$24 sps:$4 sm:$0xff]   ;;  %v7121_v51 = vld [vmem:[#allocation2 + $0x21c] ss:$24 sps:$4 sm:$0xff]  }
  0x6a   :  { %2039 = vmatprep.subr.bf16.mxu1 %v7079_v17  ;;  %v7119_v50 = vld [vmem:[#allocation2 + $0x214] ss:$24 sps:$4 sm:$0xff]   ;;  %v94_v52 = vld [vmem:[%s8078_s1] sm:$0x3f]  ;;  %v7123_v53 = vld [vmem:[#allocation2 + $0x210] ss:$24 sps:$4 sm:$0xff]  }
  0x6b   :  { %v421_v49 = vsub.s32 %v418_v43, %v7909_v42  ;;  %v7124_v55 = vld [vmem:[#allocation2 + $0x218] ss:$24 sps:$4 sm:$0xff]   ;;  %v7125_v56 = vld [vmem:[#allocation2 + $0x244] ss:$24 sps:$4 sm:$0xff]   ;;  %v7130_v61 = vld [vmem:[#allocation2 + $0x248] ss:$24 sps:$4 sm:$0xff]   ;;  %v415_v8 = vcombine.high %v94_v52, %v94_v52 }
  0x6c   :  { %1917 = vmatpush1.bf16.msra.mxu0 %v7081_v18  ;;  %v7127_v57 = vld [vmem:[#allocation2 + $0x24c] ss:$24 sps:$4 sm:$0xff]   ;;  %v7129_v59 = vld [vmem:[#allocation2 + $0x240] ss:$24 sps:$4 sm:$0xff]   ;;  %v7133_v63 = vld [vmem:[#allocation2 + $0x27c] ss:$24 sps:$4 sm:$0xff]  }
  0x6d   :  { %2040 = vmatpush1.bf16.msra.mxu1 %v7082_v19  ;;  %1918 = vmatprep.subr.bf16.mxu0 %v7083_v20  ;;  %v422_v54 = vrot.slane %v94_v52, %v421_v49  ;;  %v7131_v62 = vld [vmem:[#allocation2 + $0x274] ss:$24 sps:$4 sm:$0xff]   ;;  %v7135_v0 = vld [vmem:[#allocation2 + $0x270] ss:$24 sps:$4 sm:$0xff]   ;;  %v7137_v2 = vld [vmem:[#allocation2 + $0x2a4] ss:$24 sps:$4 sm:$0xff]   ;;  %v429_v11 = vrot.slane %v415_v8, %v421_v49 }
  0x6e   :  { %2041 = vmatprep.subr.bf16.mxu1 %v7085_v21  ;;  %v7136_v1 = vld [vmem:[#allocation2 + $0x278] ss:$24 sps:$4 sm:$0xff]   ;;  %v7139_v3 = vld [vmem:[#allocation2 + $0x2ac] ss:$24 sps:$4 sm:$0xff]   ;;  %v7142_v5 = vld [vmem:[#allocation2 + $0x2a8] ss:$24 sps:$4 sm:$0xff]  }
  0x6f   :  { %v430_v58 = vcombine.high %v422_v54, %v422_v54  ;;  %v7141_v4 = vld [vmem:[#allocation2 + $0x2a0] ss:$24 sps:$4 sm:$0xff]   ;;  %v7143_v6 = vld [vmem:[#allocation2 + $0x2d4] ss:$24 sps:$4 sm:$0xff]   ;;  %v7147_v9 = vld [vmem:[#allocation2 + $0x2d0] ss:$24 sps:$4 sm:$0xff]   ;;  %v431_v14 = vcombine.high %v429_v11, %v429_v11  ;;  %v7919_v16 = vrot.slane %v422_v54, %v421_v49  ;;  %v7923_v19 = vrot.slane %v429_v11, %v421_v49 }
  0x70   :  { %1919 = vmatpush1.bf16.msra.mxu0 %v7087_v22  ;;  %v7145_v7 = vld [vmem:[#allocation2 + $0x2dc] ss:$24 sps:$4 sm:$0xff]   ;;  %v7148_v10 = vld [vmem:[#allocation2 + $0x2d8] ss:$24 sps:$4 sm:$0xff]   ;;  %v7154_v13 = vld [vmem:[#allocation2 + $0x30c] ss:$24 sps:$4 sm:$0xff]  }
  0x71   :  { %2042 = vmatpush1.bf16.msra.mxu1 %v7088_v23  ;;  %1920 = vmatprep.subr.bf16.mxu0 %v7089_v24  ;;  %v7915_v60 = vrot.slane %v430_v58, %v421_v49  ;;  %v7151_v12 = vld [vmem:[#allocation2 + $0x304] ss:$24 sps:$4 sm:$0xff]   ;;  %v7149_v15 = vld [vmem:[#allocation2 + $0x300] ss:$24 sps:$4 sm:$0xff]   ;;  %v7921_v18 = vrot.slane %v431_v14, %v421_v49  ;;  %v7157_v20 = vld [vmem:[#allocation2 + $0x334] ss:$24 sps:$4 sm:$0xff]  }
  0x72   :  { %2043 = vmatprep.subr.bf16.mxu1 %v7091_v25  ;;  %v7152_v17 = vld [vmem:[#allocation2 + $0x308] ss:$24 sps:$4 sm:$0xff]   ;;  %v7160_v21 = vld [vmem:[#allocation2 + $0x33c] ss:$24 sps:$4 sm:$0xff]   ;;  %v7158_v24 = vld [vmem:[#allocation2 + $0x338] ss:$24 sps:$4 sm:$0xff]  }
  0x73   :  { %1940 = vmatprep.mubr.bf16.mxu0 %v7915_v60  ;;  %2063 = vmatprep.mubr.bf16.mxu1 %v7915_v60  ;;  %v7927_v22 = vcombine.high %v7915_v60, %v7915_v60  ;;  %v7155_v23 = vld [vmem:[#allocation2 + $0x330] ss:$24 sps:$4 sm:$0xff]   ;;  %v7163_v25 = vld [vmem:[#allocation2 + $0x364] ss:$24 sps:$4 sm:$0xff]   ;;  %v7181_v37 = vld [vmem:[#allocation2 + $0x3f4] ss:$24 sps:$4 sm:$0xff]  }
  0x74   :  { %1921 = vmatpush1.bf16.msra.mxu0 %v7093_v26  ;;  %v7166_v26 = vld [vmem:[#allocation2 + $0x36c] ss:$24 sps:$4 sm:$0xff]   ;;  %v7176_v36 = vld [vmem:[#allocation2 + $0x3c8] ss:$24 sps:$4 sm:$0xff]   ;;  %v7184_v38 = vld [vmem:[#allocation2 + $0x3fc] ss:$24 sps:$4 sm:$0xff]  }
  0x75   :  { %2044 = vmatpush1.bf16.msra.mxu1 %v7094_v27  ;;  %1922 = vmatprep.subr.bf16.mxu0 %v7095_v28  ;;  %v7161_v27 = vld [vmem:[#allocation2 + $0x360] ss:$24 sps:$4 sm:$0xff]   ;;  %v7190_v43 = vld [vmem:[#allocation2 + $0x42c] ss:$24 sps:$4 sm:$0xff]   ;;  %v7232_v8 = vld [vmem:[#allocation2 + $0x57c] ss:$24 sps:$4 sm:$0xff]  }
  0x76   :  { %2045 = vmatprep.subr.bf16.mxu1 %v7097_v29  ;;  %v7164_v28 = vld [vmem:[#allocation2 + $0x368] ss:$24 sps:$4 sm:$0xff]   ;;  %v7169_v29 = vld [vmem:[#allocation2 + $0x394] ss:$24 sps:$4 sm:$0xff]   ;;  %v7194_v49 = vld [vmem:[#allocation2 + $0x458] ss:$24 sps:$4 sm:$0xff]  }
  0x77   :  { %v7197_v52 = vld [vmem:[#allocation2 + $0x480] ss:$24 sps:$4 sm:$0xff]   ;;  %v7205_v54 = vld [vmem:[#allocation2 + $0x4b4] ss:$24 sps:$4 sm:$0xff]   ;;  %v7211_v58 = vld [vmem:[#allocation2 + $0x4e4] ss:$24 sps:$4 sm:$0xff]  }
  0x78   :  { %1923 = vmatpush1.bf16.msra.mxu0 %v7099_v30  ;;  %v7172_v30 = vld [vmem:[#allocation2 + $0x39c] ss:$24 sps:$4 sm:$0xff]   ;;  %v7236_v14 = vld [vmem:[#allocation2 + $0x5a8] ss:$24 sps:$4 sm:$0xff]   ;;  %vm5277_vm1 = vcmask 64512  }
  0x79   :  { %2046 = vmatpush1.bf16.msra.mxu1 %v7100_v31  ;;  %1924 = vmatprep.subr.bf16.mxu0 %v7101_v32  ;;  %v7167_v31 = vld [vmem:[#allocation2 + $0x390] ss:$24 sps:$4 sm:$0xff]   ;;  %v7235_v11 = vld [vmem:[#allocation2 + $0x5a4] ss:$24 sps:$4 sm:$0xff]  }
  0x7a   :  { %2047 = vmatprep.subr.bf16.mxu1 %v7103_v33  ;;  %v7170_v32 = vld [vmem:[#allocation2 + $0x398] ss:$24 sps:$4 sm:$0xff]   ;;  %v7175_v33 = vld [vmem:[#allocation2 + $0x3c4] ss:$24 sps:$4 sm:$0xff]  }
  0x7c   :  { %1925 = vmatpush1.bf16.msra.mxu0 %v7105_v34  ;;  %v7178_v34 = vld [vmem:[#allocation2 + $0x3cc] ss:$24 sps:$4 sm:$0xff]  }
  0x7d   :  { %2048 = vmatpush1.bf16.msra.mxu1 %v7106_v35  ;;  %1926 = vmatprep.subr.bf16.mxu0 %v7107_v39  ;;  %v7173_v35 = vld [vmem:[#allocation2 + $0x3c0] ss:$24 sps:$4 sm:$0xff]   ;;  %v7179_v39 = vld [vmem:[#allocation2 + $0x3f0] ss:$24 sps:$4 sm:$0xff]  }
  0x7e   :  { %2049 = vmatprep.subr.bf16.mxu1 %v7109_v40  ;;  %v7182_v40 = vld [vmem:[#allocation2 + $0x3f8] ss:$24 sps:$4 sm:$0xff]  }
  0x80   :  { %1927 = vmatpush1.bf16.msra.mxu0 %v7111_v41  ;;  %v7187_v41 = vld [vmem:[#allocation2 + $0x424] ss:$24 sps:$4 sm:$0xff]  }
  0x81   :  { %2050 = vmatpush1.bf16.msra.mxu1 %v7112_v44  ;;  %1928 = vmatprep.subr.bf16.mxu0 %v7113_v45  ;;  %v7185_v44 = vld [vmem:[#allocation2 + $0x420] ss:$24 sps:$4 sm:$0xff]  }
  0x82   :  { %2051 = vmatprep.subr.bf16.mxu1 %v7115_v46  ;;  %v7188_v45 = vld [vmem:[#allocation2 + $0x428] ss:$24 sps:$4 sm:$0xff]   ;;  %v7193_v46 = vld [vmem:[#allocation2 + $0x454] ss:$24 sps:$4 sm:$0xff]  }
  0x84   :  { %1929 = vmatpush1.bf16.msra.mxu0 %v7117_v47  ;;  %v7196_v47 = vld [vmem:[#allocation2 + $0x45c] ss:$24 sps:$4 sm:$0xff]  }
  0x85   :  { %2052 = vmatpush1.bf16.msra.mxu1 %v7118_v48  ;;  %1930 = vmatprep.subr.bf16.mxu0 %v7119_v50  ;;  %v7191_v48 = vld [vmem:[#allocation2 + $0x450] ss:$24 sps:$4 sm:$0xff]   ;;  %v7199_v50 = vld [vmem:[#allocation2 + $0x484] ss:$24 sps:$4 sm:$0xff]  }
  0x86   :  { %2053 = vmatprep.subr.bf16.mxu1 %v7121_v51  ;;  %v7202_v51 = vld [vmem:[#allocation2 + $0x48c] ss:$24 sps:$4 sm:$0xff]  }
  0x88   :  { %1931 = vmatpush1.bf16.msra.mxu0 %v7123_v53  ;;  %v7200_v53 = vld [vmem:[#allocation2 + $0x488] ss:$24 sps:$4 sm:$0xff]  }
  0x89   :  { %2054 = vmatpush1.bf16.msra.mxu1 %v7124_v55  ;;  %1932 = vmatprep.subr.bf16.mxu0 %v7125_v56  ;;  %v7208_v55 = vld [vmem:[#allocation2 + $0x4bc] ss:$24 sps:$4 sm:$0xff]   ;;  %v7203_v56 = vld [vmem:[#allocation2 + $0x4b0] ss:$24 sps:$4 sm:$0xff]  }
  0x8a   :  { %2055 = vmatprep.subr.bf16.mxu1 %v7127_v57  ;;  %v7206_v57 = vld [vmem:[#allocation2 + $0x4b8] ss:$24 sps:$4 sm:$0xff]  }
  0x8c   :  { %1933 = vmatpush1.bf16.msra.mxu0 %v7129_v59  ;;  %v7214_v59 = vld [vmem:[#allocation2 + $0x4ec] ss:$24 sps:$4 sm:$0xff]  }
  0x8d   :  { %2056 = vmatpush1.bf16.msra.mxu1 %v7130_v61  ;;  %1934 = vmatprep.subr.bf16.mxu0 %v7131_v62  ;;  %v7209_v61 = vld [vmem:[#allocation2 + $0x4e0] ss:$24 sps:$4 sm:$0xff]  }
  0x8e   :  { %2057 = vmatprep.subr.bf16.mxu1 %v7133_v63  ;;  %v7212_v62 = vld [vmem:[#allocation2 + $0x4e8] ss:$24 sps:$4 sm:$0xff]   ;;  %v7217_v63 = vld [vmem:[#allocation2 + $0x514] ss:$24 sps:$4 sm:$0xff]  }
  0x90   :  { %1935 = vmatpush1.bf16.msra.mxu0 %v7135_v0  ;;  %v7220_v0 = vld [vmem:[#allocation2 + $0x51c] ss:$24 sps:$4 sm:$0xff]  }
  0x91   :  { %2058 = vmatpush1.bf16.msra.mxu1 %v7136_v1  ;;  %1936 = vmatprep.subr.bf16.mxu0 %v7137_v2  ;;  %v7215_v1 = vld [vmem:[#allocation2 + $0x510] ss:$24 sps:$4 sm:$0xff]  }
  0x92   :  { %2059 = vmatprep.subr.bf16.mxu1 %v7139_v3  ;;  %v7218_v2 = vld [vmem:[#allocation2 + $0x518] ss:$24 sps:$4 sm:$0xff]   ;;  %v7223_v3 = vld [vmem:[#allocation2 + $0x544] ss:$24 sps:$4 sm:$0xff]  }
  0x94   :  { %1937 = vmatpush1.bf16.msra.mxu0 %v7141_v4  ;;  %v7226_v4 = vld [vmem:[#allocation2 + $0x54c] ss:$24 sps:$4 sm:$0xff]  }
  0x95   :  { %2060 = vmatpush1.bf16.msra.mxu1 %v7142_v5  ;;  %1938 = vmatprep.subr.bf16.mxu0 %v7143_v6  ;;  %v7221_v5 = vld [vmem:[#allocation2 + $0x540] ss:$24 sps:$4 sm:$0xff]  }
  0x96   :  { %2061 = vmatprep.subr.bf16.mxu1 %v7145_v7  ;;  %v7224_v6 = vld [vmem:[#allocation2 + $0x548] ss:$24 sps:$4 sm:$0xff]   ;;  %v7229_v7 = vld [vmem:[#allocation2 + $0x574] ss:$24 sps:$4 sm:$0xff]  }
  0x98   :  { %1939 = vmatpush1.bf16.msra.mxu0 %v7147_v9  ;;  %v7227_v9 = vld [vmem:[#allocation2 + $0x570] ss:$24 sps:$4 sm:$0xff]  }
  0x99   :  { %2062 = vmatpush1.bf16.msra.mxu1 %v7148_v10  ;;  %1949 = vmatprep.subr.bf16.mxu0 %v7151_v12  ;;  %v7230_v10 = vld [vmem:[#allocation2 + $0x578] ss:$24 sps:$4 sm:$0xff]   ;;  %v7238_v12 = vld [vmem:[#allocation2 + $0x5ac] ss:$24 sps:$4 sm:$0xff]  }
  0x9a   :  { %2072 = vmatprep.subr.bf16.mxu1 %v7154_v13  ;;  %v7233_v13 = vld [vmem:[#allocation2 + $0x5a0] ss:$24 sps:$4 sm:$0xff]  }
  0x9b   :  { %1941 = vmatmul.mubr.bf16.vlgmr.msra.gmra.mrb[0].mxu0 %v7919_v16 }
  0x9c   :  { %2064 = vmatmul.mubr.bf16.vlgmr.msra.gmra.mrb[0].mxu1 %v7919_v16  ;;  %1950 = vmatpush1.bf16.msra.mxu0 %v7149_v15  ;;  %v7241_v15 = vld [vmem:[#allocation2 + $0x5d4] ss:$24 sps:$4 sm:$0xff]  }
  0x9d   :  { %2073 = vmatpush1.bf16.msra.mxu1 %v7152_v17  ;;  %1951 = vmatprep.subr.bf16.mxu0 %v7157_v20  ;;  %v7244_v17 = vld [vmem:[#allocation2 + $0x5dc] ss:$24 sps:$4 sm:$0xff]   ;;  %v7239_v20 = vld [vmem:[#allocation2 + $0x5d0] ss:$24 sps:$4 sm:$0xff]  }
  0x9e   :  { %2074 = vmatprep.subr.bf16.mxu1 %v7160_v21  ;;  %1981 = vmatprep.mubr.bf16.mxu0 %v7927_v22  ;;  %v7242_v21 = vld [vmem:[#allocation2 + $0x5d8] ss:$24 sps:$4 sm:$0xff]  }
  0x9f   :  { %2104 = vmatprep.mubr.bf16.mxu1 %v7927_v22 }
  0xa0   :  { %1952 = vmatpush1.bf16.msra.mxu0 %v7155_v23  ;;  %v7247_v23 = vld [vmem:[#allocation2 + $0x604] ss:$24 sps:$4 sm:$0xff]  }
  0xa1   :  { %2075 = vmatpush1.bf16.msra.mxu1 %v7158_v24  ;;  %1953 = vmatprep.subr.bf16.mxu0 %v7163_v25  ;;  %v7250_v24 = vld [vmem:[#allocation2 + $0x60c] ss:$24 sps:$4 sm:$0xff]   ;;  %v7245_v25 = vld [vmem:[#allocation2 + $0x600] ss:$24 sps:$4 sm:$0xff]  }
  0xa2   :  { %2076 = vmatprep.subr.bf16.mxu1 %v7166_v26  ;;  %v7935_v26 = vcombine.high %v7919_v16, %v7919_v16 }
  0xa4   :  { %1954 = vmatpush1.bf16.msra.mxu0 %v7161_v27  ;;  %v7248_v27 = vld [vmem:[#allocation2 + $0x608] ss:$24 sps:$4 sm:$0xff]  }
  0xa5   :  { %2077 = vmatpush1.bf16.msra.mxu1 %v7164_v28  ;;  %1955 = vmatprep.subr.bf16.mxu0 %v7169_v29  ;;  %v7253_v28 = vld [vmem:[#allocation2 + $0x634] ss:$24 sps:$4 sm:$0xff]  }
  0xa6   :  { %2078 = vmatprep.subr.bf16.mxu1 %v7172_v30  ;;  %v7256_v29 = vld [vmem:[#allocation2 + $0x63c] ss:$24 sps:$4 sm:$0xff]   ;;  %v7251_v30 = vld [vmem:[#allocation2 + $0x630] ss:$24 sps:$4 sm:$0xff]  }
  0xa8   :  { %1956 = vmatpush1.bf16.msra.mxu0 %v7167_v31  ;;  %v7254_v31 = vld [vmem:[#allocation2 + $0x638] ss:$24 sps:$4 sm:$0xff]  }
  0xa9   :  { %2079 = vmatpush1.bf16.msra.mxu1 %v7170_v32  ;;  %1957 = vmatprep.subr.bf16.mxu0 %v7175_v33  ;;  %v7259_v32 = vld [vmem:[#allocation2 + $0x664] ss:$24 sps:$4 sm:$0xff]  }
  0xaa   :  { %2080 = vmatprep.subr.bf16.mxu1 %v7178_v34  ;;  %v7262_v33 = vld [vmem:[#allocation2 + $0x66c] ss:$24 sps:$4 sm:$0xff]   ;;  %v7257_v34 = vld [vmem:[#allocation2 + $0x660] ss:$24 sps:$4 sm:$0xff]  }
  0xac   :  { %1958 = vmatpush1.bf16.msra.mxu0 %v7173_v35  ;;  %v7260_v35 = vld [vmem:[#allocation2 + $0x668] ss:$24 sps:$4 sm:$0xff]  }
  0xad   :  { %2081 = vmatpush1.bf16.msra.mxu1 %v7176_v36  ;;  %1959 = vmatprep.subr.bf16.mxu0 %v7181_v37  ;;  %v7265_v36 = vld [vmem:[#allocation2 + $0x694] ss:$24 sps:$4 sm:$0xff]  }
  0xae   :  { %2082 = vmatprep.subr.bf16.mxu1 %v7184_v38  ;;  %v7268_v37 = vld [vmem:[#allocation2 + $0x69c] ss:$24 sps:$4 sm:$0xff]   ;;  %v7263_v38 = vld [vmem:[#allocation2 + $0x690] ss:$24 sps:$4 sm:$0xff]  }
  0xb0   :  { %1960 = vmatpush1.bf16.msra.mxu0 %v7179_v39  ;;  %v7266_v39 = vld [vmem:[#allocation2 + $0x698] ss:$24 sps:$4 sm:$0xff]  }
  0xb1   :  { %2083 = vmatpush1.bf16.msra.mxu1 %v7182_v40  ;;  %1961 = vmatprep.subr.bf16.mxu0 %v7187_v41  ;;  %v7271_v40 = vld [vmem:[#allocation2 + $0x6c4] ss:$24 sps:$4 sm:$0xff]  }
  0xb2   :  { %2084 = vmatprep.subr.bf16.mxu1 %v7190_v43  ;;  %v7274_v41 = vld [vmem:[#allocation2 + $0x6cc] ss:$24 sps:$4 sm:$0xff]   ;;  %v7269_v43 = vld [vmem:[#allocation2 + $0x6c0] ss:$24 sps:$4 sm:$0xff]  }
  0xb4   :  { %1962 = vmatpush1.bf16.msra.mxu0 %v7185_v44  ;;  %v7272_v44 = vld [vmem:[#allocation2 + $0x6c8] ss:$24 sps:$4 sm:$0xff]  }
  0xb5   :  { %2085 = vmatpush1.bf16.msra.mxu1 %v7188_v45  ;;  %1963 = vmatprep.subr.bf16.mxu0 %v7193_v46  ;;  %v7277_v45 = vld [vmem:[#allocation2 + $0x6f4] ss:$24 sps:$4 sm:$0xff]  }
  0xb6   :  { %2086 = vmatprep.subr.bf16.mxu1 %v7196_v47  ;;  %v7280_v46 = vld [vmem:[#allocation2 + $0x6fc] ss:$24 sps:$4 sm:$0xff]   ;;  %v7275_v47 = vld [vmem:[#allocation2 + $0x6f0] ss:$24 sps:$4 sm:$0xff]  }
  0xb8   :  { %1964 = vmatpush1.bf16.msra.mxu0 %v7191_v48  ;;  %v7278_v48 = vld [vmem:[#allocation2 + $0x6f8] ss:$24 sps:$4 sm:$0xff]  }
  0xb9   :  { %2087 = vmatpush1.bf16.msra.mxu1 %v7194_v49  ;;  %1965 = vmatprep.subr.bf16.mxu0 %v7199_v50  ;;  %v7283_v49 = vld [vmem:[#allocation2 + $0x724] ss:$24 sps:$4 sm:$0xff]  }
  0xba   :  { %2088 = vmatprep.subr.bf16.mxu1 %v7202_v51  ;;  %v7286_v50 = vld [vmem:[#allocation2 + $0x72c] ss:$24 sps:$4 sm:$0xff]   ;;  %v7281_v51 = vld [vmem:[#allocation2 + $0x720] ss:$24 sps:$4 sm:$0xff]  }
  0xbc   :  { %1966 = vmatpush1.bf16.msra.mxu0 %v7197_v52  ;;  %v7284_v52 = vld [vmem:[#allocation2 + $0x728] ss:$24 sps:$4 sm:$0xff]  }
  0xbd   :  { %2089 = vmatpush1.bf16.msra.mxu1 %v7200_v53  ;;  %1967 = vmatprep.subr.bf16.mxu0 %v7205_v54  ;;  %v7289_v53 = vld [vmem:[#allocation2 + $0x754] ss:$24 sps:$4 sm:$0xff]  }
  0xbe   :  { %2090 = vmatprep.subr.bf16.mxu1 %v7208_v55  ;;  %v7292_v54 = vld [vmem:[#allocation2 + $0x75c] ss:$24 sps:$4 sm:$0xff]   ;;  %v7287_v55 = vld [vmem:[#allocation2 + $0x750] ss:$24 sps:$4 sm:$0xff]  }
  0xc0   :  { %1968 = vmatpush1.bf16.msra.mxu0 %v7203_v56  ;;  %v7290_v56 = vld [vmem:[#allocation2 + $0x758] ss:$24 sps:$4 sm:$0xff]  }
  0xc1   :  { %2091 = vmatpush1.bf16.msra.mxu1 %v7206_v57  ;;  %1969 = vmatprep.subr.bf16.mxu0 %v7211_v58  ;;  %v7295_v57 = vld [vmem:[#allocation2 + $0x784] ss:$24 sps:$4 sm:$0xff]  }
  0xc2   :  { %2092 = vmatprep.subr.bf16.mxu1 %v7214_v59  ;;  %v7298_v58 = vld [vmem:[#allocation2 + $0x78c] ss:$24 sps:$4 sm:$0xff]   ;;  %v7293_v59 = vld [vmem:[#allocation2 + $0x780] ss:$24 sps:$4 sm:$0xff]  }
  0xc4   :  { %1970 = vmatpush1.bf16.msra.mxu0 %v7209_v61  ;;  %v7296_v61 = vld [vmem:[#allocation2 + $0x788] ss:$24 sps:$4 sm:$0xff]  }
  0xc5   :  { %2093 = vmatpush1.bf16.msra.mxu1 %v7212_v62  ;;  %1971 = vmatprep.subr.bf16.mxu0 %v7217_v63  ;;  %v7301_v62 = vld [vmem:[#allocation2 + $0x7b4] ss:$24 sps:$4 sm:$0xff]  }
  0xc6   :  { %2094 = vmatprep.subr.bf16.mxu1 %v7220_v0  ;;  %v7304_v63 = vld [vmem:[#allocation2 + $0x7bc] ss:$24 sps:$4 sm:$0xff]   ;;  %v7299_v0 = vld [vmem:[#allocation2 + $0x7b0] ss:$24 sps:$4 sm:$0xff]  }
  0xc8   :  { %1972 = vmatpush1.bf16.msra.mxu0 %v7215_v1  ;;  %v7302_v1 = vld [vmem:[#allocation2 + $0x7b8] ss:$24 sps:$4 sm:$0xff]  }
  0xc9   :  { %2095 = vmatpush1.bf16.msra.mxu1 %v7218_v2  ;;  %1973 = vmatprep.subr.bf16.mxu0 %v7223_v3  ;;  %v7307_v2 = vld [vmem:[#allocation2 + $0x7e4] ss:$24 sps:$4 sm:$0xff]  }
  0xca   :  { %2096 = vmatprep.subr.bf16.mxu1 %v7226_v4  ;;  %v7310_v3 = vld [vmem:[#allocation2 + $0x7ec] ss:$24 sps:$4 sm:$0xff]   ;;  %v7305_v4 = vld [vmem:[#allocation2 + $0x7e0] ss:$24 sps:$4 sm:$0xff]  }
  0xcc   :  { %1974 = vmatpush1.bf16.msra.mxu0 %v7221_v5  ;;  %v7308_v5 = vld [vmem:[#allocation2 + $0x7e8] ss:$24 sps:$4 sm:$0xff]  }
  0xcd   :  { %2097 = vmatpush1.bf16.msra.mxu1 %v7224_v6  ;;  %1975 = vmatprep.subr.bf16.mxu0 %v7229_v7  ;;  %v7313_v6 = vld [vmem:[#allocation2 + $0x814] ss:$24 sps:$4 sm:$0xff]  }
  0xce   :  { %2098 = vmatprep.subr.bf16.mxu1 %v7232_v8  ;;  %v7316_v7 = vld [vmem:[#allocation2 + $0x81c] ss:$24 sps:$4 sm:$0xff]   ;;  %v7311_v8 = vld [vmem:[#allocation2 + $0x810] ss:$24 sps:$4 sm:$0xff]  }
  0xd0   :  { %1976 = vmatpush1.bf16.msra.mxu0 %v7227_v9  ;;  %v7314_v9 = vld [vmem:[#allocation2 + $0x818] ss:$24 sps:$4 sm:$0xff]  }
  0xd1   :  { %2099 = vmatpush1.bf16.msra.mxu1 %v7230_v10  ;;  %1977 = vmatprep.subr.bf16.mxu0 %v7235_v11  ;;  %v7319_v10 = vld [vmem:[#allocation2 + $0x844] ss:$24 sps:$4 sm:$0xff]  }
  0xd2   :  { %2100 = vmatprep.subr.bf16.mxu1 %v7238_v12  ;;  %v7322_v11 = vld [vmem:[#allocation2 + $0x84c] ss:$24 sps:$4 sm:$0xff]   ;;  %v7317_v12 = vld [vmem:[#allocation2 + $0x840] ss:$24 sps:$4 sm:$0xff]  }
  0xd4   :  { %1978 = vmatpush1.bf16.msra.mxu0 %v7233_v13  ;;  %v7320_v13 = vld [vmem:[#allocation2 + $0x848] ss:$24 sps:$4 sm:$0xff]  }
  0xd5   :  { %2101 = vmatpush1.bf16.msra.mxu1 %v7236_v14  ;;  %1979 = vmatprep.subr.bf16.mxu0 %v7241_v15  ;;  %v7325_v14 = vld [vmem:[#allocation2 + $0x874] ss:$24 sps:$4 sm:$0xff]  }
  0xd6   :  { %2102 = vmatprep.subr.bf16.mxu1 %v7244_v17  ;;  %v7328_v15 = vld [vmem:[#allocation2 + $0x87c] ss:$24 sps:$4 sm:$0xff]   ;;  %v7323_v17 = vld [vmem:[#allocation2 + $0x870] ss:$24 sps:$4 sm:$0xff]  }
  0xd8   :  { %1980 = vmatpush1.bf16.msra.mxu0 %v7239_v20  ;;  %v7326_v20 = vld [vmem:[#allocation2 + $0x878] ss:$24 sps:$4 sm:$0xff]  }
  0xd9   :  { %2103 = vmatpush1.bf16.msra.mxu1 %v7242_v21  ;;  %1990 = vmatprep.subr.bf16.mxu0 %v7247_v23  ;;  %v7331_v21 = vld [vmem:[#allocation2 + $0x8a4] ss:$24 sps:$4 sm:$0xff]  }
  0xda   :  { %2113 = vmatprep.subr.bf16.mxu1 %v7250_v24  ;;  %v7334_v23 = vld [vmem:[#allocation2 + $0x8ac] ss:$24 sps:$4 sm:$0xff]   ;;  %v7329_v24 = vld [vmem:[#allocation2 + $0x8a0] ss:$24 sps:$4 sm:$0xff]  }
  0xdb   :  { %1982 = vmatmul.mubr.bf16.vlgmr.msra.gmra.mrb[0].mxu0 %v7935_v26 }
  0xdc   :  { %2105 = vmatmul.mubr.bf16.vlgmr.msra.gmra.mrb[0].mxu1 %v7935_v26  ;;  %1991 = vmatpush1.bf16.msra.mxu0 %v7245_v25  ;;  %v7332_v25 = vld [vmem:[#allocation2 + $0x8a8] ss:$24 sps:$4 sm:$0xff]  }
  0xdd   :  { %2114 = vmatpush1.bf16.msra.mxu1 %v7248_v27  ;;  %1992 = vmatprep.subr.bf16.mxu0 %v7253_v28  ;;  %v7337_v27 = vld [vmem:[#allocation2 + $0x8d4] ss:$24 sps:$4 sm:$0xff]  }
  0xde   :  { %2115 = vmatprep.subr.bf16.mxu1 %v7256_v29  ;;  %2022 = vmatprep.mubr.bf16.mxu0 %v7921_v18  ;;  %v7340_v28 = vld [vmem:[#allocation2 + $0x8dc] ss:$24 sps:$4 sm:$0xff]   ;;  %v7335_v29 = vld [vmem:[#allocation2 + $0x8d0] ss:$24 sps:$4 sm:$0xff]  }
  0xdf   :  { %2145 = vmatprep.mubr.bf16.mxu1 %v7921_v18 }
  0xe0   :  { %1993 = vmatpush1.bf16.msra.mxu0 %v7251_v30  ;;  %v7338_v30 = vld [vmem:[#allocation2 + $0x8d8] ss:$24 sps:$4 sm:$0xff]  }
  0xe1   :  { %2116 = vmatpush1.bf16.msra.mxu1 %v7254_v31  ;;  %1994 = vmatprep.subr.bf16.mxu0 %v7259_v32  ;;  %v7344_v31 = vld [vmem:[#allocation2 + $0x14] ss:$24 sps:$4 sm:$0xff]   ;;  %v7342_v32 = vld [vmem:[#allocation2 + $0x10] ss:$24 sps:$4 sm:$0xff]  }
  0xe2   :  { %2117 = vmatprep.subr.bf16.mxu1 %v7262_v33  ;;  %v7347_v33 = vld [vmem:[#allocation2 + $0x44] ss:$24 sps:$4 sm:$0xff]  }
  0xe4   :  { %1995 = vmatpush1.bf16.msra.mxu0 %v7257_v34  ;;  %v7345_v34 = vld [vmem:[#allocation2 + $0x40] ss:$24 sps:$4 sm:$0xff]  }
  0xe5   :  { %2118 = vmatpush1.bf16.msra.mxu1 %v7260_v35  ;;  %1996 = vmatprep.subr.bf16.mxu0 %v7265_v36  ;;  %v7350_v35 = vld [vmem:[#allocation2 + $0x74] ss:$24 sps:$4 sm:$0xff]   ;;  %v7348_v36 = vld [vmem:[#allocation2 + $0x70] ss:$24 sps:$4 sm:$0xff]  }
  0xe6   :  { %2119 = vmatprep.subr.bf16.mxu1 %v7268_v37  ;;  %v7353_v37 = vld [vmem:[#allocation2 + $0xa4] ss:$24 sps:$4 sm:$0xff]  }
  0xe8   :  { %1997 = vmatpush1.bf16.msra.mxu0 %v7263_v38  ;;  %v7351_v38 = vld [vmem:[#allocation2 + $0xa0] ss:$24 sps:$4 sm:$0xff]  }
  0xe9   :  { %2120 = vmatpush1.bf16.msra.mxu1 %v7266_v39  ;;  %1998 = vmatprep.subr.bf16.mxu0 %v7271_v40  ;;  %v7356_v39 = vld [vmem:[#allocation2 + $0xd4] ss:$24 sps:$4 sm:$0xff]   ;;  %v7354_v40 = vld [vmem:[#allocation2 + $0xd0] ss:$24 sps:$4 sm:$0xff]  }
  0xea   :  { %2121 = vmatprep.subr.bf16.mxu1 %v7274_v41  ;;  %v7359_v41 = vld [vmem:[#allocation2 + $0x104] ss:$24 sps:$4 sm:$0xff]  }
  0xec   :  { %1999 = vmatpush1.bf16.msra.mxu0 %v7269_v43  ;;  %v7357_v43 = vld [vmem:[#allocation2 + $0x100] ss:$24 sps:$4 sm:$0xff]  }
  0xed   :  { %2122 = vmatpush1.bf16.msra.mxu1 %v7272_v44  ;;  %2000 = vmatprep.subr.bf16.mxu0 %v7277_v45  ;;  %v7362_v44 = vld [vmem:[#allocation2 + $0x134] ss:$24 sps:$4 sm:$0xff]   ;;  %v7360_v45 = vld [vmem:[#allocation2 + $0x130] ss:$24 sps:$4 sm:$0xff]  }
  0xee   :  { %2123 = vmatprep.subr.bf16.mxu1 %v7280_v46  ;;  %v2289_v46 = vld [vmem:[#allocation4] sm:$0xff] }
  0xf0   :  { %2001 = vmatpush1.bf16.msra.mxu0 %v7275_v47  ;;  %v2293_v47 = vld [vmem:[#allocation4 + $0x20] sm:$0xff] }
  0xf1   :  { %2124 = vmatpush1.bf16.msra.mxu1 %v7278_v48  ;;  %2002 = vmatprep.subr.bf16.mxu0 %v7283_v49  ;;  %v7363_v48 = vld [vmem:[#allocation2 + $0x160] ss:$24 sps:$4 sm:$0xff]   ;;  %v7368_v49 = vld [vmem:[#allocation2 + $0x194] ss:$24 sps:$4 sm:$0xff]  }
  0xf2   :  { %2125 = vmatprep.subr.bf16.mxu1 %v7286_v50  ;;  %v6453_v50 = vcombine.low %v2289_v46, %v2293_v47 }
  0xf4   :  { %2003 = vmatpush1.bf16.msra.mxu0 %v7281_v51  ;;  %v6454_v51 = vcombine.high %v2289_v46, %v2293_v47  ;;  %v7395_v47 = vld [vmem:[#allocation2 + $0x344] ss:$24 sps:$4 sm:$0xff]  }
  0xf5   :  { %2126 = vmatpush1.bf16.msra.mxu1 %v7284_v52  ;;  %2004 = vmatprep.subr.bf16.mxu0 %v7289_v53  ;;  %v2297_v52 = vld [vmem:[#allocation4 + $0x40] sm:$0xff] }
  0xf6   :  { %2127 = vmatprep.subr.bf16.mxu1 %v7292_v54  ;;  %v2301_v53 = vld [vmem:[#allocation4 + $0x60] sm:$0xff]  ;;  %v7366_v54 = vld [vmem:[#allocation2 + $0x190] ss:$24 sps:$4 sm:$0xff]  }
  0xf8   :  { %2005 = vmatpush1.bf16.msra.mxu0 %v7287_v55  ;;  %v7371_v55 = vld [vmem:[#allocation2 + $0x1c4] ss:$24 sps:$4 sm:$0xff]  }
  0xf9   :  { %2128 = vmatpush1.bf16.msra.mxu1 %v7290_v56  ;;  %2006 = vmatprep.subr.bf16.mxu0 %v7295_v57  ;;  %v6461_v56 = vcombine.low %v2297_v52, %v2301_v53  ;;  %v6462_v57 = vcombine.high %v2297_v52, %v2301_v53  ;;  %v7398_v53 = vld [vmem:[#allocation2 + $0x374] ss:$24 sps:$4 sm:$0xff]  }
  0xfa   :  { %2129 = vmatprep.subr.bf16.mxu1 %v7298_v58  ;;  %v2305_v58 = vld [vmem:[#allocation4 + $0x80] sm:$0xff] }
  0xfc   :  { %2007 = vmatpush1.bf16.msra.mxu0 %v7293_v59  ;;  %v2309_v59 = vld [vmem:[#allocation4 + $0xa0] sm:$0xff] }
  0xfd   :  { %2130 = vmatpush1.bf16.msra.mxu1 %v7296_v61  ;;  %2008 = vmatprep.subr.bf16.mxu0 %v7301_v62  ;;  %v7369_v61 = vld [vmem:[#allocation2 + $0x1c0] ss:$24 sps:$4 sm:$0xff]   ;;  %v7374_v62 = vld [vmem:[#allocation2 + $0x1f4] ss:$24 sps:$4 sm:$0xff]  }
  0xfe   :  { %2131 = vmatprep.subr.bf16.mxu1 %v7304_v63  ;;  %v6469_v63 = vcombine.low %v2305_v58, %v2309_v59 }
 0x100   :  { %2009 = vmatpush1.bf16.msra.mxu0 %v7299_v0  ;;  %v6470_v0 = vcombine.high %v2305_v58, %v2309_v59  ;;  %v2385_v59 = vld [vmem:[#allocation4 + $0x300] sm:$0xff] }
 0x101   :  { %2132 = vmatpush1.bf16.msra.mxu1 %v7302_v1  ;;  %2010 = vmatprep.subr.bf16.mxu0 %v7307_v2  ;;  %v2313_v1 = vld [vmem:[#allocation4 + $0xc0] sm:$0xff] }
 0x102   :  { %2133 = vmatprep.subr.bf16.mxu1 %v7310_v3  ;;  %v2317_v2 = vld [vmem:[#allocation4 + $0xe0] sm:$0xff]  ;;  %v7372_v3 = vld [vmem:[#allocation2 + $0x1f0] ss:$24 sps:$4 sm:$0xff]  }
 0x104   :  { %2011 = vmatpush1.bf16.msra.mxu0 %v7305_v4  ;;  %v7377_v4 = vld [vmem:[#allocation2 + $0x224] ss:$24 sps:$4 sm:$0xff]  }
 0x105   :  { %2134 = vmatpush1.bf16.msra.mxu1 %v7308_v5  ;;  %2012 = vmatprep.subr.bf16.mxu0 %v7313_v6  ;;  %v6477_v5 = vcombine.low %v2313_v1, %v2317_v2  ;;  %v6478_v6 = vcombine.high %v2313_v1, %v2317_v2  ;;  %v2393_v1 = vld [vmem:[#allocation4 + $0x340] sm:$0xff] }
 0x106   :  { %2135 = vmatprep.subr.bf16.mxu1 %v7316_v7  ;;  %v2321_v7 = vld [vmem:[#allocation4 + $0x100] sm:$0xff] }
 0x107   :  { %v2397_v2 = vld [vmem:[#allocation4 + $0x360] sm:$0xff] }
 0x108   :  { %2013 = vmatpush1.bf16.msra.mxu0 %v7311_v8  ;;  %v2325_v8 = vld [vmem:[#allocation4 + $0x120] sm:$0xff] }
 0x109   :  { %2136 = vmatpush1.bf16.msra.mxu1 %v7314_v9  ;;  %2014 = vmatprep.subr.bf16.mxu0 %v7319_v10  ;;  %v7375_v9 = vld [vmem:[#allocation2 + $0x220] ss:$24 sps:$4 sm:$0xff]   ;;  %v6485_v10 = vcombine.low %v2321_v7, %v2325_v8 }
 0x10a   :  { %2137 = vmatprep.subr.bf16.mxu1 %v7322_v11  ;;  %v6486_v11 = vcombine.high %v2321_v7, %v2325_v8  ;;  %v2401_v7 = vld [vmem:[#allocation4 + $0x380] sm:$0xff] }
 0x10b   :  { %v2405_v8 = vld [vmem:[#allocation4 + $0x3a0] sm:$0xff] }
 0x10c   :  { %2015 = vmatpush1.bf16.msra.mxu0 %v7317_v12  ;;  %v7380_v12 = vld [vmem:[#allocation2 + $0x254] ss:$24 sps:$4 sm:$0xff]  }
 0x10d   :  { %2138 = vmatpush1.bf16.msra.mxu1 %v7320_v13  ;;  %2016 = vmatprep.subr.bf16.mxu0 %v7325_v14  ;;  %v2329_v13 = vld [vmem:[#allocation4 + $0x140] sm:$0xff] }
 0x10e   :  { %2139 = vmatprep.subr.bf16.mxu1 %v7328_v15  ;;  %v2333_v14 = vld [vmem:[#allocation4 + $0x160] sm:$0xff]  ;;  %v7378_v15 = vld [vmem:[#allocation2 + $0x250] ss:$24 sps:$4 sm:$0xff]  }
 0x110   :  { %2017 = vmatpush1.bf16.msra.mxu0 %v7323_v17  ;;  %v6493_v17 = vcombine.low %v2329_v13, %v2333_v14 }
 0x111   :  { %2140 = vmatpush1.bf16.msra.mxu1 %v7326_v20  ;;  %2018 = vmatprep.subr.bf16.mxu0 %v7331_v21  ;;  %v6494_v20 = vcombine.high %v2329_v13, %v2333_v14  ;;  %v7383_v21 = vld [vmem:[#allocation2 + $0x284] ss:$24 sps:$4 sm:$0xff]  }
 0x112   :  { %2141 = vmatprep.subr.bf16.mxu1 %v7334_v23  ;;  %v2337_v23 = vld [vmem:[#allocation4 + $0x180] sm:$0xff] }
 0x113   :  { %v2409_v13 = vld [vmem:[#allocation4 + $0x3c0] sm:$0xff] }
 0x114   :  { %2019 = vmatpush1.bf16.msra.mxu0 %v7329_v24  ;;  %v2341_v24 = vld [vmem:[#allocation4 + $0x1a0] sm:$0xff] }
 0x115   :  { %2142 = vmatpush1.bf16.msra.mxu1 %v7332_v25  ;;  %2020 = vmatprep.subr.bf16.mxu0 %v7337_v27  ;;  %v7381_v25 = vld [vmem:[#allocation2 + $0x280] ss:$24 sps:$4 sm:$0xff]   ;;  %v6501_v27 = vcombine.low %v2337_v23, %v2341_v24 }
 0x116   :  { %2143 = vmatprep.subr.bf16.mxu1 %v7340_v28  ;;  %v6502_v28 = vcombine.high %v2337_v23, %v2341_v24  ;;  %v2413_v14 = vld [vmem:[#allocation4 + $0x3e0] sm:$0xff] }
 0x117   :  { %v7946_v23 = vld [vmem:[#allocation4 + $0x400] sm:$0xff] }
 0x118   :  { %2021 = vmatpush1.bf16.msra.mxu0 %v7335_v29  ;;  %v7386_v29 = vld [vmem:[#allocation2 + $0x2b4] ss:$24 sps:$4 sm:$0xff]   ;;  %v7948_v24 = vld [vmem:[#allocation4 + $0x420] sm:$0xff] }
 0x119   :  { %2144 = vmatpush1.bf16.msra.mxu1 %v7338_v30  ;;  %2154 = vmatprep.subr.bf16.mxu0 %v7344_v31  ;;  %v2345_v30 = vld [vmem:[#allocation4 + $0x1c0] sm:$0xff] }
 0x11a   :  { %4634 = vmatprep.subr.bf16.mxu1 %v6454_v51  ;;  %v2349_v31 = vld [vmem:[#allocation4 + $0x1e0] sm:$0xff] }
 0x11b   :  { %2023 = vmatmul.mubr.bf16.vlgmr.msra.gmra.mrb[0].mxu0 %v7923_v19 }
 0x11c   :  { %2146 = vmatmul.mubr.bf16.vlgmr.msra.gmra.mrb[0].mxu1 %v7923_v19  ;;  %2155 = vmatpush1.bf16.msra.mxu0 %v7342_v32  ;;  %v7384_v32 = vld [vmem:[#allocation2 + $0x2b0] ss:$24 sps:$4 sm:$0xff]  }
 0x11d   :  { %2186 = vmatprep.mubr.bf16.mxu0 %v7915_v60  ;;  %2156 = vmatprep.subr.bf16.mxu0 %v7347_v33  ;;  %v7365_v60 = vld [vmem:[#allocation2 + $0x164] ss:$24 sps:$4 sm:$0xff]   ;;  %v6509_v33 = vcombine.low %v2345_v30, %v2349_v31 }
 0x11e   :  { %4635 = vmatpush1.bf16.msra.mxu1 %v6453_v50  ;;  %v7393_v50 = vld [vmem:[#allocation2 + $0x340] ss:$24 sps:$4 sm:$0xff]  }
 0x11f   :  { %4636 = vmatprep.subr.bf16.mxu1 %v6462_v57 }
 0x120   :  { %2157 = vmatpush1.bf16.msra.mxu0 %v7345_v34  ;;  %v6510_v34 = vcombine.high %v2345_v30, %v2349_v31  ;;  %v7414_v30 = vld [vmem:[#allocation2 + $0x490] ss:$24 sps:$4 sm:$0xff]   ;;  %v7419_v31 = vld [vmem:[#allocation2 + $0x4c4] ss:$24 sps:$4 sm:$0xff]  }
 0x121   :  { %2158 = vmatprep.subr.bf16.mxu0 %v7350_v35  ;;  %v7389_v35 = vld [vmem:[#allocation2 + $0x2e4] ss:$24 sps:$4 sm:$0xff]  }
 0x122   :  { %4637 = vmatpush1.bf16.msra.mxu1 %v6461_v56  ;;  %v7396_v56 = vld [vmem:[#allocation2 + $0x370] ss:$24 sps:$4 sm:$0xff]  }
 0x123   :  { %4638 = vmatprep.subr.bf16.mxu1 %v6470_v0  ;;  %v7404_v0 = vld [vmem:[#allocation2 + $0x3d4] ss:$24 sps:$4 sm:$0xff]  }
 0x124   :  { %2159 = vmatpush1.bf16.msra.mxu0 %v7348_v36  ;;  %v2353_v36 = vld [vmem:[#allocation4 + $0x200] sm:$0xff] }
 0x125   :  { %2160 = vmatprep.subr.bf16.mxu0 %v7353_v37  ;;  %v2357_v37 = vld [vmem:[#allocation4 + $0x220] sm:$0xff] }
 0x126   :  { %4639 = vmatpush1.bf16.msra.mxu1 %v6469_v63 }
 0x127   :  { %4640 = vmatprep.subr.bf16.mxu1 %v6478_v6  ;;  %v7407_v6 = vld [vmem:[#allocation2 + $0x404] ss:$24 sps:$4 sm:$0xff]  }
 0x128   :  { %2161 = vmatpush1.bf16.msra.mxu0 %v7351_v38  ;;  %v7387_v38 = vld [vmem:[#allocation2 + $0x2e0] ss:$24 sps:$4 sm:$0xff]  }
 0x129   :  { %2162 = vmatprep.subr.bf16.mxu0 %v7356_v39  ;;  %v6517_v39 = vcombine.low %v2353_v36, %v2357_v37 }
 0x12a   :  { %4641 = vmatpush1.bf16.msra.mxu1 %v6477_v5  ;;  %v6558_v5 = vcombine.high %v2393_v1, %v2397_v2 }
 0x12b   :  { %4642 = vmatprep.subr.bf16.mxu1 %v6486_v11  ;;  %v7410_v11 = vld [vmem:[#allocation2 + $0x434] ss:$24 sps:$4 sm:$0xff]  }
 0x12c   :  { %2163 = vmatpush1.bf16.msra.mxu0 %v7354_v40  ;;  %v6518_v40 = vcombine.high %v2353_v36, %v2357_v37  ;;  %v7423_v36 = vld [vmem:[#allocation2 + $0x520] ss:$24 sps:$4 sm:$0xff]   ;;  %v7428_v37 = vld [vmem:[#allocation2 + $0x554] ss:$24 sps:$4 sm:$0xff]  }
 0x12d   :  { %2164 = vmatprep.subr.bf16.mxu0 %v7359_v41  ;;  %v7392_v41 = vld [vmem:[#allocation2 + $0x314] ss:$24 sps:$4 sm:$0xff]  }
 0x12e   :  { %4643 = vmatpush1.bf16.msra.mxu1 %v6485_v10  ;;  %v6566_v10 = vcombine.high %v2401_v7, %v2405_v8 }
 0x12f   :  { %4644 = vmatprep.subr.bf16.mxu1 %v6494_v20  ;;  %v7413_v20 = vld [vmem:[#allocation2 + $0x464] ss:$24 sps:$4 sm:$0xff]  }
 0x130   :  { %2165 = vmatpush1.bf16.msra.mxu0 %v7357_v43  ;;  %v2361_v43 = vld [vmem:[#allocation4 + $0x240] sm:$0xff] }
 0x131   :  { %2166 = vmatprep.subr.bf16.mxu0 %v7362_v44  ;;  %v2365_v44 = vld [vmem:[#allocation4 + $0x260] sm:$0xff] }
 0x132   :  { %4645 = vmatpush1.bf16.msra.mxu1 %v6493_v17  ;;  %v6526_v46 = vcombine.high %v2361_v43, %v2365_v44  ;;  %v6574_v17 = vcombine.high %v2409_v13, %v2413_v14 }
 0x133   :  { %4646 = vmatprep.subr.bf16.mxu1 %v6502_v28  ;;  %v7416_v28 = vld [vmem:[#allocation2 + $0x494] ss:$24 sps:$4 sm:$0xff]  }
 0x134   :  { %2167 = vmatpush1.bf16.msra.mxu0 %v7360_v45  ;;  %v7390_v45 = vld [vmem:[#allocation2 + $0x310] ss:$24 sps:$4 sm:$0xff]  }
 0x135   :  { %2168 = vmatprep.subr.bf16.mxu0 %v7365_v60  ;;  %v6525_v60 = vcombine.low %v2361_v43, %v2365_v44  ;;  %v7432_v43 = vld [vmem:[#allocation2 + $0x5b0] ss:$24 sps:$4 sm:$0xff]   ;;  %v7437_v44 = vld [vmem:[#allocation2 + $0x5e4] ss:$24 sps:$4 sm:$0xff]  }
 0x136   :  { %4647 = vmatpush1.bf16.msra.mxu1 %v6501_v27  ;;  %v6582_v27 = vcombine.high %v7946_v23, %v7948_v24 }
 0x137   :  { %4648 = vmatprep.subr.bf16.mxu1 %v6510_v34  ;;  %v7420_v34 = vld [vmem:[#allocation2 + $0x4f0] ss:$24 sps:$4 sm:$0xff]  }
 0x138   :  { %2169 = vmatpush1.bf16.msra.mxu0 %v7363_v48  ;;  %v2369_v48 = vld [vmem:[#allocation4 + $0x280] sm:$0xff] }
 0x139   :  { %2170 = vmatprep.subr.bf16.mxu0 %v7368_v49  ;;  %v2373_v49 = vld [vmem:[#allocation4 + $0x2a0] sm:$0xff] }
 0x13a   :  { %4649 = vmatpush1.bf16.msra.mxu1 %v6509_v33  ;;  %v6533_v51 = vcombine.low %v2369_v48, %v2373_v49  ;;  %v6534_v52 = vcombine.high %v2369_v48, %v2373_v49  ;;  %v7422_v33 = vld [vmem:[#allocation2 + $0x4f4] ss:$24 sps:$4 sm:$0xff]   ;;  %v7441_v48 = vld [vmem:[#allocation2 + $0x640] ss:$24 sps:$4 sm:$0xff]  }
 0x13b   :  { %4650 = vmatprep.subr.bf16.mxu1 %v6518_v40  ;;  %v7429_v40 = vld [vmem:[#allocation2 + $0x580] ss:$24 sps:$4 sm:$0xff]   ;;  %v7446_v49 = vld [vmem:[#allocation2 + $0x674] ss:$24 sps:$4 sm:$0xff]  }
 0x13c   :  { %2171 = vmatpush1.bf16.msra.mxu0 %v7366_v54  ;;  %v2377_v54 = vld [vmem:[#allocation4 + $0x2c0] sm:$0xff] }
 0x13d   :  { %2172 = vmatprep.subr.bf16.mxu0 %v7371_v55  ;;  %v2381_v55 = vld [vmem:[#allocation4 + $0x2e0] sm:$0xff] }
 0x13e   :  { %4651 = vmatpush1.bf16.msra.mxu1 %v6517_v39  ;;  %v6541_v57 = vcombine.low %v2377_v54, %v2381_v55  ;;  %v6542_v58 = vcombine.high %v2377_v54, %v2381_v55  ;;  %v7431_v39 = vld [vmem:[#allocation2 + $0x584] ss:$24 sps:$4 sm:$0xff]   ;;  %v7450_v54 = vld [vmem:[#allocation2 + $0x6d0] ss:$24 sps:$4 sm:$0xff]  }
 0x13f   :  { %4652 = vmatprep.subr.bf16.mxu1 %v6526_v46  ;;  %v7438_v46 = vld [vmem:[#allocation2 + $0x610] ss:$24 sps:$4 sm:$0xff]   ;;  %v7455_v55 = vld [vmem:[#allocation2 + $0x704] ss:$24 sps:$4 sm:$0xff]  }
 0x140   :  { %2173 = vmatpush1.bf16.msra.mxu0 %v7369_v61  ;;  %v2389_v61 = vld [vmem:[#allocation4 + $0x320] sm:$0xff] }
 0x141   :  { %2174 = vmatprep.subr.bf16.mxu0 %v7374_v62  ;;  %v6549_v62 = vcombine.low %v2385_v59, %v2389_v61  ;;  %v6550_v63 = vcombine.high %v2385_v59, %v2389_v61  ;;  %v7462_v59 = vld [vmem:[#allocation2 + $0x790] ss:$24 sps:$4 sm:$0xff]   ;;  %v7467_v61 = vld [vmem:[#allocation2 + $0x7c4] ss:$24 sps:$4 sm:$0xff]  }
 0x142   :  { %4653 = vmatpush1.bf16.msra.mxu1 %v6525_v60  ;;  %v7440_v60 = vld [vmem:[#allocation2 + $0x614] ss:$24 sps:$4 sm:$0xff]  }
 0x143   :  { %4654 = vmatprep.subr.bf16.mxu1 %v6534_v52  ;;  %v7447_v52 = vld [vmem:[#allocation2 + $0x6a0] ss:$24 sps:$4 sm:$0xff]  }
 0x144   :  { %2175 = vmatpush1.bf16.msra.mxu0 %v7372_v3  ;;  %v7402_v3 = vld [vmem:[#allocation2 + $0x3d0] ss:$24 sps:$4 sm:$0xff]  }
 0x145   :  { %2176 = vmatprep.subr.bf16.mxu0 %v7377_v4  ;;  %v6557_v4 = vcombine.low %v2393_v1, %v2397_v2  ;;  %v7471_v1 = vld [vmem:[#allocation2 + $0x820] ss:$24 sps:$4 sm:$0xff]   ;;  %v7476_v2 = vld [vmem:[#allocation2 + $0x854] ss:$24 sps:$4 sm:$0xff]  }
 0x146   :  { %4655 = vmatpush1.bf16.msra.mxu1 %v6533_v51  ;;  %v7449_v51 = vld [vmem:[#allocation2 + $0x6a4] ss:$24 sps:$4 sm:$0xff]  }
 0x147   :  { %4656 = vmatprep.subr.bf16.mxu1 %v6542_v58  ;;  %v7459_v58 = vld [vmem:[#allocation2 + $0x760] ss:$24 sps:$4 sm:$0xff]  }
 0x148   :  { %2177 = vmatpush1.bf16.msra.mxu0 %v7375_v9  ;;  %v7405_v9 = vld [vmem:[#allocation2 + $0x400] ss:$24 sps:$4 sm:$0xff]  }
 0x149   :  { %2178 = vmatprep.subr.bf16.mxu0 %v7380_v12  ;;  %v6565_v12 = vcombine.low %v2401_v7, %v2405_v8  ;;  %v7480_v7 = vld [vmem:[#allocation2 + $0x8b0] ss:$24 sps:$4 sm:$0xff]   ;;  %v7485_v8 = vld [vmem:[#allocation2 + $0x8e4] ss:$24 sps:$4 sm:$0xff]  }
 0x14a   :  { %4657 = vmatpush1.bf16.msra.mxu1 %v6541_v57  ;;  %v7461_v57 = vld [vmem:[#allocation2 + $0x764] ss:$24 sps:$4 sm:$0xff]  }
 0x14b   :  { %4658 = vmatprep.subr.bf16.mxu1 %v6550_v63  ;;  %v7468_v63 = vld [vmem:[#allocation2 + $0x7f0] ss:$24 sps:$4 sm:$0xff]  }
 0x14c   :  { %2179 = vmatpush1.bf16.msra.mxu0 %v7378_v15  ;;  %v7408_v15 = vld [vmem:[#allocation2 + $0x430] ss:$24 sps:$4 sm:$0xff]  }
 0x14d   :  { %2180 = vmatprep.subr.bf16.mxu0 %v7383_v21  ;;  %v6573_v21 = vcombine.low %v2409_v13, %v2413_v14  ;;  %v2298_v13 = vld [vmem:[#allocation4 + $0x48] sm:$0xff] }
 0x14e   :  { %4659 = vmatpush1.bf16.msra.mxu1 %v6549_v62  ;;  %v7470_v62 = vld [vmem:[#allocation2 + $0x7f4] ss:$24 sps:$4 sm:$0xff]  }
 0x14f   :  { %4660 = vmatprep.subr.bf16.mxu1 %v6558_v5  ;;  %v7477_v5 = vld [vmem:[#allocation2 + $0x880] ss:$24 sps:$4 sm:$0xff]   ;;  %v2302_v14 = vld [vmem:[#allocation4 + $0x68] sm:$0xff] }
 0x150   :  { %2181 = vmatpush1.bf16.msra.mxu0 %v7381_v25  ;;  %v7411_v25 = vld [vmem:[#allocation2 + $0x460] ss:$24 sps:$4 sm:$0xff]  }
 0x151   :  { %2182 = vmatprep.subr.bf16.mxu0 %v7386_v29  ;;  %v6581_v29 = vcombine.low %v7946_v23, %v7948_v24 }
 0x152   :  { %4661 = vmatpush1.bf16.msra.mxu1 %v6557_v4  ;;  %v7479_v4 = vld [vmem:[#allocation2 + $0x884] ss:$24 sps:$4 sm:$0xff]  }
 0x153   :  { %4662 = vmatprep.subr.bf16.mxu1 %v6566_v10  ;;  %v2294_v10 = vld [vmem:[#allocation4 + $0x28] sm:$0xff] }
 0x154   :  { %2183 = vmatpush1.bf16.msra.mxu0 %v7384_v32  ;;  %v7417_v32 = vld [vmem:[#allocation2 + $0x4c0] ss:$24 sps:$4 sm:$0xff]  }
 0x155   :  { %2184 = vmatprep.subr.bf16.mxu0 %v7389_v35  ;;  %v7425_v35 = vld [vmem:[#allocation2 + $0x524] ss:$24 sps:$4 sm:$0xff]  }
 0x156   :  { %4663 = vmatpush1.bf16.msra.mxu1 %v6565_v12 }
 0x157   :  { %4664 = vmatprep.subr.bf16.mxu1 %v6574_v17  ;;  %v6464_v17 = vcombine.high %v2298_v13, %v2302_v14 }
 0x158   :  { %2185 = vmatpush1.bf16.msra.mxu0 %v7387_v38  ;;  %v7426_v38 = vld [vmem:[#allocation2 + $0x550] ss:$24 sps:$4 sm:$0xff]  }
 0x159   :  { %2195 = vmatprep.subr.bf16.mxu0 %v7392_v41  ;;  %v7434_v41 = vld [vmem:[#allocation2 + $0x5b4] ss:$24 sps:$4 sm:$0xff]  }
 0x15a   :  { %4665 = vmatpush1.bf16.msra.mxu1 %v6573_v21  ;;  %v2310_v21 = vld [vmem:[#allocation4 + $0xa8] sm:$0xff] }
 0x15b   :  { %2187 = vmatmul.mubr.bf16.vlgmr.msra.gmra.mrb[4].mxu0 %v7919_v16  ;;  %v7401_v16 = vld [vmem:[#allocation2 + $0x3a4] ss:$24 sps:$4 sm:$0xff]   ;;  %4675 = vmatprep.subr.bf16.mxu1 %v6582_v27 }
 0x15c   :  { %2196 = vmatpush1.bf16.msra.mxu0 %v7390_v45  ;;  %2227 = vmatprep.mubr.bf16.mxu0 %v7927_v22  ;;  %v7399_v22 = vld [vmem:[#allocation2 + $0x3a0] ss:$24 sps:$4 sm:$0xff]  }
 0x15d   :  { %2197 = vmatprep.subr.bf16.mxu0 %v7395_v47  ;;  %v7435_v45 = vld [vmem:[#allocation2 + $0x5e0] ss:$24 sps:$4 sm:$0xff]   ;;  %v7443_v47 = vld [vmem:[#allocation2 + $0x644] ss:$24 sps:$4 sm:$0xff]  }
 0x160   :  { %2198 = vmatpush1.bf16.msra.mxu0 %v7393_v50  ;;  %v7444_v50 = vld [vmem:[#allocation2 + $0x670] ss:$24 sps:$4 sm:$0xff]  }
 0x161   :  { %2199 = vmatprep.subr.bf16.mxu0 %v7398_v53  ;;  %v7452_v53 = vld [vmem:[#allocation2 + $0x6d4] ss:$24 sps:$4 sm:$0xff]  }
 0x164   :  { %2200 = vmatpush1.bf16.msra.mxu0 %v7396_v56  ;;  %v7458_v56 = vld [vmem:[#allocation2 + $0x734] ss:$24 sps:$4 sm:$0xff]  }
 0x165   :  { %2201 = vmatprep.subr.bf16.mxu0 %v7401_v16  ;;  %v7464_v16 = vld [vmem:[#allocation2 + $0x794] ss:$24 sps:$4 sm:$0xff]  }
 0x168   :  { %2202 = vmatpush1.bf16.msra.mxu0 %v7399_v22  ;;  %v7465_v22 = vld [vmem:[#allocation2 + $0x7c0] ss:$24 sps:$4 sm:$0xff]  }
 0x169   :  { %2203 = vmatprep.subr.bf16.mxu0 %v7404_v0  ;;  %v7473_v0 = vld [vmem:[#allocation2 + $0x824] ss:$24 sps:$4 sm:$0xff]  }
 0x16c   :  { %2204 = vmatpush1.bf16.msra.mxu0 %v7402_v3  ;;  %v7474_v3 = vld [vmem:[#allocation2 + $0x850] ss:$24 sps:$4 sm:$0xff]  }
 0x16d   :  { %2205 = vmatprep.subr.bf16.mxu0 %v7407_v6  ;;  %v7482_v6 = vld [vmem:[#allocation2 + $0x8b4] ss:$24 sps:$4 sm:$0xff]  }
 0x170   :  { %2206 = vmatpush1.bf16.msra.mxu0 %v7405_v9  ;;  %v2290_v9 = vld [vmem:[#allocation4 + $0x8] sm:$0xff] }
 0x171   :  { %2207 = vmatprep.subr.bf16.mxu0 %v7410_v11  ;;  %v7483_v11 = vld [vmem:[#allocation2 + $0x8e0] ss:$24 sps:$4 sm:$0xff]   ;;  %v6456_v12 = vcombine.high %v2290_v9, %v2294_v10 }
 0x174   :  { %2208 = vmatpush1.bf16.msra.mxu0 %v7408_v15  ;;  %v6455_v15 = vcombine.low %v2290_v9, %v2294_v10 }
 0x175   :  { %2209 = vmatprep.subr.bf16.mxu0 %v7413_v20  ;;  %v2306_v20 = vld [vmem:[#allocation4 + $0x88] sm:$0xff] }
 0x176   :  { %v6472_v27 = vcombine.high %v2306_v20, %v2310_v21 }
 0x178   :  { %2210 = vmatpush1.bf16.msra.mxu0 %v7411_v25  ;;  %v6463_v25 = vcombine.low %v2298_v13, %v2302_v14  ;;  %v2437_v13 = vld [vmem:[#allocation4 + $0x4a0] sm:$0xff]  ;;  %v2362_v14 = vld [vmem:[#allocation4 + $0x248] sm:$0xff] }
 0x179   :  { %2211 = vmatprep.subr.bf16.mxu0 %v7416_v28  ;;  %v2314_v28 = vld [vmem:[#allocation4 + $0xc8] sm:$0xff] }
 0x17c   :  { %2212 = vmatpush1.bf16.msra.mxu0 %v7414_v30  ;;  %v2318_v30 = vld [vmem:[#allocation4 + $0xe8] sm:$0xff] }
 0x17d   :  { %2213 = vmatprep.subr.bf16.mxu0 %v7419_v31  ;;  %v6471_v31 = vcombine.low %v2306_v20, %v2310_v21 }
 0x180   :  { %2214 = vmatpush1.bf16.msra.mxu0 %v7417_v32  ;;  %v6480_v32 = vcombine.high %v2314_v28, %v2318_v30 }
 0x181   :  { %2215 = vmatprep.subr.bf16.mxu0 %v7422_v33  ;;  %v2322_v33 = vld [vmem:[#allocation4 + $0x108] sm:$0xff] }
 0x184   :  { %2216 = vmatpush1.bf16.msra.mxu0 %v7420_v34  ;;  %v2326_v34 = vld [vmem:[#allocation4 + $0x128] sm:$0xff] }
 0x185   :  { %2217 = vmatprep.subr.bf16.mxu0 %v7425_v35  ;;  %v6479_v35 = vcombine.low %v2314_v28, %v2318_v30  ;;  %v2445_v28 = vld [vmem:[#allocation4 + $0x4e0] sm:$0xff]  ;;  %v2370_v30 = vld [vmem:[#allocation4 + $0x288] sm:$0xff] }
 0x188   :  { %2218 = vmatpush1.bf16.msra.mxu0 %v7423_v36  ;;  %v6488_v36 = vcombine.high %v2322_v33, %v2326_v34 }
 0x189   :  { %2219 = vmatprep.subr.bf16.mxu0 %v7428_v37  ;;  %v2330_v37 = vld [vmem:[#allocation4 + $0x148] sm:$0xff] }
 0x18c   :  { %2220 = vmatpush1.bf16.msra.mxu0 %v7426_v38  ;;  %v2334_v38 = vld [vmem:[#allocation4 + $0x168] sm:$0xff] }
 0x18d   :  { %2221 = vmatprep.subr.bf16.mxu0 %v7431_v39  ;;  %v6487_v39 = vcombine.low %v2322_v33, %v2326_v34  ;;  %v2453_v34 = vld [vmem:[#allocation4 + $0x520] sm:$0xff] }
 0x190   :  { %2222 = vmatpush1.bf16.msra.mxu0 %v7429_v40  ;;  %v7960_v40 = vld [vmem:[#allocation9] sm:$0x3f] }
 0x191   :  { %2223 = vmatprep.subr.bf16.mxu0 %v7434_v41  ;;  %v7963_v41 = vsub.s32 1, %v7909_v42 }
 0x194   :  { %2224 = vmatpush1.bf16.msra.mxu0 %v7432_v43  ;;  %v398_v43 = vsub.s32 3, %v7909_v42 }
 0x195   :  { %2225 = vmatprep.subr.bf16.mxu0 %v7437_v44  ;;  %v6496_v44 = vcombine.high %v2330_v37, %v2334_v38 }
 0x198   :  { %2226 = vmatpush1.bf16.msra.mxu0 %v7435_v45  ;;  %v2338_v45 = vld [vmem:[#allocation4 + $0x188] sm:$0xff] }
 0x199   :  { %2236 = vmatprep.subr.bf16.mxu0 %v7440_v60  ;;  %v2342_v60 = vld [vmem:[#allocation4 + $0x1a8] sm:$0xff] }
 0x19b   :  { %2228 = vmatmul.mubr.bf16.vlgmr.msra.gmra.mrb[4].mxu0 %v7935_v26  ;;  %v7453_v26 = vld [vmem:[#allocation2 + $0x700] ss:$24 sps:$4 sm:$0xff]  }
 0x19c   :  { %2237 = vmatpush1.bf16.msra.mxu0 %v7438_v46  ;;  %2268 = vmatprep.mubr.bf16.mxu0 %v7921_v18  ;;  %v7456_v18 = vld [vmem:[#allocation2 + $0x730] ss:$24 sps:$4 sm:$0xff]  }
 0x19d   :  { %2238 = vmatprep.subr.bf16.mxu0 %v7443_v47  ;;  %v391_v47 = vrot.slane %v7960_v40, %v7963_v41 }
 0x1a0   :  { %2239 = vmatpush1.bf16.msra.mxu0 %v7441_v48  ;;  %v399_v48 = vrot.slane %v7960_v40, %v398_v43 }
 0x1a1   :  { %2240 = vmatprep.subr.bf16.mxu0 %v7446_v49  ;;  %v6495_v49 = vcombine.low %v2330_v37, %v2334_v38 }
 0x1a4   :  { %2241 = vmatpush1.bf16.msra.mxu0 %v7444_v50  ;;  %v6504_v50 = vcombine.high %v2338_v45, %v2342_v60 }
 0x1a5   :  { %2242 = vmatprep.subr.bf16.mxu0 %v7449_v51 }
 0x1a8   :  { %2243 = vmatpush1.bf16.msra.mxu0 %v7447_v52 }
 0x1a9   :  { %2244 = vmatprep.subr.bf16.mxu0 %v7452_v53  ;;  %v2346_v53 = vld [vmem:[#allocation4 + $0x1c8] sm:$0xff] }
 0x1ac   :  { %2245 = vmatpush1.bf16.msra.mxu0 %v7450_v54  ;;  %v2350_v54 = vld [vmem:[#allocation4 + $0x1e8] sm:$0xff] }
 0x1ad   :  { %2246 = vmatprep.subr.bf16.mxu0 %v7455_v55 }
 0x1b0   :  { %2247 = vmatpush1.bf16.msra.mxu0 %v7453_v26 }
 0x1b1   :  { %2248 = vmatprep.subr.bf16.mxu0 %v7458_v56 }
 0x1b4   :  { %2249 = vmatpush1.bf16.msra.mxu0 %v7456_v18 }
 0x1b5   :  { %2250 = vmatprep.subr.bf16.mxu0 %v7461_v57 }
 0x1b8   :  { %2251 = vmatpush1.bf16.msra.mxu0 %v7459_v58 }
 0x1b9   :  { %2252 = vmatprep.subr.bf16.mxu0 %v7464_v16 }
 0x1bc   :  { %2253 = vmatpush1.bf16.msra.mxu0 %v7462_v59  ;;  %v6503_v59 = vcombine.low %v2338_v45, %v2342_v60  ;;  %v2457_v45 = vld [vmem:[#allocation4 + $0x540] sm:$0xff] }
 0x1bd   :  { %2254 = vmatprep.subr.bf16.mxu0 %v7467_v61  ;;  %v2461_v60 = vld [vmem:[#allocation4 + $0x560] sm:$0xff] }
 0x1c0   :  { %2255 = vmatpush1.bf16.msra.mxu0 %v7465_v22 }
 0x1c1   :  { %2256 = vmatprep.subr.bf16.mxu0 %v7470_v62 }
 0x1c4   :  { %2257 = vmatpush1.bf16.msra.mxu0 %v7468_v63  ;;  %v6512_v63 = vcombine.high %v2346_v53, %v2350_v54 }
 0x1c5   :  { %2258 = vmatprep.subr.bf16.mxu0 %v7473_v0 }
 0x1c8   :  { %2259 = vmatpush1.bf16.msra.mxu0 %v7471_v1 }
 0x1c9   :  { %2260 = vmatprep.subr.bf16.mxu0 %v7476_v2  ;;  %v2425_v2 = vld [vmem:[#allocation4 + $0x440] sm:$0xff] }
 0x1cc   :  { %2261 = vmatpush1.bf16.msra.mxu0 %v7474_v3  ;;  %v2429_v3 = vld [vmem:[#allocation4 + $0x460] sm:$0xff] }
 0x1cd   :  { %2262 = vmatprep.subr.bf16.mxu0 %v7479_v4  ;;  %v2354_v4 = vld [vmem:[#allocation4 + $0x208] sm:$0xff]  ;;  %v6590_v9 = vcombine.high %v2425_v2, %v2429_v3 }
 0x1d0   :  { %2263 = vmatpush1.bf16.msra.mxu0 %v7477_v5  ;;  %v2358_v5 = vld [vmem:[#allocation4 + $0x228] sm:$0xff] }
 0x1d1   :  { %2264 = vmatprep.subr.bf16.mxu0 %v7482_v6  ;;  %v6519_v20 = vcombine.low %v2354_v4, %v2358_v5 }
 0x1d4   :  { %2265 = vmatpush1.bf16.msra.mxu0 %v7480_v7 }
 0x1d5   :  { %2266 = vmatprep.subr.bf16.mxu0 %v7485_v8  ;;  %v6511_v8 = vcombine.low %v2346_v53, %v2350_v54  ;;  %v2465_v53 = vld [vmem:[#allocation4 + $0x580] sm:$0xff] }
 0x1d6   :  { %v2469_v54 = vld [vmem:[#allocation4 + $0x5a0] sm:$0xff] }
 0x1d8   :  { %2267 = vmatpush1.bf16.msra.mxu0 %v7483_v11  ;;  %v6520_v11 = vcombine.high %v2354_v4, %v2358_v5  ;;  %v2410_v4 = vld [vmem:[#allocation4 + $0x3c8] sm:$0xff] }
 0x1d9   :  { %4757 = vmatprep.subr.bf16.mxu0 %v6456_v12  ;;  %v2433_v12 = vld [vmem:[#allocation4 + $0x480] sm:$0xff]  ;;  %v2414_v5 = vld [vmem:[#allocation4 + $0x3e8] sm:$0xff] }
 0x1da   :  { %v6598_v21 = vcombine.high %v2433_v12, %v2437_v13 }
 0x1db   :  { %2269 = vmatmul.mubr.bf16.vlgmr.msra.gmra.mrb[4].mxu0 %v7923_v19  ;;  %v7958_v19 = vsub.s32 0, %v7909_v42 }
 0x1dc   :  { %4758 = vmatpush1.bf16.msra.mxu0 %v6455_v15  ;;  %v2366_v15 = vld [vmem:[#allocation4 + $0x268] sm:$0xff] }
 0x1dd   :  { %4759 = vmatprep.subr.bf16.mxu0 %v6464_v17  ;;  %v387_v46 = vrot.slane %v7960_v40, %v7958_v19  ;;  %v6589_v17 = vcombine.low %v2425_v2, %v2429_v3  ;;  %v6527_v33 = vcombine.low %v2362_v14, %v2366_v15  ;;  %v2481_v2 = vld [vmem:[#allocation4 + $0x600] sm:$0xff] }
 0x1de   :  { %v2485_v3 = vld [vmem:[#allocation4 + $0x620] sm:$0xff] }
 0x1e0   :  { %4760 = vmatpush1.bf16.msra.mxu0 %v6463_v25  ;;  %v6528_v25 = vcombine.high %v2362_v14, %v2366_v15  ;;  %v2493_v14 = vld [vmem:[#allocation4 + $0x660] sm:$0xff]  ;;  %v2418_v15 = vld [vmem:[#allocation4 + $0x408] sm:$0xff] }
 0x1e1   :  { %4761 = vmatprep.subr.bf16.mxu0 %v6472_v27  ;;  %v2441_v27 = vld [vmem:[#allocation4 + $0x4c0] sm:$0xff] }
 0x1e2   :  { %v6606_v23 = vcombine.high %v2441_v27, %v2445_v28  ;;  %v6605_v37 = vcombine.low %v2441_v27, %v2445_v28  ;;  %v2497_v28 = vld [vmem:[#allocation4 + $0x680] sm:$0xff] }
 0x1e4   :  { %4762 = vmatpush1.bf16.msra.mxu0 %v6471_v31  ;;  %v2374_v31 = vld [vmem:[#allocation4 + $0x2a8] sm:$0xff] }
 0x1e5   :  { %4763 = vmatprep.subr.bf16.mxu0 %v6480_v32  ;;  %v6597_v32 = vcombine.low %v2433_v12, %v2437_v13  ;;  %v6536_v24 = vcombine.high %v2370_v30, %v2374_v31  ;;  %v6535_v38 = vcombine.low %v2370_v30, %v2374_v31  ;;  %v6576_v12 = vcombine.high %v2410_v4, %v2414_v5  ;;  %v2489_v13 = vld [vmem:[#allocation4 + $0x640] sm:$0xff]  ;;  %v2426_v31 = vld [vmem:[#allocation4 + $0x448] sm:$0xff] }
 0x1e6   :  { %v2501_v30 = vld [vmem:[#allocation4 + $0x6a0] sm:$0xff] }
 0x1e8   :  { %4764 = vmatpush1.bf16.msra.mxu0 %v6479_v35  ;;  %v2378_v35 = vld [vmem:[#allocation4 + $0x2c8] sm:$0xff] }
 0x1e9   :  { %4765 = vmatprep.subr.bf16.mxu0 %v6488_v36  ;;  %v2382_v36 = vld [vmem:[#allocation4 + $0x2e8] sm:$0xff] }
 0x1ec   :  { %4766 = vmatpush1.bf16.msra.mxu0 %v6487_v39 }
 0x1ed   :  { %4767 = vmatprep.subr.bf16.mxu0 %v6496_v44  ;;  %v6544_v44 = vcombine.high %v2378_v35, %v2382_v36 }
 0x1ee   :  { %v2024_v51 = vpop.f32.mrb[0].mxu0 }
 0x1ef   :  { %v7973_v52 = vpop.f32.mrb[0].mxu1  ;;  %v6970_v55 = vadd.f32 %v2024_v51, %v387_v46  ;;  %v2026_v26 = vpop.f32.mrb[1].mxu0  ;;  %v2386_v46 = vld [vmem:[#allocation4 + $0x308] sm:$0xff] }
 0x1f0   :  { %v2149_v56 = vpop.f32.mrb[1].mxu1  ;;  %v6971_v18 = vadd.f32 %v2026_v26, %v391_v47  ;;  %v2028_v58 = vpop.f32.mrb[2].mxu0  ;;  %4768 = vmatpush1.bf16.msra.mxu0 %v6495_v49  ;;  %v2390_v47 = vld [vmem:[#allocation4 + $0x328] sm:$0xff]  ;;  %v6543_v49 = vcombine.low %v2378_v35, %v2382_v36  ;;  %v2509_v35 = vld [vmem:[#allocation4 + $0x6e0] sm:$0xff] }
 0x1f1   :  { %v6973_v57 = vadd.f32 %v2149_v56, %v399_v48  ;;  %v2151_v16 = vpop.f32.mrb[2].mxu1  ;;  %v2277_v61 = vmax.f32 %v6970_v55, 0.0  ;;  %v2029_v22 = vpop.f32.mrb[3].mxu0  ;;  %4769 = vmatprep.subr.bf16.mxu0 %v6504_v50  ;;  %v6622_v50 = vcombine.high %v2457_v45, %v2461_v60  ;;  %v6552_v51 = vcombine.high %v2386_v46, %v2390_v47  ;;  %v2394_v55 = vld [vmem:[#allocation4 + $0x348] sm:$0xff] }
 0x1f2   :  { %v2152_v62 = vpop.f32.mrb[3].mxu1  ;;  %v2278_v0 = vmax.f32 %v6971_v18, 0.0  ;;  %v2398_v26 = vld [vmem:[#allocation4 + $0x368] sm:$0xff]  ;;  %v6621_v56 = vcombine.low %v2457_v45, %v2461_v60  ;;  %v6551_v18 = vcombine.low %v2386_v46, %v2390_v47  ;;  %v2473_v16 = vld [vmem:[#allocation4 + $0x5c0] sm:$0xff] }
 0x1f3   :  { %v2280_v1 = vmax.f32 %v6973_v57, 0.0  ;;  %v7977_v7 = vpack.c.bf16 %v2277_v61, %v2277_v61  ;;  %v6630_v57 = vcombine.high %v2465_v53, %v2469_v54  ;;  %v6560_v58 = vcombine.high %v2394_v55, %v2398_v26  ;;  %v2402_v61 = vld [vmem:[#allocation4 + $0x388] sm:$0xff]  ;;  %v2513_v60 = vld [vmem:[#allocation4 + $0x700] sm:$0xff] }
 0x1f4   :  { %v7975_v6 = vpack.c.bf16 %v2278_v0, %v2278_v0  ;;  %4770 = vmatpush1.bf16.msra.mxu0 %v6503_v59  ;;  %v2477_v59 = vld [vmem:[#allocation4 + $0x5e0] sm:$0xff]  ;;  %v2406_v22 = vld [vmem:[#allocation4 + $0x3a8] sm:$0xff]  ;;  %v6629_v62 = vcombine.low %v2465_v53, %v2469_v54 }
 0x1f5   :  { %4771 = vmatprep.subr.bf16.mxu0 %v6512_v63  ;;  %v7979_v10 = vpack.c.bf16 %v2280_v1, %v2280_v1  ;;  %v6559_v63 = vcombine.low %v2394_v55, %v2398_v26  ;;  %v6638_v0 = vcombine.high %v2473_v16, %v2477_v59  ;;  %v6568_v1 = vcombine.high %v2402_v61, %v2406_v22  ;;  %v2434_v36 = vld [vmem:[#allocation4 + $0x488] sm:$0xff]  ;;  %v2517_v46 = vld [vmem:[#allocation4 + $0x720] sm:$0xff] }
 0x1f6   :  { %4666 = vmatprep.mubr.bf16.mxu1 %v7975_v6  ;;  %4789 = vmatprep.mubr.bf16.mxu0 %v7975_v6  ;;  %v2442_v47 = vld [vmem:[#allocation4 + $0x4c8] sm:$0xff]  ;;  %v2521_v54 = vld [vmem:[#allocation4 + $0x740] sm:$0xff] }
 0x1f7   :  { %4667 = vmatmul.mubr.bf16.vlgmr.msra.gmra.mrb[4].mxu1 %v7977_v7  ;;  %v2525_v55 = vld [vmem:[#allocation4 + $0x760] sm:$0xff]  ;;  %v2450_v26 = vld [vmem:[#allocation4 + $0x508] sm:$0xff] }
 0x1f8   :  { %4676 = vmatpush1.bf16.msra.mxu1 %v6581_v29  ;;  %4707 = vmatprep.mubr.bf16.mxu1 %v7979_v10  ;;  %v2449_v29 = vld [vmem:[#allocation4 + $0x500] sm:$0xff] }
 0x1f9   :  { %4772 = vmatpush1.bf16.msra.mxu0 %v6511_v8  ;;  %4677 = vmatprep.subr.bf16.mxu1 %v6590_v9  ;;  %v6614_v39 = vcombine.high %v2449_v29, %v2453_v34  ;;  %v6613_v48 = vcombine.low %v2449_v29, %v2453_v34  ;;  %v6637_v8 = vcombine.low %v2473_v16, %v2477_v59  ;;  %v2505_v34 = vld [vmem:[#allocation4 + $0x6c0] sm:$0xff] }
 0x1fa   :  { %4773 = vmatprep.subr.bf16.mxu0 %v6520_v11  ;;  %v6567_v9 = vcombine.low %v2402_v61, %v2406_v22  ;;  %v6646_v11 = vcombine.high %v2481_v2, %v2485_v3  ;;  %v6686_v16 = vcombine.high %v2521_v54, %v2525_v55  ;;  %v2529_v61 = vld [vmem:[#allocation4 + $0x780] sm:$0xff] }
 0x1fb   :  { %v2533_v22 = vld [vmem:[#allocation4 + $0x7a0] sm:$0xff] }
 0x1fc   :  { %4678 = vmatpush1.bf16.msra.mxu1 %v6589_v17  ;;  %v2422_v17 = vld [vmem:[#allocation4 + $0x428] sm:$0xff] }
 0x1fd   :  { %4774 = vmatpush1.bf16.msra.mxu0 %v6519_v20  ;;  %4679 = vmatprep.subr.bf16.mxu1 %v6598_v21  ;;  %v6645_v20 = vcombine.low %v2481_v2, %v2485_v3  ;;  %v6575_v21 = vcombine.low %v2410_v4, %v2414_v5  ;;  %v6584_v27 = vcombine.high %v2418_v15, %v2422_v17  ;;  %v2537_v5 = vld [vmem:[#allocation4 + $0x7c0] sm:$0xff] }
 0x1fe   :  { %4775 = vmatprep.subr.bf16.mxu0 %v6528_v25  ;;  %v6654_v25 = vcombine.high %v2489_v13, %v2493_v14  ;;  %v6694_v3 = vcombine.high %v2529_v61, %v2533_v22 }
 0x200   :  { %4680 = vmatpush1.bf16.msra.mxu1 %v6597_v32  ;;  %v2430_v32 = vld [vmem:[#allocation4 + $0x468] sm:$0xff] }
 0x201   :  { %4776 = vmatpush1.bf16.msra.mxu0 %v6527_v33  ;;  %4681 = vmatprep.subr.bf16.mxu1 %v6606_v23  ;;  %v6653_v33 = vcombine.low %v2489_v13, %v2493_v14  ;;  %v6583_v23 = vcombine.low %v2418_v15, %v2422_v17  ;;  %v6592_v29 = vcombine.high %v2426_v31, %v2430_v32 }
 0x202   :  { %4777 = vmatprep.subr.bf16.mxu0 %v6536_v24  ;;  %v6662_v24 = vcombine.high %v2497_v28, %v2501_v30 }
 0x204   :  { %4682 = vmatpush1.bf16.msra.mxu1 %v6605_v37  ;;  %v2438_v37 = vld [vmem:[#allocation4 + $0x4a8] sm:$0xff] }
 0x205   :  { %4778 = vmatpush1.bf16.msra.mxu0 %v6535_v38  ;;  %4683 = vmatprep.subr.bf16.mxu1 %v6614_v39  ;;  %v6661_v38 = vcombine.low %v2497_v28, %v2501_v30  ;;  %v6591_v39 = vcombine.low %v2426_v31, %v2430_v32  ;;  %v6600_v45 = vcombine.high %v2434_v36, %v2438_v37 }
 0x206   :  { %4779 = vmatprep.subr.bf16.mxu0 %v6544_v44  ;;  %v6670_v44 = vcombine.high %v2505_v34, %v2509_v35 }
 0x208   :  { %4684 = vmatpush1.bf16.msra.mxu1 %v6613_v48  ;;  %v2446_v48 = vld [vmem:[#allocation4 + $0x4e8] sm:$0xff] }
 0x209   :  { %4780 = vmatpush1.bf16.msra.mxu0 %v6543_v49  ;;  %4685 = vmatprep.subr.bf16.mxu1 %v6622_v50  ;;  %v6669_v49 = vcombine.low %v2505_v34, %v2509_v35  ;;  %v6599_v50 = vcombine.low %v2434_v36, %v2438_v37  ;;  %v6608_v53 = vcombine.high %v2442_v47, %v2446_v48  ;;  %v7995_v35 = vld [vmem:[#allocation4 + $0x10] sm:$0xff] }
 0x20a   :  { %4781 = vmatprep.subr.bf16.mxu0 %v6552_v51  ;;  %v6678_v51 = vcombine.high %v2513_v60, %v2517_v46  ;;  %v7997_v36 = vld [vmem:[#allocation4 + $0x30] sm:$0xff] }
 0x20c   :  { %4686 = vmatpush1.bf16.msra.mxu1 %v6621_v56  ;;  %v2454_v56 = vld [vmem:[#allocation4 + $0x528] sm:$0xff] }
 0x20d   :  { %4782 = vmatpush1.bf16.msra.mxu0 %v6551_v18  ;;  %4687 = vmatprep.subr.bf16.mxu1 %v6630_v57  ;;  %v6677_v18 = vcombine.low %v2513_v60, %v2517_v46  ;;  %v394_v57 = vsub.s32 2, %v7909_v42  ;;  %v6616_v59 = vcombine.high %v2450_v26, %v2454_v56  ;;  %v6615_v2 = vcombine.low %v2450_v26, %v2454_v56  ;;  %v2565_v60 = vld [vmem:[#allocation4 + $0x8a0] sm:$0xff]  ;;  %v2498_v26 = vld [vmem:[#allocation4 + $0x688] sm:$0xff] }
 0x20e   :  { %4783 = vmatprep.subr.bf16.mxu0 %v6560_v58  ;;  %v6607_v58 = vcombine.low %v2442_v47, %v2446_v48  ;;  %v6457_v46 = vcombine.low %v7995_v35, %v7997_v36  ;;  %v2490_v47 = vld [vmem:[#allocation4 + $0x648] sm:$0xff] }
 0x20f   :  { %v2494_v48 = vld [vmem:[#allocation4 + $0x668] sm:$0xff] }
 0x210   :  { %4688 = vmatpush1.bf16.msra.mxu1 %v6629_v62  ;;  %v2458_v62 = vld [vmem:[#allocation4 + $0x548] sm:$0xff] }
 0x211   :  { %4784 = vmatpush1.bf16.msra.mxu0 %v6559_v63  ;;  %4689 = vmatprep.subr.bf16.mxu1 %v6638_v0  ;;  %v2462_v63 = vld [vmem:[#allocation4 + $0x568] sm:$0xff]  ;;  %v6685_v0 = vcombine.low %v2521_v54, %v2525_v55  ;;  %v2569_v54 = vld [vmem:[#allocation4 + $0x8c0] sm:$0xff] }
 0x212   :  { %4785 = vmatprep.subr.bf16.mxu0 %v6568_v1  ;;  %v395_v1 = vrot.slane %v7960_v40, %v394_v57  ;;  %v6624_v4 = vcombine.high %v2458_v62, %v2462_v63  ;;  %v6623_v14 = vcombine.low %v2458_v62, %v2462_v63  ;;  %v2573_v55 = vld [vmem:[#allocation4 + $0x8e0] sm:$0xff]  ;;  %v2502_v56 = vld [vmem:[#allocation4 + $0x6a8] sm:$0xff] }
 0x213   :  { %v2506_v62 = vld [vmem:[#allocation4 + $0x6c8] sm:$0xff] }
 0x214   :  { %4690 = vmatpush1.bf16.msra.mxu1 %v6637_v8  ;;  %v2541_v8 = vld [vmem:[#allocation4 + $0x7e0] sm:$0xff]  ;;  %v6972_v13 = vadd.f32 %v7973_v52, %v395_v1  ;;  %v2510_v63 = vld [vmem:[#allocation4 + $0x6e8] sm:$0xff]  ;;  %v6663_v1 = vcombine.low %v2498_v26, %v2502_v56 }
 0x215   :  { %4786 = vmatpush1.bf16.msra.mxu0 %v6567_v9  ;;  %4691 = vmatprep.subr.bf16.mxu1 %v6646_v11  ;;  %v2466_v9 = vld [vmem:[#allocation4 + $0x588] sm:$0xff]  ;;  %v6702_v15 = vcombine.high %v2537_v5, %v2541_v8  ;;  %v6701_v28 = vcombine.low %v2537_v5, %v2541_v8  ;;  %v2553_v52 = vld [vmem:[#allocation4 + $0x840] sm:$0xff] }
 0x216   :  { %4787 = vmatprep.subr.bf16.mxu0 %v6576_v12  ;;  %v2470_v11 = vld [vmem:[#allocation4 + $0x5a8] sm:$0xff]  ;;  %v6693_v12 = vcombine.low %v2529_v61, %v2533_v22  ;;  %v2279_v30 = vmax.f32 %v6972_v13, 0.0  ;;  %v2577_v61 = vld [vmem:[#allocation4 + $0x900] sm:$0xff] }
 0x217   :  { %v6632_v17 = vcombine.high %v2466_v9, %v2470_v11  ;;  %v6631_v31 = vcombine.low %v2466_v9, %v2470_v11  ;;  %v2581_v22 = vld [vmem:[#allocation4 + $0x920] sm:$0xff]  ;;  %v2514_v8 = vld [vmem:[#allocation4 + $0x708] sm:$0xff] }
 0x218   :  { %4692 = vmatpush1.bf16.msra.mxu1 %v6645_v20  ;;  %v2545_v20 = vld [vmem:[#allocation4 + $0x800] sm:$0xff]  ;;  %v7999_v37 = vpack.c.bf16 %v2279_v30, %v2279_v30  ;;  %v2518_v9 = vld [vmem:[#allocation4 + $0x728] sm:$0xff]  ;;  %v6741_v11 = vcombine.low %v2577_v61, %v2581_v22 }
 0x219   :  { %4788 = vmatpush1.bf16.msra.mxu0 %v6575_v21  ;;  %4693 = vmatprep.subr.bf16.mxu1 %v6654_v25  ;;  %v2549_v21 = vld [vmem:[#allocation4 + $0x820] sm:$0xff]  ;;  %v2474_v25 = vld [vmem:[#allocation4 + $0x5c8] sm:$0xff] }
 0x21a   :  { %4798 = vmatprep.subr.bf16.mxu0 %v6584_v27  ;;  %v2478_v27 = vld [vmem:[#allocation4 + $0x5e8] sm:$0xff]  ;;  %v6710_v32 = vcombine.high %v2545_v20, %v2549_v21  ;;  %v6709_v34 = vcombine.low %v2545_v20, %v2549_v21  ;;  %v2589_v5 = vld [vmem:[#allocation4 + $0x960] sm:$0xff] }
 0x21b   :  { %v2522_v20 = vld [vmem:[#allocation4 + $0x748] sm:$0xff] }
 0x21c   :  { %4694 = vmatpush1.bf16.msra.mxu1 %v6653_v33  ;;  %4790 = vmatmul.mubr.bf16.vlgmr.msra.gmra.mrb[8].mxu0 %v7977_v7  ;;  %v6640_v33 = vcombine.high %v2474_v25, %v2478_v27  ;;  %v2526_v21 = vld [vmem:[#allocation4 + $0x768] sm:$0xff] }
 0x21d   :  { %4799 = vmatpush1.bf16.msra.mxu0 %v6583_v23  ;;  %4830 = vmatprep.mubr.bf16.mxu0 %v7979_v10  ;;  %v2557_v23 = vld [vmem:[#allocation4 + $0x860] sm:$0xff]  ;;  %v6688_v30 = vcombine.high %v2522_v20, %v2526_v21 }
 0x21e   :  { %4695 = vmatprep.subr.bf16.mxu1 %v6662_v24  ;;  %4800 = vmatprep.subr.bf16.mxu0 %v6592_v29  ;;  %v2482_v24 = vld [vmem:[#allocation4 + $0x608] sm:$0xff] }
 0x21f   :  { %v2486_v29 = vld [vmem:[#allocation4 + $0x628] sm:$0xff] }
 0x220   :  { %4696 = vmatpush1.bf16.msra.mxu1 %v6661_v38  ;;  %v6639_v38 = vcombine.low %v2474_v25, %v2478_v27  ;;  %v6679_v27 = vcombine.low %v2514_v8, %v2518_v9 }
 0x221   :  { %4801 = vmatpush1.bf16.msra.mxu0 %v6591_v39  ;;  %4697 = vmatprep.subr.bf16.mxu1 %v6670_v44  ;;  %v6718_v39 = vcombine.high %v2553_v52, %v2557_v23  ;;  %v6648_v44 = vcombine.high %v2482_v24, %v2486_v29 }
 0x222   :  { %4802 = vmatprep.subr.bf16.mxu0 %v6600_v45  ;;  %v2561_v45 = vld [vmem:[#allocation4 + $0x880] sm:$0xff] }
 0x224   :  { %4698 = vmatpush1.bf16.msra.mxu1 %v6669_v49  ;;  %v6717_v49 = vcombine.low %v2553_v52, %v2557_v23  ;;  %v2534_v52 = vld [vmem:[#allocation4 + $0x7a8] sm:$0xff] }
 0x225   :  { %4803 = vmatpush1.bf16.msra.mxu0 %v6599_v50  ;;  %4699 = vmatprep.subr.bf16.mxu1 %v6678_v51  ;;  %v6647_v50 = vcombine.low %v2482_v24, %v2486_v29  ;;  %v6726_v51 = vcombine.high %v2561_v45, %v2565_v60  ;;  %v6687_v24 = vcombine.low %v2522_v20, %v2526_v21 }
 0x226   :  { %4804 = vmatprep.subr.bf16.mxu0 %v6608_v53  ;;  %v6656_v53 = vcombine.high %v2490_v47, %v2494_v48 }
 0x228   :  { %4700 = vmatpush1.bf16.msra.mxu1 %v6677_v18  ;;  %v6725_v18 = vcombine.low %v2561_v45, %v2565_v60  ;;  %v2542_v45 = vld [vmem:[#allocation4 + $0x7e8] sm:$0xff] }
 0x229   :  { %4805 = vmatpush1.bf16.msra.mxu0 %v6607_v58  ;;  %4701 = vmatprep.subr.bf16.mxu1 %v6686_v16  ;;  %v6655_v58 = vcombine.low %v2490_v47, %v2494_v48  ;;  %v6734_v16 = vcombine.high %v2569_v54, %v2573_v55 }
 0x22a   :  { %4806 = vmatprep.subr.bf16.mxu0 %v6616_v59  ;;  %v6664_v59 = vcombine.high %v2498_v26, %v2502_v56 }
 0x22c   :  { %4702 = vmatpush1.bf16.msra.mxu1 %v6685_v0  ;;  %v6733_v0 = vcombine.low %v2569_v54, %v2573_v55  ;;  %v2550_v54 = vld [vmem:[#allocation4 + $0x828] sm:$0xff] }
 0x22d   :  { %4807 = vmatpush1.bf16.msra.mxu0 %v6615_v2  ;;  %4703 = vmatprep.subr.bf16.mxu1 %v6694_v3  ;;  %v6742_v2 = vcombine.high %v2577_v61, %v2581_v22  ;;  %v6672_v3 = vcombine.high %v2506_v62, %v2510_v63  ;;  %v2558_v61 = vld [vmem:[#allocation4 + $0x868] sm:$0xff] }
 0x22e   :  { %4808 = vmatprep.subr.bf16.mxu0 %v6624_v4  ;;  %v2585_v4 = vld [vmem:[#allocation4 + $0x940] sm:$0xff] }
 0x22f   :  { %v6750_v13 = vcombine.high %v2585_v4, %v2589_v5  ;;  %v6749_v25 = vcombine.low %v2585_v4, %v2589_v5  ;;  %v2566_v4 = vld [vmem:[#allocation4 + $0x8a8] sm:$0xff] }
 0x230   :  { %4704 = vmatpush1.bf16.msra.mxu1 %v6693_v12  ;;  %v6671_v12 = vcombine.low %v2506_v62, %v2510_v63 }
 0x231   :  { %4809 = vmatpush1.bf16.msra.mxu0 %v6623_v14  ;;  %4705 = vmatprep.subr.bf16.mxu1 %v6702_v15  ;;  %v6680_v14 = vcombine.high %v2514_v8, %v2518_v9  ;;  %v2593_v15 = vld [vmem:[#allocation4 + $0x980] sm:$0xff] }
 0x232   :  { %4810 = vmatprep.subr.bf16.mxu0 %v6632_v17  ;;  %v2597_v17 = vld [vmem:[#allocation4 + $0x9a0] sm:$0xff] }
 0x233   :  { %v6757_v23 = vcombine.low %v2593_v15, %v2597_v17 }
 0x234   :  { %4706 = vmatpush1.bf16.msra.mxu1 %v6701_v28  ;;  %v6758_v28 = vcombine.high %v2593_v15, %v2597_v17  ;;  %v2574_v15 = vld [vmem:[#allocation4 + $0x8e8] sm:$0xff] }
 0x235   :  { %4811 = vmatpush1.bf16.msra.mxu0 %v6631_v31  ;;  %4716 = vmatprep.subr.bf16.mxu1 %v6710_v32  ;;  %v2601_v31 = vld [vmem:[#allocation4 + $0x9c0] sm:$0xff] }
 0x236   :  { %4812 = vmatprep.subr.bf16.mxu0 %v6640_v33  ;;  %v2605_v32 = vld [vmem:[#allocation4 + $0x9e0] sm:$0xff]  ;;  %v2530_v33 = vld [vmem:[#allocation4 + $0x788] sm:$0xff] }
 0x237   :  { %4708 = vmatmul.mubr.bf16.vlgmr.msra.gmra.mrb[4].mxu1 %v7999_v37  ;;  %v6766_v29 = vcombine.high %v2601_v31, %v2605_v32  ;;  %v6765_v60 = vcombine.low %v2601_v31, %v2605_v32  ;;  %v6695_v47 = vcombine.low %v2530_v33, %v2534_v52  ;;  %v2582_v31 = vld [vmem:[#allocation4 + $0x928] sm:$0xff] }
 0x238   :  { %4717 = vmatpush1.bf16.msra.mxu1 %v6709_v34  ;;  %v6696_v34 = vcombine.high %v2530_v33, %v2534_v52 }
 0x239   :  { %4813 = vmatpush1.bf16.msra.mxu0 %v6639_v38  ;;  %4718 = vmatprep.subr.bf16.mxu1 %v6718_v39  ;;  %v2609_v38 = vld [vmem:[#allocation4 + $0xa00] sm:$0xff] }
 0x23a   :  { %4814 = vmatprep.subr.bf16.mxu0 %v6648_v44  ;;  %v2613_v39 = vld [vmem:[#allocation4 + $0xa20] sm:$0xff]  ;;  %v2538_v44 = vld [vmem:[#allocation4 + $0x7c8] sm:$0xff] }
 0x23b   :  { %v6774_v48 = vcombine.high %v2609_v38, %v2613_v39  ;;  %v6773_v55 = vcombine.low %v2609_v38, %v2613_v39  ;;  %v6703_v26 = vcombine.low %v2538_v44, %v2542_v45  ;;  %v2590_v38 = vld [vmem:[#allocation4 + $0x968] sm:$0xff] }
 0x23c   :  { %4719 = vmatpush1.bf16.msra.mxu1 %v6717_v49  ;;  %v6704_v49 = vcombine.high %v2538_v44, %v2542_v45 }
 0x23d   :  { %4815 = vmatpush1.bf16.msra.mxu0 %v6647_v50  ;;  %4720 = vmatprep.subr.bf16.mxu1 %v6726_v51  ;;  %v2617_v50 = vld [vmem:[#allocation4 + $0xa40] sm:$0xff] }
 0x23e   :  { %4816 = vmatprep.subr.bf16.mxu0 %v6656_v53  ;;  %v2621_v51 = vld [vmem:[#allocation4 + $0xa60] sm:$0xff]  ;;  %v2546_v53 = vld [vmem:[#allocation4 + $0x808] sm:$0xff] }
 0x23f   :  { %v6782_v56 = vcombine.high %v2617_v50, %v2621_v51  ;;  %v6781_v22 = vcombine.low %v2617_v50, %v2621_v51  ;;  %v6711_v62 = vcombine.low %v2546_v53, %v2550_v54  ;;  %v2598_v50 = vld [vmem:[#allocation4 + $0x9a8] sm:$0xff] }
 0x240   :  { %4721 = vmatpush1.bf16.msra.mxu1 %v6725_v18  ;;  %v6712_v18 = vcombine.high %v2546_v53, %v2550_v54 }
 0x241   :  { %4817 = vmatpush1.bf16.msra.mxu0 %v6655_v58  ;;  %4722 = vmatprep.subr.bf16.mxu1 %v6734_v16  ;;  %v2625_v58 = vld [vmem:[#allocation4 + $0xa80] sm:$0xff] }
 0x242   :  { %4818 = vmatprep.subr.bf16.mxu0 %v6664_v59  ;;  %v2629_v16 = vld [vmem:[#allocation4 + $0xaa0] sm:$0xff]  ;;  %v2554_v59 = vld [vmem:[#allocation4 + $0x848] sm:$0xff] }
 0x243   :  { %v6790_v63 = vcombine.high %v2625_v58, %v2629_v16  ;;  %v6789_v5 = vcombine.low %v2625_v58, %v2629_v16  ;;  %v6719_v8 = vcombine.low %v2554_v59, %v2558_v61  ;;  %v6458_v16 = vcombine.high %v7995_v35, %v7997_v36 }
 0x244   :  { %4723 = vmatpush1.bf16.msra.mxu1 %v6733_v0  ;;  %v6720_v0 = vcombine.high %v2554_v59, %v2558_v61  ;;  %v2610_v61 = vld [vmem:[#allocation4 + $0xa08] sm:$0xff] }
 0x245   :  { %4819 = vmatpush1.bf16.msra.mxu0 %v6663_v1  ;;  %4724 = vmatprep.subr.bf16.mxu1 %v6742_v2  ;;  %v2633_v1 = vld [vmem:[#allocation4 + $0xac0] sm:$0xff] }
 0x246   :  { %4820 = vmatprep.subr.bf16.mxu0 %v6672_v3  ;;  %v2637_v2 = vld [vmem:[#allocation4 + $0xae0] sm:$0xff]  ;;  %v2562_v3 = vld [vmem:[#allocation4 + $0x888] sm:$0xff] }
 0x247   :  { %v6798_v9 = vcombine.high %v2633_v1, %v2637_v2  ;;  %v6797_v17 = vcombine.low %v2633_v1, %v2637_v2  ;;  %v6727_v20 = vcombine.low %v2562_v3, %v2566_v4  ;;  %v2622_v1 = vld [vmem:[#allocation4 + $0xa68] sm:$0xff] }
 0x248   :  { %4725 = vmatpush1.bf16.msra.mxu1 %v6741_v11  ;;  %v6728_v11 = vcombine.high %v2562_v3, %v2566_v4  ;;  %v2626_v4 = vld [vmem:[#allocation4 + $0xa88] sm:$0xff] }
 0x249   :  { %4821 = vmatpush1.bf16.msra.mxu0 %v6671_v12  ;;  %4726 = vmatprep.subr.bf16.mxu1 %v6750_v13  ;;  %v2641_v12 = vld [vmem:[#allocation4 + $0xb00] sm:$0xff] }
 0x24a   :  { %4822 = vmatprep.subr.bf16.mxu0 %v6680_v14  ;;  %v2645_v13 = vld [vmem:[#allocation4 + $0xb20] sm:$0xff]  ;;  %v2570_v14 = vld [vmem:[#allocation4 + $0x8c8] sm:$0xff] }
 0x24b   :  { %v6806_v21 = vcombine.high %v2641_v12, %v2645_v13  ;;  %v6805_v32 = vcombine.low %v2641_v12, %v2645_v13  ;;  %v6735_v33 = vcombine.low %v2570_v14, %v2574_v15  ;;  %v2638_v12 = vld [vmem:[#allocation4 + $0xae8] sm:$0xff] }
 0x24c   :  { %4727 = vmatpush1.bf16.msra.mxu1 %v6749_v25  ;;  %v6736_v25 = vcombine.high %v2570_v14, %v2574_v15  ;;  %v2642_v15 = vld [vmem:[#allocation4 + $0xb08] sm:$0xff] }
 0x24d   :  { %4823 = vmatpush1.bf16.msra.mxu0 %v6679_v27  ;;  %4728 = vmatprep.subr.bf16.mxu1 %v6758_v28  ;;  %v2649_v27 = vld [vmem:[#allocation4 + $0xb40] sm:$0xff] }
 0x24e   :  { %4824 = vmatprep.subr.bf16.mxu0 %v6688_v30  ;;  %v2653_v28 = vld [vmem:[#allocation4 + $0xb60] sm:$0xff]  ;;  %v2578_v30 = vld [vmem:[#allocation4 + $0x908] sm:$0xff] }
 0x24f   :  { %v6814_v52 = vcombine.high %v2649_v27, %v2653_v28  ;;  %v6813_v39 = vcombine.low %v2649_v27, %v2653_v28  ;;  %v6743_v44 = vcombine.low %v2578_v30, %v2582_v31  ;;  %v2654_v27 = vld [vmem:[#allocation4 + $0xb68] sm:$0xff] }
 0x250   :  { %4729 = vmatpush1.bf16.msra.mxu1 %v6757_v23  ;;  %v6744_v23 = vcombine.high %v2578_v30, %v2582_v31  ;;  %v2658_v31 = vld [vmem:[#allocation4 + $0xb88] sm:$0xff] }
 0x251   :  { %4825 = vmatpush1.bf16.msra.mxu0 %v6687_v24  ;;  %4730 = vmatprep.subr.bf16.mxu1 %v6766_v29  ;;  %v2657_v24 = vld [vmem:[#allocation4 + $0xb80] sm:$0xff] }
 0x252   :  { %4826 = vmatprep.subr.bf16.mxu0 %v6696_v34  ;;  %v2661_v29 = vld [vmem:[#allocation4 + $0xba0] sm:$0xff]  ;;  %v2586_v34 = vld [vmem:[#allocation4 + $0x948] sm:$0xff] }
 0x253   :  { %v6822_v45 = vcombine.high %v2657_v24, %v2661_v29  ;;  %v6821_v51 = vcombine.low %v2657_v24, %v2661_v29  ;;  %v6751_v53 = vcombine.low %v2586_v34, %v2590_v38  ;;  %v2670_v24 = vld [vmem:[#allocation4 + $0xbe8] sm:$0xff] }
 0x254   :  { %4731 = vmatpush1.bf16.msra.mxu1 %v6765_v60  ;;  %v6752_v60 = vcombine.high %v2586_v34, %v2590_v38  ;;  %v2292_v38 = vld [vmem:[#allocation4 + $0x18] sm:$0xff] }
 0x255   :  { %4827 = vmatpush1.bf16.msra.mxu0 %v6695_v47  ;;  %4732 = vmatprep.subr.bf16.mxu1 %v6774_v48  ;;  %v2665_v47 = vld [vmem:[#allocation4 + $0xbc0] sm:$0xff] }
 0x256   :  { %4828 = vmatprep.subr.bf16.mxu0 %v6704_v49  ;;  %v2669_v48 = vld [vmem:[#allocation4 + $0xbe0] sm:$0xff]  ;;  %v2594_v49 = vld [vmem:[#allocation4 + $0x988] sm:$0xff] }
 0x257   :  { %v6830_v54 = vcombine.high %v2665_v47, %v2669_v48  ;;  %v6759_v58 = vcombine.low %v2594_v49, %v2598_v50 }
 0x258   :  { %4733 = vmatpush1.bf16.msra.mxu1 %v6773_v55  ;;  %v6760_v55 = vcombine.high %v2594_v49, %v2598_v50 }
 0x259   :  { %4829 = vmatpush1.bf16.msra.mxu0 %v6703_v26  ;;  %4734 = vmatprep.subr.bf16.mxu1 %v6782_v56  ;;  %v2602_v26 = vld [vmem:[#allocation4 + $0x9c8] sm:$0xff] }
 0x25a   :  { %4839 = vmatprep.subr.bf16.mxu0 %v6712_v18  ;;  %v2606_v56 = vld [vmem:[#allocation4 + $0x9e8] sm:$0xff]  ;;  %v6829_v18 = vcombine.low %v2665_v47, %v2669_v48  ;;  %v406_v47 = vsub.s32 5, %v7909_v42 }
 0x25b   :  { %v6768_v59 = vcombine.high %v2602_v26, %v2606_v56 }
 0x25c   :  { %4831 = vmatmul.mubr.bf16.vlgmr.msra.gmra.mrb[8].mxu0 %v7999_v37  ;;  %4735 = vmatpush1.bf16.msra.mxu1 %v6781_v22  ;;  %v2614_v22 = vld [vmem:[#allocation4 + $0xa28] sm:$0xff]  ;;  %v407_v49 = vrot.slane %v7960_v40, %v406_v47 }
 0x25d   :  { %4840 = vmatpush1.bf16.msra.mxu0 %v6711_v62  ;;  %4736 = vmatprep.subr.bf16.mxu1 %v6790_v63  ;;  %v6767_v62 = vcombine.low %v2602_v26, %v2606_v56  ;;  %v6776_v63 = vcombine.high %v2610_v61, %v2614_v22  ;;  %v6775_v2 = vcombine.low %v2610_v61, %v2614_v22  ;;  %v2304_v61 = vld [vmem:[#allocation4 + $0x78] sm:$0xff] }
 0x25e   :  { %4841 = vmatprep.subr.bf16.mxu0 %v6720_v0  ;;  %v2618_v0 = vld [vmem:[#allocation4 + $0xa48] sm:$0xff] }
 0x25f   :  { %v6784_v3 = vcombine.high %v2618_v0, %v2622_v1 }
 0x260   :  { %4737 = vmatpush1.bf16.msra.mxu1 %v6789_v5  ;;  %v2630_v5 = vld [vmem:[#allocation4 + $0xaa8] sm:$0xff] }
 0x261   :  { %4842 = vmatpush1.bf16.msra.mxu0 %v6719_v8  ;;  %4738 = vmatprep.subr.bf16.mxu1 %v6798_v9  ;;  %v6783_v8 = vcombine.low %v2618_v0, %v2622_v1  ;;  %v6792_v9 = vcombine.high %v2626_v4, %v2630_v5  ;;  %v6791_v13 = vcombine.low %v2626_v4, %v2630_v5  ;;  %v2307_v0 = vld [vmem:[#allocation4 + $0x90] sm:$0xff]  ;;  %v2312_v4 = vld [vmem:[#allocation4 + $0xb8] sm:$0xff] }
 0x262   :  { %4843 = vmatprep.subr.bf16.mxu0 %v6728_v11  ;;  %v2634_v11 = vld [vmem:[#allocation4 + $0xac8] sm:$0xff] }
 0x263   :  { %v6800_v14 = vcombine.high %v2634_v11, %v2638_v12 }
 0x264   :  { %4739 = vmatpush1.bf16.msra.mxu1 %v6797_v17  ;;  %v2646_v17 = vld [vmem:[#allocation4 + $0xb28] sm:$0xff] }
 0x265   :  { %4844 = vmatpush1.bf16.msra.mxu0 %v6727_v20  ;;  %4740 = vmatprep.subr.bf16.mxu1 %v6806_v21  ;;  %v6799_v20 = vcombine.low %v2634_v11, %v2638_v12  ;;  %v6808_v21 = vcombine.high %v2642_v15, %v2646_v17  ;;  %v6807_v28 = vcombine.low %v2642_v15, %v2646_v17  ;;  %v2315_v12 = vld [vmem:[#allocation4 + $0xd0] sm:$0xff]  ;;  %v2320_v15 = vld [vmem:[#allocation4 + $0xf8] sm:$0xff] }
 0x266   :  { %4845 = vmatprep.subr.bf16.mxu0 %v6736_v25  ;;  %v2650_v25 = vld [vmem:[#allocation4 + $0xb48] sm:$0xff] }
 0x267   :  { %v6816_v30 = vcombine.high %v2650_v25, %v2654_v27 }
 0x268   :  { %4741 = vmatpush1.bf16.msra.mxu1 %v6805_v32  ;;  %v2662_v32 = vld [vmem:[#allocation4 + $0xba8] sm:$0xff] }
 0x269   :  { %4846 = vmatpush1.bf16.msra.mxu0 %v6735_v33  ;;  %4742 = vmatprep.subr.bf16.mxu1 %v6814_v52  ;;  %v6815_v33 = vcombine.low %v2650_v25, %v2654_v27  ;;  %v6824_v52 = vcombine.high %v2658_v31, %v2662_v32  ;;  %v6823_v29 = vcombine.low %v2658_v31, %v2662_v32  ;;  %v2324_v25 = vld [vmem:[#allocation4 + $0x118] sm:$0xff]  ;;  %v2331_v32 = vld [vmem:[#allocation4 + $0x150] sm:$0xff] }
 0x26a   :  { %4847 = vmatprep.subr.bf16.mxu0 %v6744_v23  ;;  %v2666_v23 = vld [vmem:[#allocation4 + $0xbc8] sm:$0xff] }
 0x26b   :  { %v6832_v34 = vcombine.high %v2666_v23, %v2670_v24 }
 0x26c   :  { %4743 = vmatpush1.bf16.msra.mxu1 %v6813_v39  ;;  %v2296_v39 = vld [vmem:[#allocation4 + $0x38] sm:$0xff] }
 0x26d   :  { %4848 = vmatpush1.bf16.msra.mxu0 %v6743_v44  ;;  %4744 = vmatprep.subr.bf16.mxu1 %v6822_v45  ;;  %v6831_v44 = vcombine.low %v2666_v23, %v2670_v24  ;;  %v6460_v45 = vcombine.high %v2292_v38, %v2296_v39  ;;  %v2336_v23 = vld [vmem:[#allocation4 + $0x178] sm:$0xff] }
 0x26e   :  { %4849 = vmatprep.subr.bf16.mxu0 %v6752_v60  ;;  %v402_v60 = vsub.s32 4, %v7909_v42 }
 0x270   :  { %4745 = vmatpush1.bf16.msra.mxu1 %v6821_v51  ;;  %v403_v48 = vrot.slane %v7960_v40, %v402_v60 }
 0x271   :  { %4850 = vmatpush1.bf16.msra.mxu0 %v6751_v53  ;;  %4746 = vmatprep.subr.bf16.mxu1 %v6830_v54 }
 0x272   :  { %4851 = vmatprep.subr.bf16.mxu0 %v6760_v55 }
 0x274   :  { %4747 = vmatpush1.bf16.msra.mxu1 %v6829_v18 }
 0x275   :  { %4852 = vmatpush1.bf16.msra.mxu0 %v6759_v58  ;;  %4880 = vmatprep.subr.bf16.mxu1 %v6458_v16  ;;  %v2299_v58 = vld [vmem:[#allocation4 + $0x50] sm:$0xff] }
 0x276   :  { %4853 = vmatprep.subr.bf16.mxu0 %v6768_v59  ;;  %v2303_v16 = vld [vmem:[#allocation4 + $0x70] sm:$0xff]  ;;  %v2300_v59 = vld [vmem:[#allocation4 + $0x58] sm:$0xff] }
 0x277   :  { %v6466_v40 = vcombine.high %v2299_v58, %v2303_v16  ;;  %v6468_v1 = vcombine.high %v2300_v59, %v2304_v61  ;;  %v6465_v5 = vcombine.low %v2299_v58, %v2303_v16 }
 0x279   :  { %4854 = vmatpush1.bf16.msra.mxu0 %v6767_v62  ;;  %v6459_v62 = vcombine.low %v2292_v38, %v2296_v39  ;;  %v2339_v39 = vld [vmem:[#allocation4 + $0x190] sm:$0xff] }
 0x27a   :  { %4855 = vmatprep.subr.bf16.mxu0 %v6776_v63 }
 0x27d   :  { %4856 = vmatpush1.bf16.msra.mxu0 %v6775_v2  ;;  %v2311_v2 = vld [vmem:[#allocation4 + $0xb0] sm:$0xff] }
 0x27e   :  { %4857 = vmatprep.subr.bf16.mxu0 %v6784_v3  ;;  %v2308_v3 = vld [vmem:[#allocation4 + $0x98] sm:$0xff]  ;;  %v6473_v17 = vcombine.low %v2307_v0, %v2311_v2 }
 0x27f   :  { %v6476_v11 = vcombine.high %v2308_v3, %v2312_v4  ;;  %v6475_v35 = vcombine.low %v2308_v3, %v2312_v4 }
 0x281   :  { %4858 = vmatpush1.bf16.msra.mxu0 %v6783_v8  ;;  %v6467_v8 = vcombine.low %v2300_v59, %v2304_v61  ;;  %v2355_v61 = vld [vmem:[#allocation4 + $0x210] sm:$0xff] }
 0x282   :  { %4859 = vmatprep.subr.bf16.mxu0 %v6792_v9  ;;  %v6474_v9 = vcombine.high %v2307_v0, %v2311_v2  ;;  %v2356_v0 = vld [vmem:[#allocation4 + $0x218] sm:$0xff] }
 0x285   :  { %4860 = vmatpush1.bf16.msra.mxu0 %v6791_v13  ;;  %v2319_v13 = vld [vmem:[#allocation4 + $0xf0] sm:$0xff] }
 0x286   :  { %4861 = vmatprep.subr.bf16.mxu0 %v6800_v14  ;;  %v2316_v14 = vld [vmem:[#allocation4 + $0xd8] sm:$0xff]  ;;  %v6482_v36 = vcombine.high %v2315_v12, %v2319_v13  ;;  %v6481_v27 = vcombine.low %v2315_v12, %v2319_v13 }
 0x289   :  { %4862 = vmatpush1.bf16.msra.mxu0 %v6799_v20  ;;  %v2323_v20 = vld [vmem:[#allocation4 + $0x110] sm:$0xff] }
 0x28a   :  { %4863 = vmatprep.subr.bf16.mxu0 %v6808_v21  ;;  %v2327_v21 = vld [vmem:[#allocation4 + $0x130] sm:$0xff] }
 0x28b   :  { %v6489_v24 = vcombine.low %v2323_v20, %v2327_v21 }
 0x28d   :  { %4864 = vmatpush1.bf16.msra.mxu0 %v6807_v28  ;;  %v6483_v28 = vcombine.low %v2316_v14, %v2320_v15 }
 0x28e   :  { %4865 = vmatprep.subr.bf16.mxu0 %v6816_v30  ;;  %v6490_v30 = vcombine.high %v2323_v20, %v2327_v21 }
 0x291   :  { %4866 = vmatpush1.bf16.msra.mxu0 %v6815_v33  ;;  %v2335_v33 = vld [vmem:[#allocation4 + $0x170] sm:$0xff] }
 0x292   :  { %4867 = vmatprep.subr.bf16.mxu0 %v6824_v52  ;;  %v2332_v52 = vld [vmem:[#allocation4 + $0x158] sm:$0xff] }
 0x293   :  { %v6500_v38 = vcombine.high %v2332_v52, %v2336_v23 }
 0x295   :  { %4868 = vmatpush1.bf16.msra.mxu0 %v6823_v29 }
 0x296   :  { %4869 = vmatprep.subr.bf16.mxu0 %v6832_v34  ;;  %v6498_v34 = vcombine.high %v2331_v32, %v2335_v33 }
 0x299   :  { %4870 = vmatpush1.bf16.msra.mxu0 %v6831_v44  ;;  %v2343_v44 = vld [vmem:[#allocation4 + $0x1b0] sm:$0xff] }
 0x29a   :  { %5003 = vmatprep.subr.bf16.mxu0 %v6460_v45  ;;  %v2340_v45 = vld [vmem:[#allocation4 + $0x198] sm:$0xff] }
 0x2ae   :  { %v2270_v50 = vpop.f32.mrb[4].mxu0 }
 0x2af   :  { %v6974_v51 = vadd.f32 %v2270_v50, %v403_v48  ;;  %v2272_v53 = vpop.f32.mrb[5].mxu0  ;;  %v2344_v48 = vld [vmem:[#allocation4 + $0x1b8] sm:$0xff]  ;;  %v6499_v50 = vcombine.low %v2332_v52, %v2336_v23 }
 0x2b0   :  { %v6975_v54 = vadd.f32 %v2272_v53, %v407_v49  ;;  %v2274_v55 = vpop.f32.mrb[6].mxu0  ;;  %v6497_v49 = vcombine.low %v2331_v32, %v2335_v33  ;;  %v6508_v53 = vcombine.high %v2340_v45, %v2344_v48  ;;  %v6507_v58 = vcombine.low %v2340_v45, %v2344_v48 }
 0x2b1   :  { %v2281_v26 = vmax.f32 %v6974_v51, 0.0  ;;  %v2275_v56 = vpop.f32.mrb[7].mxu0  ;;  %v6506_v51 = vcombine.high %v2339_v39, %v2343_v44  ;;  %v2351_v55 = vld [vmem:[#allocation4 + $0x1f0] sm:$0xff] }
 0x2b2   :  { %v2282_v18 = vmax.f32 %v6975_v54, 0.0  ;;  %v2347_v54 = vld [vmem:[#allocation4 + $0x1d0] sm:$0xff]  ;;  %v2352_v56 = vld [vmem:[#allocation4 + $0x1f8] sm:$0xff] }
 0x2b3   :  { %v8017_v63 = vpack.c.bf16 %v2281_v26, %v2281_v26  ;;  %v2348_v26 = vld [vmem:[#allocation4 + $0x1d8] sm:$0xff]  ;;  %v6514_v16 = vcombine.high %v2347_v54, %v2351_v55 }
 0x2b4   :  { %v8015_v22 = vpack.c.bf16 %v2282_v18, %v2282_v18  ;;  %v6505_v18 = vcombine.low %v2339_v39, %v2343_v44  ;;  %v6516_v59 = vcombine.high %v2348_v26, %v2352_v56  ;;  %v6515_v2 = vcombine.low %v2348_v26, %v2352_v56 }
 0x2b6   :  { %4748 = vmatprep.mubr.bf16.mxu1 %v8015_v22  ;;  %4871 = vmatprep.mubr.bf16.mxu0 %v8015_v22 }
 0x2b7   :  { %4749 = vmatmul.mubr.bf16.vlgmr.msra.gmra.mrb[4].mxu1 %v8017_v63  ;;  %4872 = vmatmul.mubr.bf16.vlgmr.msra.gmra.mrb[8].mxu0 %v8017_v63 }
 0x2b8   :  { %4881 = vmatpush1.bf16.msra.mxu1 %v6457_v46  ;;  %5004 = vmatpush1.bf16.msra.mxu0 %v6459_v62  ;;  %v6484_v46 = vcombine.high %v2316_v14, %v2320_v15  ;;  %v2359_v62 = vld [vmem:[#allocation4 + $0x230] sm:$0xff] }
 0x2b9   :  { %4912 = vmatprep.mubr.bf16.mxu1 %v7975_v6  ;;  %5035 = vmatprep.mubr.bf16.mxu0 %v7975_v6  ;;  %v2328_v6 = vld [vmem:[#allocation4 + $0x138] sm:$0xff]  ;;  %v6522_v3 = vcombine.high %v2355_v61, %v2359_v62  ;;  %v6521_v12 = vcombine.low %v2355_v61, %v2359_v62 }
 0x2ba   :  { %4882 = vmatprep.subr.bf16.mxu1 %v6466_v40  ;;  %5005 = vmatprep.subr.bf16.mxu0 %v6468_v1  ;;  %v6492_v31 = vcombine.high %v2324_v25, %v2328_v6  ;;  %v6491_v29 = vcombine.low %v2324_v25, %v2328_v6  ;;  %v2360_v40 = vld [vmem:[#allocation4 + $0x238] sm:$0xff]  ;;  %v6513_v1 = vcombine.low %v2347_v54, %v2351_v55 }
 0x2bb   :  { %v6524_v4 = vcombine.high %v2356_v0, %v2360_v40  ;;  %v6523_v13 = vcombine.low %v2356_v0, %v2360_v40 }
 0x2bc   :  { %4883 = vmatpush1.bf16.msra.mxu1 %v6465_v5  ;;  %5006 = vmatpush1.bf16.msra.mxu0 %v6467_v8  ;;  %v2363_v5 = vld [vmem:[#allocation4 + $0x250] sm:$0xff] }
 0x2bd   :  { %4884 = vmatprep.subr.bf16.mxu1 %v6474_v9  ;;  %5007 = vmatprep.subr.bf16.mxu0 %v6476_v11  ;;  %v2367_v8 = vld [vmem:[#allocation4 + $0x270] sm:$0xff]  ;;  %v2364_v9 = vld [vmem:[#allocation4 + $0x258] sm:$0xff] }
 0x2be   :  { %v2368_v11 = vld [vmem:[#allocation4 + $0x278] sm:$0xff]  ;;  %v6530_v14 = vcombine.high %v2363_v5, %v2367_v8  ;;  %v6529_v20 = vcombine.low %v2363_v5, %v2367_v8 }
 0x2bf   :  { %v6532_v15 = vcombine.high %v2364_v9, %v2368_v11  ;;  %v6531_v21 = vcombine.low %v2364_v9, %v2368_v11 }
 0x2c0   :  { %4885 = vmatpush1.bf16.msra.mxu1 %v6473_v17  ;;  %5008 = vmatpush1.bf16.msra.mxu0 %v6475_v35  ;;  %v2371_v17 = vld [vmem:[#allocation4 + $0x290] sm:$0xff] }
 0x2c1   :  { %4886 = vmatprep.subr.bf16.mxu1 %v6482_v36  ;;  %5009 = vmatprep.subr.bf16.mxu0 %v6484_v46  ;;  %v2375_v35 = vld [vmem:[#allocation4 + $0x2b0] sm:$0xff]  ;;  %v2372_v36 = vld [vmem:[#allocation4 + $0x298] sm:$0xff] }
 0x2c2   :  { %v2376_v46 = vld [vmem:[#allocation4 + $0x2b8] sm:$0xff]  ;;  %v6538_v25 = vcombine.high %v2371_v17, %v2375_v35  ;;  %v6537_v32 = vcombine.low %v2371_v17, %v2375_v35 }
 0x2c3   :  { %v6540_v6 = vcombine.high %v2372_v36, %v2376_v46  ;;  %v6539_v33 = vcombine.low %v2372_v36, %v2376_v46 }
 0x2c4   :  { %4887 = vmatpush1.bf16.msra.mxu1 %v6481_v27  ;;  %5010 = vmatpush1.bf16.msra.mxu0 %v6483_v28  ;;  %v2379_v27 = vld [vmem:[#allocation4 + $0x2d0] sm:$0xff] }
 0x2c5   :  { %4888 = vmatprep.subr.bf16.mxu1 %v6490_v30  ;;  %5011 = vmatprep.subr.bf16.mxu0 %v6492_v31  ;;  %v2383_v28 = vld [vmem:[#allocation4 + $0x2f0] sm:$0xff]  ;;  %v2380_v30 = vld [vmem:[#allocation4 + $0x2d8] sm:$0xff] }
 0x2c6   :  { %v2384_v31 = vld [vmem:[#allocation4 + $0x2f8] sm:$0xff]  ;;  %v6546_v52 = vcombine.high %v2379_v27, %v2383_v28  ;;  %v6545_v39 = vcombine.low %v2379_v27, %v2383_v28 }
 0x2c7   :  { %v6548_v23 = vcombine.high %v2380_v30, %v2384_v31  ;;  %v6547_v44 = vcombine.low %v2380_v30, %v2384_v31 }
 0x2c8   :  { %4889 = vmatpush1.bf16.msra.mxu1 %v6489_v24  ;;  %5012 = vmatpush1.bf16.msra.mxu0 %v6491_v29  ;;  %v2387_v24 = vld [vmem:[#allocation4 + $0x310] sm:$0xff] }
 0x2c9   :  { %4890 = vmatprep.subr.bf16.mxu1 %v6498_v34  ;;  %5013 = vmatprep.subr.bf16.mxu0 %v6500_v38  ;;  %v2391_v29 = vld [vmem:[#allocation4 + $0x330] sm:$0xff]  ;;  %v2388_v34 = vld [vmem:[#allocation4 + $0x318] sm:$0xff] }
 0x2ca   :  { %v2392_v38 = vld [vmem:[#allocation4 + $0x338] sm:$0xff]  ;;  %v6554_v45 = vcombine.high %v2387_v24, %v2391_v29  ;;  %v6553_v54 = vcombine.low %v2387_v24, %v2391_v29 }
 0x2cb   :  { %v6556_v48 = vcombine.high %v2388_v34, %v2392_v38  ;;  %v6555_v55 = vcombine.low %v2388_v34, %v2392_v38 }
 0x2cc   :  { %4891 = vmatpush1.bf16.msra.mxu1 %v6497_v49  ;;  %5014 = vmatpush1.bf16.msra.mxu0 %v6499_v50  ;;  %v2395_v49 = vld [vmem:[#allocation4 + $0x350] sm:$0xff] }
 0x2cd   :  { %4892 = vmatprep.subr.bf16.mxu1 %v6506_v51  ;;  %5015 = vmatprep.subr.bf16.mxu0 %v6508_v53  ;;  %v2399_v50 = vld [vmem:[#allocation4 + $0x370] sm:$0xff]  ;;  %v2396_v51 = vld [vmem:[#allocation4 + $0x358] sm:$0xff] }
 0x2ce   :  { %v2400_v53 = vld [vmem:[#allocation4 + $0x378] sm:$0xff]  ;;  %v6562_v26 = vcombine.high %v2395_v49, %v2399_v50  ;;  %v6561_v61 = vcombine.low %v2395_v49, %v2399_v50 }
 0x2cf   :  { %v6564_v56 = vcombine.high %v2396_v51, %v2400_v53  ;;  %v6563_v62 = vcombine.low %v2396_v51, %v2400_v53  ;;  %v2451_v53 = vld [vmem:[#allocation4 + $0x510] sm:$0xff] }
 0x2d0   :  { %4893 = vmatpush1.bf16.msra.mxu1 %v6505_v18  ;;  %5016 = vmatpush1.bf16.msra.mxu0 %v6507_v58  ;;  %v2403_v18 = vld [vmem:[#allocation4 + $0x390] sm:$0xff] }
 0x2d1   :  { %4894 = vmatprep.subr.bf16.mxu1 %v6514_v16  ;;  %5017 = vmatprep.subr.bf16.mxu0 %v6516_v59  ;;  %v2407_v58 = vld [vmem:[#allocation4 + $0x3b0] sm:$0xff]  ;;  %v2404_v16 = vld [vmem:[#allocation4 + $0x398] sm:$0xff] }
 0x2d2   :  { %v2408_v59 = vld [vmem:[#allocation4 + $0x3b8] sm:$0xff]  ;;  %v6570_v0 = vcombine.high %v2403_v18, %v2407_v58  ;;  %v6569_v5 = vcombine.low %v2403_v18, %v2407_v58 }
 0x2d3   :  { %v6572_v40 = vcombine.high %v2404_v16, %v2408_v59  ;;  %v6571_v8 = vcombine.low %v2404_v16, %v2408_v59  ;;  %v2459_v16 = vld [vmem:[#allocation4 + $0x550] sm:$0xff] }
 0x2d4   :  { %4895 = vmatpush1.bf16.msra.mxu1 %v6513_v1  ;;  %5018 = vmatpush1.bf16.msra.mxu0 %v6515_v2  ;;  %v2411_v1 = vld [vmem:[#allocation4 + $0x3d0] sm:$0xff] }
 0x2d5   :  { %4896 = vmatprep.subr.bf16.mxu1 %v6522_v3  ;;  %5019 = vmatprep.subr.bf16.mxu0 %v6524_v4  ;;  %v2415_v2 = vld [vmem:[#allocation4 + $0x3f0] sm:$0xff]  ;;  %v2412_v3 = vld [vmem:[#allocation4 + $0x3d8] sm:$0xff] }
 0x2d6   :  { %v2416_v4 = vld [vmem:[#allocation4 + $0x3f8] sm:$0xff]  ;;  %v6578_v9 = vcombine.high %v2411_v1, %v2415_v2  ;;  %v6577_v17 = vcombine.low %v2411_v1, %v2415_v2  ;;  %v2463_v59 = vld [vmem:[#allocation4 + $0x570] sm:$0xff] }
 0x2d7   :  { %v6580_v11 = vcombine.high %v2412_v3, %v2416_v4  ;;  %v6579_v35 = vcombine.low %v2412_v3, %v2416_v4  ;;  %v6626_v1 = vcombine.high %v2459_v16, %v2463_v59  ;;  %v2467_v3 = vld [vmem:[#allocation4 + $0x590] sm:$0xff] }
 0x2d8   :  { %4897 = vmatpush1.bf16.msra.mxu1 %v6521_v12  ;;  %5020 = vmatpush1.bf16.msra.mxu0 %v6523_v13  ;;  %v2419_v12 = vld [vmem:[#allocation4 + $0x410] sm:$0xff] }
 0x2d9   :  { %4898 = vmatprep.subr.bf16.mxu1 %v6530_v14  ;;  %5021 = vmatprep.subr.bf16.mxu0 %v6532_v15  ;;  %v2423_v13 = vld [vmem:[#allocation4 + $0x430] sm:$0xff]  ;;  %v2420_v14 = vld [vmem:[#allocation4 + $0x418] sm:$0xff] }
 0x2da   :  { %v2424_v15 = vld [vmem:[#allocation4 + $0x438] sm:$0xff]  ;;  %v6586_v36 = vcombine.high %v2419_v12, %v2423_v13  ;;  %v6585_v27 = vcombine.low %v2419_v12, %v2423_v13  ;;  %v2471_v4 = vld [vmem:[#allocation4 + $0x5b0] sm:$0xff] }
 0x2db   :  { %v6588_v46 = vcombine.high %v2420_v14, %v2424_v15  ;;  %v6587_v28 = vcombine.low %v2420_v14, %v2424_v15  ;;  %v6634_v12 = vcombine.high %v2467_v3, %v2471_v4  ;;  %v2475_v14 = vld [vmem:[#allocation4 + $0x5d0] sm:$0xff] }
 0x2dc   :  { %4899 = vmatpush1.bf16.msra.mxu1 %v6529_v20  ;;  %5022 = vmatpush1.bf16.msra.mxu0 %v6531_v21  ;;  %v2427_v20 = vld [vmem:[#allocation4 + $0x450] sm:$0xff] }
 0x2dd   :  { %4900 = vmatprep.subr.bf16.mxu1 %v6538_v25  ;;  %5023 = vmatprep.subr.bf16.mxu0 %v6540_v6  ;;  %v2431_v21 = vld [vmem:[#allocation4 + $0x470] sm:$0xff]  ;;  %v2428_v25 = vld [vmem:[#allocation4 + $0x458] sm:$0xff] }
 0x2de   :  { %v2432_v6 = vld [vmem:[#allocation4 + $0x478] sm:$0xff]  ;;  %v6594_v30 = vcombine.high %v2427_v20, %v2431_v21  ;;  %v6593_v24 = vcombine.low %v2427_v20, %v2431_v21  ;;  %v2479_v15 = vld [vmem:[#allocation4 + $0x5f0] sm:$0xff] }
 0x2df   :  { %v6596_v31 = vcombine.high %v2428_v25, %v2432_v6  ;;  %v6595_v29 = vcombine.low %v2428_v25, %v2432_v6  ;;  %v6642_v20 = vcombine.high %v2475_v14, %v2479_v15  ;;  %v2483_v25 = vld [vmem:[#allocation4 + $0x610] sm:$0xff] }
 0x2e0   :  { %4901 = vmatpush1.bf16.msra.mxu1 %v6537_v32  ;;  %5024 = vmatpush1.bf16.msra.mxu0 %v6539_v33  ;;  %v2435_v32 = vld [vmem:[#allocation4 + $0x490] sm:$0xff] }
 0x2e1   :  { %4902 = vmatprep.subr.bf16.mxu1 %v6546_v52  ;;  %5025 = vmatprep.subr.bf16.mxu0 %v6548_v23  ;;  %v2439_v33 = vld [vmem:[#allocation4 + $0x4b0] sm:$0xff]  ;;  %v2436_v52 = vld [vmem:[#allocation4 + $0x498] sm:$0xff] }
 0x2e2   :  { %v2440_v23 = vld [vmem:[#allocation4 + $0x4b8] sm:$0xff]  ;;  %v6602_v34 = vcombine.high %v2435_v32, %v2439_v33  ;;  %v2487_v6 = vld [vmem:[#allocation4 + $0x630] sm:$0xff] }
 0x2e3   :  { %v6604_v38 = vcombine.high %v2436_v52, %v2440_v23  ;;  %v6603_v49 = vcombine.low %v2436_v52, %v2440_v23  ;;  %v2491_v52 = vld [vmem:[#allocation4 + $0x650] sm:$0xff] }
 0x2e4   :  { %4903 = vmatpush1.bf16.msra.mxu1 %v6545_v39  ;;  %5026 = vmatpush1.bf16.msra.mxu0 %v6547_v44  ;;  %v2443_v39 = vld [vmem:[#allocation4 + $0x4d0] sm:$0xff] }
 0x2e5   :  { %4904 = vmatprep.subr.bf16.mxu1 %v6554_v45  ;;  %5027 = vmatprep.subr.bf16.mxu0 %v6556_v48  ;;  %v2447_v44 = vld [vmem:[#allocation4 + $0x4f0] sm:$0xff]  ;;  %v2444_v45 = vld [vmem:[#allocation4 + $0x4d8] sm:$0xff] }
 0x2e6   :  { %v2448_v48 = vld [vmem:[#allocation4 + $0x4f8] sm:$0xff]  ;;  %v6610_v50 = vcombine.high %v2443_v39, %v2447_v44  ;;  %v2495_v23 = vld [vmem:[#allocation4 + $0x670] sm:$0xff] }
 0x2e7   :  { %v6612_v51 = vcombine.high %v2444_v45, %v2448_v48 }
 0x2e8   :  { %4905 = vmatpush1.bf16.msra.mxu1 %v6553_v54  ;;  %5028 = vmatpush1.bf16.msra.mxu0 %v6555_v55  ;;  %v2455_v54 = vld [vmem:[#allocation4 + $0x530] sm:$0xff]  ;;  %v2456_v55 = vld [vmem:[#allocation4 + $0x538] sm:$0xff] }
 0x2e9   :  { %4906 = vmatprep.subr.bf16.mxu1 %v6562_v26  ;;  %5029 = vmatprep.subr.bf16.mxu0 %v6564_v56  ;;  %v6609_v26 = vcombine.low %v2443_v39, %v2447_v44  ;;  %v6611_v56 = vcombine.low %v2444_v45, %v2448_v48  ;;  %v6618_v18 = vcombine.high %v2451_v53, %v2455_v54  ;;  %v2499_v45 = vld [vmem:[#allocation4 + $0x690] sm:$0xff] }
 0x2ea   :  { %v6658_v39 = vcombine.high %v2491_v52, %v2495_v23  ;;  %v2503_v48 = vld [vmem:[#allocation4 + $0x6b0] sm:$0xff] }
 0x2ec   :  { %4907 = vmatpush1.bf16.msra.mxu1 %v6561_v61  ;;  %5030 = vmatpush1.bf16.msra.mxu0 %v6563_v62  ;;  %v2460_v61 = vld [vmem:[#allocation4 + $0x558] sm:$0xff] }
 0x2ed   :  { %4908 = vmatprep.subr.bf16.mxu1 %v6570_v0  ;;  %5031 = vmatprep.subr.bf16.mxu0 %v6572_v40  ;;  %v2464_v62 = vld [vmem:[#allocation4 + $0x578] sm:$0xff]  ;;  %v6617_v0 = vcombine.low %v2451_v53, %v2455_v54  ;;  %v6666_v53 = vcombine.high %v2499_v45, %v2503_v48 }
 0x2ee   :  { %v6628_v2 = vcombine.high %v2460_v61, %v2464_v62 }
 0x2f0   :  { %4909 = vmatpush1.bf16.msra.mxu1 %v6569_v5  ;;  %5032 = vmatpush1.bf16.msra.mxu0 %v6571_v8  ;;  %v2468_v5 = vld [vmem:[#allocation4 + $0x598] sm:$0xff] }
 0x2f1   :  { %4910 = vmatprep.subr.bf16.mxu1 %v6578_v9  ;;  %5033 = vmatprep.subr.bf16.mxu0 %v6580_v11  ;;  %v2472_v8 = vld [vmem:[#allocation4 + $0x5b8] sm:$0xff]  ;;  %v6625_v9 = vcombine.low %v2459_v16, %v2463_v59  ;;  %v6627_v11 = vcombine.low %v2460_v61, %v2464_v62  ;;  %v2515_v61 = vld [vmem:[#allocation4 + $0x710] sm:$0xff] }
 0x2f2   :  { %v6636_v13 = vcombine.high %v2468_v5, %v2472_v8  ;;  %v2519_v62 = vld [vmem:[#allocation4 + $0x730] sm:$0xff] }
 0x2f4   :  { %4911 = vmatpush1.bf16.msra.mxu1 %v6577_v17  ;;  %5034 = vmatpush1.bf16.msra.mxu0 %v6579_v35  ;;  %v2476_v17 = vld [vmem:[#allocation4 + $0x5d8] sm:$0xff] }
 0x2f5   :  { %4921 = vmatprep.subr.bf16.mxu1 %v6586_v36  ;;  %5044 = vmatprep.subr.bf16.mxu0 %v6588_v46  ;;  %v2480_v35 = vld [vmem:[#allocation4 + $0x5f8] sm:$0xff]  ;;  %v6633_v36 = vcombine.low %v2467_v3, %v2471_v4  ;;  %v6635_v46 = vcombine.low %v2468_v5, %v2472_v8  ;;  %v6682_v3 = vcombine.high %v2515_v61, %v2519_v62  ;;  %v2523_v5 = vld [vmem:[#allocation4 + $0x750] sm:$0xff] }
 0x2f6   :  { %v6644_v21 = vcombine.high %v2476_v17, %v2480_v35  ;;  %v2527_v8 = vld [vmem:[#allocation4 + $0x770] sm:$0xff] }
 0x2f7   :  { %4913 = vmatmul.mubr.bf16.vlgmr.msra.gmra.mrb[8].mxu1 %v7977_v7  ;;  %5036 = vmatmul.mubr.bf16.vlgmr.msra.gmra.mrb[12].mxu0 %v7977_v7  ;;  %v6601_v7 = vcombine.low %v2435_v32, %v2439_v33  ;;  %v6650_v32 = vcombine.high %v2483_v25, %v2487_v6 }
 0x2f8   :  { %4922 = vmatpush1.bf16.msra.mxu1 %v6585_v27  ;;  %4953 = vmatprep.mubr.bf16.mxu1 %v7979_v10  ;;  %v2484_v27 = vld [vmem:[#allocation4 + $0x618] sm:$0xff] }
 0x2f9   :  { %5045 = vmatpush1.bf16.msra.mxu0 %v6587_v28  ;;  %5076 = vmatprep.mubr.bf16.mxu0 %v7979_v10  ;;  %v2452_v10 = vld [vmem:[#allocation4 + $0x518] sm:$0xff] }
 0x2fa   :  { %4923 = vmatprep.subr.bf16.mxu1 %v6594_v30  ;;  %5046 = vmatprep.subr.bf16.mxu0 %v6596_v31  ;;  %v6620_v58 = vcombine.high %v2452_v10, %v2456_v55  ;;  %v6619_v40 = vcombine.low %v2452_v10, %v2456_v55  ;;  %v2488_v28 = vld [vmem:[#allocation4 + $0x638] sm:$0xff]  ;;  %v6641_v30 = vcombine.low %v2475_v14, %v2479_v15  ;;  %v2507_v10 = vld [vmem:[#allocation4 + $0x6d0] sm:$0xff] }
 0x2fb   :  { %v6643_v31 = vcombine.low %v2476_v17, %v2480_v35  ;;  %v6652_v33 = vcombine.high %v2484_v27, %v2488_v28  ;;  %v2511_v55 = vld [vmem:[#allocation4 + $0x6f0] sm:$0xff]  ;;  %v6690_v14 = vcombine.high %v2523_v5, %v2527_v8 }
 0x2fc   :  { %4924 = vmatpush1.bf16.msra.mxu1 %v6593_v24  ;;  %v2492_v24 = vld [vmem:[#allocation4 + $0x658] sm:$0xff]  ;;  %v6674_v16 = vcombine.high %v2507_v10, %v2511_v55  ;;  %v2531_v17 = vld [vmem:[#allocation4 + $0x790] sm:$0xff] }
 0x2fd   :  { %5047 = vmatpush1.bf16.msra.mxu0 %v6595_v29  ;;  %4925 = vmatprep.subr.bf16.mxu1 %v6602_v34  ;;  %v2496_v29 = vld [vmem:[#allocation4 + $0x678] sm:$0xff]  ;;  %v6649_v34 = vcombine.low %v2483_v25, %v2487_v6  ;;  %v2535_v35 = vld [vmem:[#allocation4 + $0x7b0] sm:$0xff] }
 0x2fe   :  { %5048 = vmatprep.subr.bf16.mxu0 %v6604_v38  ;;  %v6651_v38 = vcombine.low %v2484_v27, %v2488_v28  ;;  %v6660_v44 = vcombine.high %v2492_v24, %v2496_v29  ;;  %v6698_v25 = vcombine.high %v2531_v17, %v2535_v35  ;;  %v2539_v27 = vld [vmem:[#allocation4 + $0x7d0] sm:$0xff] }
 0x2ff   :  { %v2543_v28 = vld [vmem:[#allocation4 + $0x7f0] sm:$0xff] }
 0x300   :  { %4926 = vmatpush1.bf16.msra.mxu1 %v6601_v7  ;;  %v2500_v7 = vld [vmem:[#allocation4 + $0x698] sm:$0xff] }
 0x301   :  { %5049 = vmatpush1.bf16.msra.mxu0 %v6603_v49  ;;  %4927 = vmatprep.subr.bf16.mxu1 %v6610_v50  ;;  %v2504_v49 = vld [vmem:[#allocation4 + $0x6b8] sm:$0xff]  ;;  %v6657_v50 = vcombine.low %v2491_v52, %v2495_v23  ;;  %v6706_v52 = vcombine.high %v2539_v27, %v2543_v28 }
 0x302   :  { %5050 = vmatprep.subr.bf16.mxu0 %v6612_v51  ;;  %v6659_v51 = vcombine.low %v2492_v24, %v2496_v29  ;;  %v6668_v54 = vcombine.high %v2500_v7, %v2504_v49  ;;  %v2547_v24 = vld [vmem:[#allocation4 + $0x810] sm:$0xff] }
 0x303   :  { %v2551_v29 = vld [vmem:[#allocation4 + $0x830] sm:$0xff] }
 0x304   :  { %4928 = vmatpush1.bf16.msra.mxu1 %v6609_v26  ;;  %v2508_v26 = vld [vmem:[#allocation4 + $0x6d8] sm:$0xff] }
 0x305   :  { %5051 = vmatpush1.bf16.msra.mxu0 %v6611_v56  ;;  %4929 = vmatprep.subr.bf16.mxu1 %v6618_v18  ;;  %v2512_v56 = vld [vmem:[#allocation4 + $0x6f8] sm:$0xff]  ;;  %v6665_v18 = vcombine.low %v2499_v45, %v2503_v48  ;;  %v6714_v45 = vcombine.high %v2547_v24, %v2551_v29 }
 0x306   :  { %5052 = vmatprep.subr.bf16.mxu0 %v6620_v58  ;;  %v6667_v58 = vcombine.low %v2500_v7, %v2504_v49  ;;  %v6676_v59 = vcombine.high %v2508_v26, %v2512_v56  ;;  %v2555_v7 = vld [vmem:[#allocation4 + $0x850] sm:$0xff] }
 0x307   :  { %v2559_v49 = vld [vmem:[#allocation4 + $0x870] sm:$0xff] }
 0x308   :  { %4930 = vmatpush1.bf16.msra.mxu1 %v6617_v0  ;;  %v2516_v0 = vld [vmem:[#allocation4 + $0x718] sm:$0xff] }
 0x309   :  { %5053 = vmatpush1.bf16.msra.mxu0 %v6619_v40  ;;  %4931 = vmatprep.subr.bf16.mxu1 %v6626_v1  ;;  %v2520_v40 = vld [vmem:[#allocation4 + $0x738] sm:$0xff]  ;;  %v6673_v1 = vcombine.low %v2507_v10, %v2511_v55  ;;  %v6722_v10 = vcombine.high %v2555_v7, %v2559_v49  ;;  %v2563_v55 = vld [vmem:[#allocation4 + $0x890] sm:$0xff] }
 0x30a   :  { %5054 = vmatprep.subr.bf16.mxu0 %v6628_v2  ;;  %v6675_v2 = vcombine.low %v2508_v26, %v2512_v56  ;;  %v6684_v4 = vcombine.high %v2516_v0, %v2520_v40  ;;  %v2567_v26 = vld [vmem:[#allocation4 + $0x8b0] sm:$0xff] }
 0x30c   :  { %4932 = vmatpush1.bf16.msra.mxu1 %v6625_v9  ;;  %v2524_v9 = vld [vmem:[#allocation4 + $0x758] sm:$0xff] }
 0x30d   :  { %5055 = vmatpush1.bf16.msra.mxu0 %v6627_v11  ;;  %4933 = vmatprep.subr.bf16.mxu1 %v6634_v12  ;;  %v2528_v11 = vld [vmem:[#allocation4 + $0x778] sm:$0xff]  ;;  %v6681_v12 = vcombine.low %v2515_v61, %v2519_v62  ;;  %v6730_v61 = vcombine.high %v2563_v55, %v2567_v26 }
 0x30e   :  { %5056 = vmatprep.subr.bf16.mxu0 %v6636_v13  ;;  %v6683_v13 = vcombine.low %v2516_v0, %v2520_v40  ;;  %v6692_v15 = vcombine.high %v2524_v9, %v2528_v11  ;;  %v2571_v0 = vld [vmem:[#allocation4 + $0x8d0] sm:$0xff] }
 0x30f   :  { %v2575_v40 = vld [vmem:[#allocation4 + $0x8f0] sm:$0xff] }
 0x310   :  { %4934 = vmatpush1.bf16.msra.mxu1 %v6633_v36  ;;  %v2532_v36 = vld [vmem:[#allocation4 + $0x798] sm:$0xff] }
 0x311   :  { %5057 = vmatpush1.bf16.msra.mxu0 %v6635_v46  ;;  %4935 = vmatprep.subr.bf16.mxu1 %v6642_v20  ;;  %v2536_v46 = vld [vmem:[#allocation4 + $0x7b8] sm:$0xff]  ;;  %v6689_v20 = vcombine.low %v2523_v5, %v2527_v8  ;;  %v2579_v8 = vld [vmem:[#allocation4 + $0x910] sm:$0xff] }
 0x312   :  { %5058 = vmatprep.subr.bf16.mxu0 %v6644_v21  ;;  %v6691_v21 = vcombine.low %v2524_v9, %v2528_v11  ;;  %v6700_v6 = vcombine.high %v2532_v36, %v2536_v46  ;;  %v2583_v9 = vld [vmem:[#allocation4 + $0x930] sm:$0xff]  ;;  %v2580_v11 = vld [vmem:[#allocation4 + $0x918] sm:$0xff] }
 0x314   :  { %4936 = vmatpush1.bf16.msra.mxu1 %v6641_v30  ;;  %v2540_v30 = vld [vmem:[#allocation4 + $0x7d8] sm:$0xff] }
 0x315   :  { %5059 = vmatpush1.bf16.msra.mxu0 %v6643_v31  ;;  %4937 = vmatprep.subr.bf16.mxu1 %v6650_v32  ;;  %v2544_v31 = vld [vmem:[#allocation4 + $0x7f8] sm:$0xff]  ;;  %v6697_v32 = vcombine.low %v2531_v17, %v2535_v35  ;;  %v2587_v17 = vld [vmem:[#allocation4 + $0x950] sm:$0xff] }
 0x316   :  { %5060 = vmatprep.subr.bf16.mxu0 %v6652_v33  ;;  %v6699_v33 = vcombine.low %v2532_v36, %v2536_v46  ;;  %v6708_v23 = vcombine.high %v2540_v30, %v2544_v31  ;;  %v2591_v35 = vld [vmem:[#allocation4 + $0x970] sm:$0xff]  ;;  %v2588_v36 = vld [vmem:[#allocation4 + $0x958] sm:$0xff] }
 0x317   :  { %v2592_v46 = vld [vmem:[#allocation4 + $0x978] sm:$0xff] }
 0x318   :  { %4938 = vmatpush1.bf16.msra.mxu1 %v6649_v34  ;;  %v2548_v34 = vld [vmem:[#allocation4 + $0x818] sm:$0xff] }
 0x319   :  { %5061 = vmatpush1.bf16.msra.mxu0 %v6651_v38  ;;  %4939 = vmatprep.subr.bf16.mxu1 %v6658_v39  ;;  %v2552_v38 = vld [vmem:[#allocation4 + $0x838] sm:$0xff]  ;;  %v6705_v39 = vcombine.low %v2539_v27, %v2543_v28  ;;  %v2595_v27 = vld [vmem:[#allocation4 + $0x990] sm:$0xff] }
 0x31a   :  { %5062 = vmatprep.subr.bf16.mxu0 %v6660_v44  ;;  %v6707_v44 = vcombine.low %v2540_v30, %v2544_v31  ;;  %v6716_v48 = vcombine.high %v2548_v34, %v2552_v38  ;;  %v2599_v28 = vld [vmem:[#allocation4 + $0x9b0] sm:$0xff]  ;;  %v2596_v30 = vld [vmem:[#allocation4 + $0x998] sm:$0xff] }
 0x31b   :  { %v2600_v31 = vld [vmem:[#allocation4 + $0x9b8] sm:$0xff] }
 0x31c   :  { %4940 = vmatpush1.bf16.msra.mxu1 %v6657_v50  ;;  %v6713_v50 = vcombine.low %v2547_v24, %v2551_v29  ;;  %v2603_v24 = vld [vmem:[#allocation4 + $0x9d0] sm:$0xff] }
 0x31d   :  { %5063 = vmatpush1.bf16.msra.mxu0 %v6659_v51  ;;  %4941 = vmatprep.subr.bf16.mxu1 %v6666_v53  ;;  %v2556_v51 = vld [vmem:[#allocation4 + $0x858] sm:$0xff]  ;;  %v2607_v29 = vld [vmem:[#allocation4 + $0x9f0] sm:$0xff] }
 0x31e   :  { %5064 = vmatprep.subr.bf16.mxu0 %v6668_v54  ;;  %v2560_v53 = vld [vmem:[#allocation4 + $0x878] sm:$0xff]  ;;  %v6715_v54 = vcombine.low %v2548_v34, %v2552_v38 }
 0x31f   :  { %v6724_v56 = vcombine.high %v2556_v51, %v2560_v53  ;;  %v2604_v34 = vld [vmem:[#allocation4 + $0x9d8] sm:$0xff] }
 0x320   :  { %4942 = vmatpush1.bf16.msra.mxu1 %v6665_v18  ;;  %v2564_v18 = vld [vmem:[#allocation4 + $0x898] sm:$0xff] }
 0x321   :  { %5065 = vmatpush1.bf16.msra.mxu0 %v6667_v58  ;;  %4943 = vmatprep.subr.bf16.mxu1 %v6674_v16  ;;  %v2568_v58 = vld [vmem:[#allocation4 + $0x8b8] sm:$0xff]  ;;  %v6721_v16 = vcombine.low %v2555_v7, %v2559_v49  ;;  %v2611_v7 = vld [vmem:[#allocation4 + $0xa10] sm:$0xff] }
 0x322   :  { %5066 = vmatprep.subr.bf16.mxu0 %v6676_v59  ;;  %v6723_v59 = vcombine.low %v2556_v51, %v2560_v53  ;;  %v6732_v62 = vcombine.high %v2564_v18, %v2568_v58  ;;  %v2608_v38 = vld [vmem:[#allocation4 + $0x9f8] sm:$0xff]  ;;  %v2615_v49 = vld [vmem:[#allocation4 + $0xa30] sm:$0xff]  ;;  %v6769_v53 = vcombine.low %v2603_v24, %v2607_v29 }
 0x323   :  { %v2616_v51 = vld [vmem:[#allocation4 + $0xa38] sm:$0xff] }
 0x324   :  { %4944 = vmatpush1.bf16.msra.mxu1 %v6673_v1  ;;  %v2572_v1 = vld [vmem:[#allocation4 + $0x8d8] sm:$0xff] }
 0x325   :  { %5067 = vmatpush1.bf16.msra.mxu0 %v6675_v2  ;;  %4945 = vmatprep.subr.bf16.mxu1 %v6682_v3  ;;  %v2576_v2 = vld [vmem:[#allocation4 + $0x8f8] sm:$0xff]  ;;  %v6729_v3 = vcombine.low %v2563_v55, %v2567_v26  ;;  %v2619_v26 = vld [vmem:[#allocation4 + $0xa50] sm:$0xff] }
 0x326   :  { %5068 = vmatprep.subr.bf16.mxu0 %v6684_v4  ;;  %v6738_v4 = vcombine.high %v2571_v0, %v2575_v40  ;;  %v6740_v5 = vcombine.high %v2572_v1, %v2576_v2 }
 0x328   :  { %4946 = vmatpush1.bf16.msra.mxu1 %v6681_v12  ;;  %v2584_v12 = vld [vmem:[#allocation4 + $0x938] sm:$0xff] }
 0x329   :  { %5069 = vmatpush1.bf16.msra.mxu0 %v6683_v13  ;;  %4947 = vmatprep.subr.bf16.mxu1 %v6690_v14  ;;  %v6739_v13 = vcombine.low %v2572_v1, %v2576_v2  ;;  %v6746_v14 = vcombine.high %v2579_v8, %v2583_v9  ;;  %v2628_v1 = vld [vmem:[#allocation4 + $0xa98] sm:$0xff] }
 0x32a   :  { %5070 = vmatprep.subr.bf16.mxu0 %v6692_v15  ;;  %v6748_v15 = vcombine.high %v2580_v11, %v2584_v12  ;;  %v2632_v2 = vld [vmem:[#allocation4 + $0xab8] sm:$0xff] }
 0x32c   :  { %4948 = vmatpush1.bf16.msra.mxu1 %v6689_v20  ;;  %v6745_v20 = vcombine.low %v2579_v8, %v2583_v9  ;;  %v2635_v8 = vld [vmem:[#allocation4 + $0xad0] sm:$0xff] }
 0x32d   :  { %5071 = vmatpush1.bf16.msra.mxu0 %v6691_v21  ;;  %4949 = vmatprep.subr.bf16.mxu1 %v6698_v25  ;;  %v6747_v21 = vcombine.low %v2580_v11, %v2584_v12  ;;  %v6754_v25 = vcombine.high %v2587_v17, %v2591_v35  ;;  %v2639_v9 = vld [vmem:[#allocation4 + $0xaf0] sm:$0xff]  ;;  %v2636_v11 = vld [vmem:[#allocation4 + $0xad8] sm:$0xff] }
 0x32e   :  { %5072 = vmatprep.subr.bf16.mxu0 %v6700_v6  ;;  %v6756_v6 = vcombine.high %v2588_v36, %v2592_v46  ;;  %v2640_v12 = vld [vmem:[#allocation4 + $0xaf8] sm:$0xff] }
 0x330   :  { %4950 = vmatpush1.bf16.msra.mxu1 %v6697_v32  ;;  %v6753_v32 = vcombine.low %v2587_v17, %v2591_v35  ;;  %v2643_v17 = vld [vmem:[#allocation4 + $0xb10] sm:$0xff] }
 0x331   :  { %5073 = vmatpush1.bf16.msra.mxu0 %v6699_v33  ;;  %4951 = vmatprep.subr.bf16.mxu1 %v6706_v52  ;;  %v6755_v33 = vcombine.low %v2588_v36, %v2592_v46  ;;  %v6762_v52 = vcombine.high %v2595_v27, %v2599_v28  ;;  %v2647_v35 = vld [vmem:[#allocation4 + $0xb30] sm:$0xff]  ;;  %v2644_v36 = vld [vmem:[#allocation4 + $0xb18] sm:$0xff] }
 0x332   :  { %5074 = vmatprep.subr.bf16.mxu0 %v6708_v23  ;;  %v6764_v23 = vcombine.high %v2596_v30, %v2600_v31  ;;  %v2648_v46 = vld [vmem:[#allocation4 + $0xb38] sm:$0xff] }
 0x334   :  { %4952 = vmatpush1.bf16.msra.mxu1 %v6705_v39  ;;  %v6761_v39 = vcombine.low %v2595_v27, %v2599_v28  ;;  %v2651_v27 = vld [vmem:[#allocation4 + $0xb50] sm:$0xff] }
 0x335   :  { %5075 = vmatpush1.bf16.msra.mxu0 %v6707_v44  ;;  %4962 = vmatprep.subr.bf16.mxu1 %v6714_v45  ;;  %v6763_v44 = vcombine.low %v2596_v30, %v2600_v31  ;;  %v6770_v45 = vcombine.high %v2603_v24, %v2607_v29  ;;  %v2655_v28 = vld [vmem:[#allocation4 + $0xb70] sm:$0xff]  ;;  %v2652_v30 = vld [vmem:[#allocation4 + $0xb58] sm:$0xff] }
 0x336   :  { %5085 = vmatprep.subr.bf16.mxu0 %v6716_v48  ;;  %v6772_v48 = vcombine.high %v2604_v34, %v2608_v38  ;;  %v2656_v31 = vld [vmem:[#allocation4 + $0xb78] sm:$0xff]  ;;  %v2659_v24 = vld [vmem:[#allocation4 + $0xb90] sm:$0xff] }
 0x337   :  { %4954 = vmatmul.mubr.bf16.vlgmr.msra.gmra.mrb[8].mxu1 %v7999_v37  ;;  %v2663_v29 = vld [vmem:[#allocation4 + $0xbb0] sm:$0xff] }
 0x338   :  { %5077 = vmatmul.mubr.bf16.vlgmr.msra.gmra.mrb[12].mxu0 %v7999_v37  ;;  %4963 = vmatpush1.bf16.msra.mxu1 %v6713_v50  ;;  %v6731_v37 = vcombine.low %v2564_v18, %v2568_v58  ;;  %v2612_v50 = vld [vmem:[#allocation4 + $0xa18] sm:$0xff] }
 0x339   :  { %4994 = vmatprep.mubr.bf16.mxu1 %v8015_v22  ;;  %5086 = vmatpush1.bf16.msra.mxu0 %v6715_v54  ;;  %v6771_v54 = vcombine.low %v2604_v34, %v2608_v38  ;;  %v6780_v55 = vcombine.high %v2612_v50, %v2616_v51  ;;  %v2620_v18 = vld [vmem:[#allocation4 + $0xa58] sm:$0xff] }
 0x33a   :  { %5117 = vmatprep.mubr.bf16.mxu0 %v8015_v22  ;;  %4964 = vmatprep.subr.bf16.mxu1 %v6722_v10  ;;  %v6737_v22 = vcombine.low %v2571_v0, %v2575_v40  ;;  %v6778_v10 = vcombine.high %v2611_v7, %v2615_v49  ;;  %v2624_v58 = vld [vmem:[#allocation4 + $0xa78] sm:$0xff]  ;;  %v2627_v0 = vld [vmem:[#allocation4 + $0xa90] sm:$0xff] }
 0x33b   :  { %5087 = vmatprep.subr.bf16.mxu0 %v6724_v56  ;;  %v2623_v56 = vld [vmem:[#allocation4 + $0xa70] sm:$0xff]  ;;  %v2660_v34 = vld [vmem:[#allocation4 + $0xb98] sm:$0xff] }
 0x33c   :  { %4965 = vmatpush1.bf16.msra.mxu1 %v6721_v16  ;;  %v6777_v16 = vcombine.low %v2611_v7, %v2615_v49  ;;  %v2631_v40 = vld [vmem:[#allocation4 + $0xab0] sm:$0xff]  ;;  %v2664_v38 = vld [vmem:[#allocation4 + $0xbb8] sm:$0xff] }
 0x33d   :  { %5088 = vmatpush1.bf16.msra.mxu0 %v6723_v59  ;;  %4966 = vmatprep.subr.bf16.mxu1 %v6730_v61  ;;  %v6779_v59 = vcombine.low %v2612_v50, %v2616_v51  ;;  %v6786_v61 = vcombine.high %v2619_v26, %v2623_v56  ;;  %v2667_v7 = vld [vmem:[#allocation4 + $0xbd0] sm:$0xff]  ;;  %v2668_v50 = vld [vmem:[#allocation4 + $0xbd8] sm:$0xff] }
 0x33e   :  { %5089 = vmatprep.subr.bf16.mxu0 %v6732_v62  ;;  %v6788_v62 = vcombine.high %v2620_v18, %v2624_v58  ;;  %v2671_v49 = vld [vmem:[#allocation4 + $0xbf0] sm:$0xff]  ;;  %v2672_v51 = vld [vmem:[#allocation4 + $0xbf8] sm:$0xff] }
 0x340   :  { %4967 = vmatpush1.bf16.msra.mxu1 %v6729_v3  ;;  %v6785_v3 = vcombine.low %v2619_v26, %v2623_v56  ;;  %v5271_v26 = vld [vmem:[#allocation7] sm:$0xff]  ;;  %v6833_v56 = vcombine.low %v2667_v7, %v2671_v49 }
 0x341   :  { %5090 = vmatpush1.bf16.msra.mxu0 %v6731_v37  ;;  %4968 = vmatprep.subr.bf16.mxu1 %v6738_v4  ;;  %v6787_v37 = vcombine.low %v2620_v18, %v2624_v58  ;;  %v6794_v4 = vcombine.high %v2627_v0, %v2631_v40  ;;  %v6835_v18 = vcombine.low %v2668_v50, %v2672_v51 }
 0x342   :  { %5091 = vmatprep.subr.bf16.mxu0 %v6740_v5  ;;  %v6796_v5 = vcombine.high %v2628_v1, %v2632_v2  ;;  %v6838_v58 = vcombine.high %v5271_v26, %v5271_v26 }
 0x344   :  { %4969 = vmatpush1.bf16.msra.mxu1 %v6737_v22  ;;  %v6793_v22 = vcombine.low %v2627_v0, %v2631_v40  ;;  %v7488_v0 = vld [vmem:[#allocation6] ss:$8 sps:$4 sm:$0xff]  }
 0x345   :  { %5092 = vmatpush1.bf16.msra.mxu0 %v6739_v13  ;;  %4970 = vmatprep.subr.bf16.mxu1 %v6746_v14  ;;  %v6795_v13 = vcombine.low %v2628_v1, %v2632_v2  ;;  %v6802_v14 = vcombine.high %v2635_v8, %v2639_v9  ;;  %v5270_v40 = vld [vmem:[%s8077_s0] sm:$0x1]  ;;  %v7493_v1 = vld [vmem:[#allocation6 + $0x14] ss:$8 sps:$4 sm:$0xff]  }
 0x346   :  { %5093 = vmatprep.subr.bf16.mxu0 %v6748_v15  ;;  %v6804_v15 = vcombine.high %v2636_v11, %v2640_v12  ;;  %v7587_v2 = vld [vmem:[#allocation6 + $0x300] ss:$8 sps:$4 sm:$0xff]  }
 0x348   :  { %4971 = vmatpush1.bf16.msra.mxu1 %v6745_v20  ;;  %v6801_v20 = vcombine.low %v2635_v8, %v2639_v9  ;;  %v7494_v8 = vld [vmem:[#allocation6 + $0x20] ss:$8 sps:$4 sm:$0xff]   ;;  %v7499_v9 = vld [vmem:[#allocation6 + $0x34] ss:$8 sps:$4 sm:$0xff]  }
 0x349   :  { %5094 = vmatpush1.bf16.msra.mxu0 %v6747_v21  ;;  %4972 = vmatprep.subr.bf16.mxu1 %v6754_v25  ;;  %v6803_v21 = vcombine.low %v2636_v11, %v2640_v12  ;;  %v6810_v25 = vcombine.high %v2643_v17, %v2647_v35  ;;  %v8041_v11 = vld [vmem:[#allocation9 + $0x6] sm:$0xff] }
 0x34a   :  { %5095 = vmatprep.subr.bf16.mxu0 %v6756_v6  ;;  %v6812_v6 = vcombine.high %v2644_v36, %v2648_v46  ;;  %v7601_v12 = vld [vmem:[#allocation6 + $0x324] ss:$8 sps:$4 sm:$0xff]  }
 0x34c   :  { %4973 = vmatpush1.bf16.msra.mxu1 %v6753_v32  ;;  %v6809_v32 = vcombine.low %v2643_v17, %v2647_v35  ;;  %v7607_v17 = vld [vmem:[#allocation6 + $0x334] ss:$8 sps:$4 sm:$0xff]  }
 0x34d   :  { %5096 = vmatpush1.bf16.msra.mxu0 %v6755_v33  ;;  %4974 = vmatprep.subr.bf16.mxu1 %v6762_v52  ;;  %v6811_v33 = vcombine.low %v2644_v36, %v2648_v46  ;;  %v6818_v52 = vcombine.high %v2651_v27, %v2655_v28 }
 0x34e   :  { %5097 = vmatprep.subr.bf16.mxu0 %v6764_v23  ;;  %v6820_v23 = vcombine.high %v2652_v30, %v2656_v31 }
 0x350   :  { %4975 = vmatpush1.bf16.msra.mxu1 %v6761_v39  ;;  %v6817_v39 = vcombine.low %v2651_v27, %v2655_v28  ;;  %v7500_v28 = vld [vmem:[#allocation6 + $0x40] ss:$8 sps:$4 sm:$0xff]  }
 0x351   :  { %5098 = vmatpush1.bf16.msra.mxu0 %v6763_v44  ;;  %4976 = vmatprep.subr.bf16.mxu1 %v6770_v45  ;;  %v6819_v44 = vcombine.low %v2652_v30, %v2656_v31  ;;  %v6826_v45 = vcombine.high %v2659_v24, %v2663_v29 }
 0x352   :  { %5099 = vmatprep.subr.bf16.mxu0 %v6772_v48  ;;  %v6828_v48 = vcombine.high %v2660_v34, %v2664_v38 }
 0x354   :  { %4977 = vmatpush1.bf16.msra.mxu1 %v6769_v53  ;;  %v6825_v53 = vcombine.low %v2659_v24, %v2663_v29  ;;  %v7503_v29 = vld [vmem:[#allocation6 + $0x50] ss:$8 sps:$4 sm:$0xff]  }
 0x355   :  { %5100 = vmatpush1.bf16.msra.mxu0 %v6771_v54  ;;  %4978 = vmatprep.subr.bf16.mxu1 %v6778_v10  ;;  %v6827_v54 = vcombine.low %v2660_v34, %v2664_v38  ;;  %v6834_v10 = vcombine.high %v2667_v7, %v2671_v49  ;;  %v7508_v34 = vld [vmem:[#allocation6 + $0x64] ss:$8 sps:$4 sm:$0xff]   ;;  %v7619_v38 = vld [vmem:[#allocation6 + $0x354] ss:$8 sps:$4 sm:$0xff]   ;;  %v7623_v7 = vld [vmem:[#allocation6 + $0x360] ss:$8 sps:$4 sm:$0xff]  }
 0x356   :  { %5101 = vmatprep.subr.bf16.mxu0 %v6780_v55  ;;  %v6836_v55 = vcombine.high %v2668_v50, %v2672_v51  ;;  %v7509_v49 = vld [vmem:[#allocation6 + $0x70] ss:$8 sps:$4 sm:$0xff]   ;;  %v7514_v50 = vld [vmem:[#allocation6 + $0x84] ss:$8 sps:$4 sm:$0xff]   ;;  %v7631_v51 = vld [vmem:[#allocation6 + $0x374] ss:$8 sps:$4 sm:$0xff]  }
 0x358   :  { %4979 = vmatpush1.bf16.msra.mxu1 %v6777_v16  ;;  %v6837_v16 = vcombine.low %v5271_v26, %v5271_v26  ;;  %v7635_v26 = vld [vmem:[#allocation6 + $0x380] ss:$8 sps:$4 sm:$0xff]  }
 0x359   :  { %5102 = vmatpush1.bf16.msra.mxu0 %v6779_v59  ;;  %4980 = vmatprep.subr.bf16.mxu1 %v6786_v61  ;;  %v7490_v61 = vld [vmem:[#allocation6 + $0x4] ss:$8 sps:$4 sm:$0xff]  }
 0x35a   :  { %5103 = vmatprep.subr.bf16.mxu0 %v6788_v62  ;;  %v5283_v59 = vsel %vm5281_vm0, %v6837_v16, 0  ;;  %v7808_v62 = vmov 0   ;;  %v7641_v16 = vld [vmem:[#allocation6 + $0x390] ss:$8 sps:$4 sm:$0xff]  }
 0x35c   :  { %4981 = vmatpush1.bf16.msra.mxu1 %v6785_v3  ;;  %v7491_v3 = vld [vmem:[#allocation6 + $0x10] ss:$8 sps:$4 sm:$0xff]  }
 0x35d   :  { %5104 = vmatpush1.bf16.msra.mxu0 %v6787_v37  ;;  %4982 = vmatprep.subr.bf16.mxu1 %v6794_v4  ;;  %v7589_v37 = vld [vmem:[#allocation6 + $0x304] ss:$8 sps:$4 sm:$0xff]  }
 0x35e   :  { %5105 = vmatprep.subr.bf16.mxu0 %v6796_v5  ;;  %v7496_v4 = vld [vmem:[#allocation6 + $0x24] ss:$8 sps:$4 sm:$0xff]   ;;  %v7595_v5 = vld [vmem:[#allocation6 + $0x314] ss:$8 sps:$4 sm:$0xff]  }
 0x360   :  { %4983 = vmatpush1.bf16.msra.mxu1 %v6793_v22  ;;  %v7599_v22 = vld [vmem:[#allocation6 + $0x320] ss:$8 sps:$4 sm:$0xff]  }
 0x361   :  { %5106 = vmatpush1.bf16.msra.mxu0 %v6795_v13  ;;  %4984 = vmatprep.subr.bf16.mxu1 %v6802_v14  ;;  %v7497_v13 = vld [vmem:[#allocation6 + $0x30] ss:$8 sps:$4 sm:$0xff]   ;;  %v2681_v14 = vrot.slane %v8041_v11, %v7963_v41 }
 0x362   :  { %5107 = vmatprep.subr.bf16.mxu0 %v6804_v15  ;;  %v7502_v15 = vld [vmem:[#allocation6 + $0x44] ss:$8 sps:$4 sm:$0xff]  }
 0x364   :  { %4985 = vmatpush1.bf16.msra.mxu1 %v6801_v20 }
 0x365   :  { %5108 = vmatpush1.bf16.msra.mxu0 %v6803_v21  ;;  %4986 = vmatprep.subr.bf16.mxu1 %v6810_v25  ;;  %v7605_v21 = vld [vmem:[#allocation6 + $0x330] ss:$8 sps:$4 sm:$0xff]  }
 0x366   :  { %5109 = vmatprep.subr.bf16.mxu0 %v6812_v6 }
 0x368   :  { %4987 = vmatpush1.bf16.msra.mxu1 %v6809_v32  ;;  %v7505_v32 = vld [vmem:[#allocation6 + $0x54] ss:$8 sps:$4 sm:$0xff]  }
 0x369   :  { %5110 = vmatpush1.bf16.msra.mxu0 %v6811_v33  ;;  %4988 = vmatprep.subr.bf16.mxu1 %v6818_v52  ;;  %v7613_v52 = vld [vmem:[#allocation6 + $0x344] ss:$8 sps:$4 sm:$0xff]  }
 0x36a   :  { %5111 = vmatprep.subr.bf16.mxu0 %v6820_v23  ;;  %v7611_v23 = vld [vmem:[#allocation6 + $0x340] ss:$8 sps:$4 sm:$0xff]  }
 0x36c   :  { %4989 = vmatpush1.bf16.msra.mxu1 %v6817_v39  ;;  %v7617_v39 = vld [vmem:[#allocation6 + $0x350] ss:$8 sps:$4 sm:$0xff]  }
 0x36d   :  { %5112 = vmatpush1.bf16.msra.mxu0 %v6819_v44  ;;  %4990 = vmatprep.subr.bf16.mxu1 %v6826_v45  ;;  %v7506_v44 = vld [vmem:[#allocation6 + $0x60] ss:$8 sps:$4 sm:$0xff]   ;;  %v7511_v45 = vld [vmem:[#allocation6 + $0x74] ss:$8 sps:$4 sm:$0xff]  }
 0x36e   :  { %5113 = vmatprep.subr.bf16.mxu0 %v6828_v48  ;;  %v7625_v48 = vld [vmem:[#allocation6 + $0x364] ss:$8 sps:$4 sm:$0xff]  }
 0x370   :  { %4991 = vmatpush1.bf16.msra.mxu1 %v6825_v53  ;;  %v7629_v53 = vld [vmem:[#allocation6 + $0x370] ss:$8 sps:$4 sm:$0xff]  }
 0x371   :  { %5114 = vmatpush1.bf16.msra.mxu0 %v6827_v54  ;;  %4992 = vmatprep.subr.bf16.mxu1 %v6834_v10  ;;  %v7512_v54 = vld [vmem:[#allocation6 + $0x80] ss:$8 sps:$4 sm:$0xff]   ;;  %v7517_v10 = vld [vmem:[#allocation6 + $0x94] ss:$8 sps:$4 sm:$0xff]  }
 0x372   :  { %5115 = vmatprep.subr.bf16.mxu0 %v6836_v55  ;;  %v7637_v55 = vld [vmem:[#allocation6 + $0x384] ss:$8 sps:$4 sm:$0xff]  }
 0x374   :  { %4993 = vmatpush1.bf16.msra.mxu1 %v6833_v56  ;;  %v7515_v56 = vld [vmem:[#allocation6 + $0x90] ss:$8 sps:$4 sm:$0xff]  }
 0x375   :  { %5116 = vmatpush1.bf16.msra.mxu0 %v6835_v18  ;;  %6839 = vmatprep.subr.msk.bf16.mxu1 %vm5281_vm0, %v6838_v58  ;;  %v7520_v18 = vld [vmem:[#allocation6 + $0xa4] ss:$8 sps:$4 sm:$0xff]   ;;  %v7643_v58 = vld [vmem:[#allocation6 + $0x394] ss:$8 sps:$4 sm:$0xff]  }
 0x376   :  { %6092 = vmatprep.subr.bf16.mxu0 %v7589_v37  ;;  %v7524_v37 = vld [vmem:[#allocation6 + $0xc0] ss:$8 sps:$4 sm:$0xff]  }
 0x377   :  { %4995 = vmatmul.mubr.bf16.vlgmr.msra.gmra.mrb[8].mxu1 %v8017_v63 }
 0x378   :  { %5118 = vmatmul.mubr.bf16.vlgmr.msra.gmra.mrb[12].mxu0 %v8017_v63  ;;  %5289 = vmatpush1.bf16.msra.mxu1 %v5283_v59  ;;  %v7593_v63 = vld [vmem:[#allocation6 + $0x310] ss:$8 sps:$4 sm:$0xff]   ;;  %v7518_v59 = vld [vmem:[#allocation6 + $0xa0] ss:$8 sps:$4 sm:$0xff]  }
 0x379   :  { %5320 = vmatprep.mubr.bf16.mxu1 %v7808_v62  ;;  %5969 = vmatprep.subr.bf16.mxu1 %v7490_v61  ;;  %v7523_v61 = vld [vmem:[#allocation6 + $0xb4] ss:$8 sps:$4 sm:$0xff]   ;;  %v7649_v62 = vld [vmem:[#allocation6 + $0x3a4] ss:$8 sps:$4 sm:$0xff]  }
 0x37a   :  { %6093 = vmatpush1.bf16.msra.mxu0 %v7587_v2  ;;  %v7655_v2 = vld [vmem:[#allocation6 + $0x3b4] ss:$8 sps:$4 sm:$0xff]  }
 0x37b   :  { %6094 = vmatprep.subr.bf16.mxu0 %v7595_v5  ;;  %v7661_v5 = vld [vmem:[#allocation6 + $0x3c4] ss:$8 sps:$4 sm:$0xff]  }
 0x37e   :  { %6095 = vmatpush1.bf16.msra.mxu0 %v7593_v63  ;;  %v7659_v63 = vld [vmem:[#allocation6 + $0x3c0] ss:$8 sps:$4 sm:$0xff]  }
 0x37f   :  { %6840 = vmatmul.mubr.msk.bf16.vlgmr.msra.gmra.mrb[12].mxu1 %vm5277_vm1, %v5270_v40  ;;  %6096 = vmatprep.subr.bf16.mxu0 %v7601_v12  ;;  %v7521_v40 = vld [vmem:[#allocation6 + $0xb0] ss:$8 sps:$4 sm:$0xff]   ;;  %v7532_v12 = vld [vmem:[#allocation6 + $0xe4] ss:$8 sps:$4 sm:$0xff]  }
 0x380   :  { %5970 = vmatpush1.bf16.msra.mxu1 %v7488_v0  ;;  %v7647_v0 = vld [vmem:[#allocation6 + $0x3a0] ss:$8 sps:$4 sm:$0xff]  }
 0x381   :  { %5971 = vmatprep.subr.bf16.mxu1 %v7493_v1  ;;  %v7526_v1 = vld [vmem:[#allocation6 + $0xc4] ss:$8 sps:$4 sm:$0xff]  }
 0x382   :  { %6097 = vmatpush1.bf16.msra.mxu0 %v7599_v22  ;;  %v7667_v22 = vld [vmem:[#allocation6 + $0x3d4] ss:$8 sps:$4 sm:$0xff]  }
 0x383   :  { %6098 = vmatprep.subr.bf16.mxu0 %v7607_v17 }
 0x384   :  { %5972 = vmatpush1.bf16.msra.mxu1 %v7491_v3  ;;  %v7653_v3 = vld [vmem:[#allocation6 + $0x3b0] ss:$8 sps:$4 sm:$0xff]  }
 0x385   :  { %5973 = vmatprep.subr.bf16.mxu1 %v7496_v4  ;;  %v7529_v4 = vld [vmem:[#allocation6 + $0xd4] ss:$8 sps:$4 sm:$0xff]  }
 0x386   :  { %6099 = vmatpush1.bf16.msra.mxu0 %v7605_v21 }
 0x387   :  { %6100 = vmatprep.subr.bf16.mxu0 %v7613_v52  ;;  %v7547_v52 = vld [vmem:[#allocation6 + $0x134] ss:$8 sps:$4 sm:$0xff]  }
 0x388   :  { %5974 = vmatpush1.bf16.msra.mxu1 %v7494_v8  ;;  %v7527_v8 = vld [vmem:[#allocation6 + $0xd0] ss:$8 sps:$4 sm:$0xff]  }
 0x389   :  { %5975 = vmatprep.subr.bf16.mxu1 %v7499_v9  ;;  %v2677_v9 = vrot.slane %v8041_v11, %v7958_v19 }
 0x38a   :  { %v8045_v35 = vpop.f32.mrb[4].mxu1  ;;  %v8047_v36 = vpop.f32.mrb[8].mxu0  ;;  %6101 = vmatpush1.bf16.msra.mxu0 %v7611_v23  ;;  %v7545_v23 = vld [vmem:[#allocation6 + $0x130] ss:$8 sps:$4 sm:$0xff]  }
 0x38b   :  { %v4752_v46 = vpop.f32.mrb[5].mxu1  ;;  %v8049_v20 = vpop.f32.mrb[9].mxu0  ;;  %6102 = vmatprep.subr.bf16.mxu0 %v7619_v38  ;;  %v6976_v17 = vadd.f32 %v8045_v35, %v2677_v9  ;;  %v7539_v35 = vld [vmem:[#allocation6 + $0x110] ss:$8 sps:$4 sm:$0xff]   ;;  %v7671_v38 = vld [vmem:[#allocation6 + $0x3e0] ss:$8 sps:$4 sm:$0xff]  }
 0x38c   :  { %5976 = vmatpush1.bf16.msra.mxu1 %v7497_v13  ;;  %v6977_v25 = vadd.f32 %v4752_v46, %v2681_v14  ;;  %v4754_v6 = vpop.f32.mrb[6].mxu1  ;;  %v4877_v27 = vpop.f32.mrb[10].mxu0  ;;  %v2689_v13 = vrot.slane %v8041_v11, %v398_v43  ;;  %v7665_v14 = vld [vmem:[#allocation6 + $0x3d0] ss:$8 sps:$4 sm:$0xff]   ;;  %v7535_v46 = vld [vmem:[#allocation6 + $0xf4] ss:$8 sps:$4 sm:$0xff]  }
 0x38d   :  { %v4755_v30 = vpop.f32.mrb[7].mxu1  ;;  %v4878_v31 = vpop.f32.mrb[11].mxu0  ;;  %5977 = vmatprep.subr.bf16.mxu1 %v7502_v15  ;;  %v7530_v15 = vld [vmem:[#allocation6 + $0xe0] ss:$8 sps:$4 sm:$0xff]   ;;  %v5126_v6 = vmax.f32 %v6976_v17, 0.0 }
 0x38e   :  { %v5127_v33 = vmax.f32 %v6977_v25, 0.0  ;;  %6103 = vmatpush1.bf16.msra.mxu0 %v7617_v39  ;;  %v6979_v21 = vadd.f32 %v8049_v20, %v2689_v13  ;;  %v7533_v25 = vld [vmem:[#allocation6 + $0xf0] ss:$8 sps:$4 sm:$0xff]   ;;  %v7538_v27 = vld [vmem:[#allocation6 + $0x104] ss:$8 sps:$4 sm:$0xff]  }
 0x38f   :  { %6104 = vmatprep.subr.bf16.mxu0 %v7625_v48  ;;  %v7536_v43 = vld [vmem:[#allocation6 + $0x100] ss:$8 sps:$4 sm:$0xff]   ;;  %v5134_v30 = vpack.c.bf16 %v5126_v6, %v5126_v6  ;;  %v7541_v31 = vld [vmem:[#allocation6 + $0x114] ss:$8 sps:$4 sm:$0xff]   ;;  %v7677_v48 = vld [vmem:[#allocation6 + $0x3f0] ss:$8 sps:$4 sm:$0xff]  }
 0x390   :  { %v5135_v24 = vpack.c.bf16 %v5127_v33, %v5127_v33  ;;  %5978 = vmatpush1.bf16.msra.mxu1 %v7500_v28  ;;  %v5129_v28 = vmax.f32 %v6979_v21, 0.0  ;;  %v7544_v33 = vld [vmem:[#allocation6 + $0x124] ss:$8 sps:$4 sm:$0xff]   ;;  %v7542_v20 = vld [vmem:[#allocation6 + $0x120] ss:$8 sps:$4 sm:$0xff]  }
 0x391   :  { %5979 = vmatprep.subr.bf16.mxu1 %v7505_v32  ;;  %v7553_v39 = vld [vmem:[#allocation6 + $0x154] ss:$8 sps:$4 sm:$0xff]   ;;  %v7602_v13 = vld [vmem:[#allocation6 + $0x230] ss:$8 sps:$4 sm:$0xff]   ;;  %v7622_v21 = vld [vmem:[#allocation6 + $0x264] ss:$8 sps:$4 sm:$0xff]  }
 0x392   :  { %6001 = vmatprep.mubr.bf16.mxu1 %v5135_v24  ;;  %6105 = vmatpush1.bf16.msra.mxu0 %v7623_v7  ;;  %v5137_v32 = vpack.c.bf16 %v5129_v28, %v5129_v28  ;;  %v7550_v24 = vld [vmem:[#allocation6 + $0x144] ss:$8 sps:$4 sm:$0xff]   ;;  %v7592_v9 = vld [vmem:[#allocation6 + $0x214] ss:$8 sps:$4 sm:$0xff]  }
 0x393   :  { %6106 = vmatprep.subr.bf16.mxu0 %v7631_v51  ;;  %v7556_v7 = vld [vmem:[#allocation6 + $0x164] ss:$8 sps:$4 sm:$0xff]   ;;  %v7557_v51 = vld [vmem:[#allocation6 + $0x170] ss:$8 sps:$4 sm:$0xff]   ;;  %v7616_v17 = vld [vmem:[#allocation6 + $0x254] ss:$8 sps:$4 sm:$0xff]  }
 0x394   :  { %5980 = vmatpush1.bf16.msra.mxu1 %v7503_v29  ;;  %v7673_v29 = vld [vmem:[#allocation6 + $0x3e4] ss:$8 sps:$4 sm:$0xff]   ;;  %v7628_v6 = vld [vmem:[#allocation6 + $0x274] ss:$8 sps:$4 sm:$0xff]  }
 0x395   :  { %5981 = vmatprep.subr.bf16.mxu1 %v7508_v34  ;;  %v7548_v34 = vld [vmem:[#allocation6 + $0x140] ss:$8 sps:$4 sm:$0xff]   ;;  %v7634_v28 = vld [vmem:[#allocation6 + $0x284] ss:$8 sps:$4 sm:$0xff]  }
 0x396   :  { %6107 = vmatpush1.bf16.msra.mxu0 %v7629_v53  ;;  %v7562_v53 = vld [vmem:[#allocation6 + $0x184] ss:$8 sps:$4 sm:$0xff]  }
 0x397   :  { %6108 = vmatprep.subr.bf16.mxu0 %v7637_v55  ;;  %v7563_v55 = vld [vmem:[#allocation6 + $0x190] ss:$8 sps:$4 sm:$0xff]  }
 0x398   :  { %5982 = vmatpush1.bf16.msra.mxu1 %v7506_v44  ;;  %v7679_v44 = vld [vmem:[#allocation6 + $0x3f4] ss:$8 sps:$4 sm:$0xff]  }
 0x399   :  { %5983 = vmatprep.subr.bf16.mxu1 %v7511_v45  ;;  %v7551_v45 = vld [vmem:[#allocation6 + $0x150] ss:$8 sps:$4 sm:$0xff]  }
 0x39a   :  { %6109 = vmatpush1.bf16.msra.mxu0 %v7635_v26  ;;  %v7568_v26 = vld [vmem:[#allocation6 + $0x1a4] ss:$8 sps:$4 sm:$0xff]  }
 0x39b   :  { %6110 = vmatprep.subr.bf16.mxu0 %v7643_v58  ;;  %v7569_v58 = vld [vmem:[#allocation6 + $0x1b0] ss:$8 sps:$4 sm:$0xff]  }
 0x39c   :  { %5984 = vmatpush1.bf16.msra.mxu1 %v7509_v49  ;;  %v7554_v49 = vld [vmem:[#allocation6 + $0x160] ss:$8 sps:$4 sm:$0xff]  }
 0x39d   :  { %5985 = vmatprep.subr.bf16.mxu1 %v7514_v50  ;;  %v7559_v50 = vld [vmem:[#allocation6 + $0x174] ss:$8 sps:$4 sm:$0xff]  }
 0x39e   :  { %6111 = vmatpush1.bf16.msra.mxu0 %v7641_v16  ;;  %v7574_v16 = vld [vmem:[#allocation6 + $0x1c4] ss:$8 sps:$4 sm:$0xff]  }
 0x39f   :  { %6112 = vmatprep.subr.bf16.mxu0 %v7649_v62  ;;  %v7575_v62 = vld [vmem:[#allocation6 + $0x1d0] ss:$8 sps:$4 sm:$0xff]  }
 0x3a0   :  { %5986 = vmatpush1.bf16.msra.mxu1 %v7512_v54  ;;  %v7560_v54 = vld [vmem:[#allocation6 + $0x180] ss:$8 sps:$4 sm:$0xff]  }
 0x3a1   :  { %5987 = vmatprep.subr.bf16.mxu1 %v7517_v10  ;;  %v7565_v10 = vld [vmem:[#allocation6 + $0x194] ss:$8 sps:$4 sm:$0xff]  }
 0x3a2   :  { %6113 = vmatpush1.bf16.msra.mxu0 %v7647_v0  ;;  %v2685_v0 = vrot.slane %v8041_v11, %v394_v57  ;;  %v7590_v57 = vld [vmem:[#allocation6 + $0x210] ss:$8 sps:$4 sm:$0xff]  }
 0x3a3   :  { %6114 = vmatprep.subr.bf16.mxu0 %v7655_v2 }
 0x3a4   :  { %5988 = vmatpush1.bf16.msra.mxu1 %v7515_v56  ;;  %v7566_v56 = vld [vmem:[#allocation6 + $0x1a0] ss:$8 sps:$4 sm:$0xff]   ;;  %v6978_v2 = vadd.f32 %v8047_v36, %v2685_v0  ;;  %v7604_v36 = vld [vmem:[#allocation6 + $0x234] ss:$8 sps:$4 sm:$0xff]  }
 0x3a5   :  { %5989 = vmatprep.subr.bf16.mxu1 %v7520_v18  ;;  %v7571_v18 = vld [vmem:[#allocation6 + $0x1b4] ss:$8 sps:$4 sm:$0xff]  }
 0x3a6   :  { %6115 = vmatpush1.bf16.msra.mxu0 %v7653_v3  ;;  %v7583_v3 = vld [vmem:[#allocation6 + $0x1f4] ss:$8 sps:$4 sm:$0xff]  }
 0x3a7   :  { %6116 = vmatprep.subr.bf16.mxu0 %v7661_v5  ;;  %v7586_v5 = vld [vmem:[#allocation6 + $0x204] ss:$8 sps:$4 sm:$0xff]  }
 0x3a8   :  { %5990 = vmatpush1.bf16.msra.mxu1 %v7518_v59  ;;  %v7572_v59 = vld [vmem:[#allocation6 + $0x1c0] ss:$8 sps:$4 sm:$0xff]  }
 0x3a9   :  { %5991 = vmatprep.subr.bf16.mxu1 %v7523_v61  ;;  %v7577_v61 = vld [vmem:[#allocation6 + $0x1d4] ss:$8 sps:$4 sm:$0xff]  }
 0x3aa   :  { %6117 = vmatpush1.bf16.msra.mxu0 %v7659_v63  ;;  %v7584_v63 = vld [vmem:[#allocation6 + $0x200] ss:$8 sps:$4 sm:$0xff]  }
 0x3ab   :  { %6118 = vmatprep.subr.bf16.mxu0 %v7667_v22  ;;  %v7596_v22 = vld [vmem:[#allocation6 + $0x220] ss:$8 sps:$4 sm:$0xff]  }
 0x3ac   :  { %5992 = vmatpush1.bf16.msra.mxu1 %v7521_v40  ;;  %v7580_v40 = vld [vmem:[#allocation6 + $0x1e4] ss:$8 sps:$4 sm:$0xff]  }
 0x3ad   :  { %5993 = vmatprep.subr.bf16.mxu1 %v7526_v1  ;;  %v7578_v1 = vld [vmem:[#allocation6 + $0x1e0] ss:$8 sps:$4 sm:$0xff]  }
 0x3ae   :  { %6119 = vmatpush1.bf16.msra.mxu0 %v7665_v14  ;;  %v7610_v14 = vld [vmem:[#allocation6 + $0x244] ss:$8 sps:$4 sm:$0xff]  }
 0x3af   :  { %6120 = vmatprep.subr.bf16.mxu0 %v7673_v29  ;;  %v7662_v29 = vld [vmem:[#allocation6 + $0x2d0] ss:$8 sps:$4 sm:$0xff]  }
 0x3b0   :  { %5994 = vmatpush1.bf16.msra.mxu1 %v7524_v37  ;;  %v7581_v37 = vld [vmem:[#allocation6 + $0x1f0] ss:$8 sps:$4 sm:$0xff]  }
 0x3b1   :  { %5995 = vmatprep.subr.bf16.mxu1 %v7529_v4  ;;  %v5128_v4 = vmax.f32 %v6978_v2, 0.0 }
 0x3b2   :  { %6121 = vmatpush1.bf16.msra.mxu0 %v7671_v38  ;;  %v7668_v38 = vld [vmem:[#allocation6 + $0x2e0] ss:$8 sps:$4 sm:$0xff]  }
 0x3b3   :  { %6122 = vmatprep.subr.bf16.mxu0 %v7679_v44  ;;  %v7674_v44 = vld [vmem:[#allocation6 + $0x2f0] ss:$8 sps:$4 sm:$0xff]  }
 0x3b4   :  { %5996 = vmatpush1.bf16.msra.mxu1 %v7527_v8  ;;  %v5136_v8 = vpack.c.bf16 %v5128_v4, %v5128_v4 }
 0x3b5   :  { %5997 = vmatprep.subr.bf16.mxu1 %v7532_v12  ;;  %v7598_v12 = vld [vmem:[#allocation6 + $0x224] ss:$8 sps:$4 sm:$0xff]  }
 0x3b6   :  { %6123 = vmatpush1.bf16.msra.mxu0 %v7677_v48  ;;  %v2704_v48 = vsub.s32 7, %v7909_v42 }
 0x3b8   :  { %5998 = vmatpush1.bf16.msra.mxu1 %v7530_v15  ;;  %v7608_v15 = vld [vmem:[#allocation6 + $0x240] ss:$8 sps:$4 sm:$0xff]  }
 0x3b9   :  { %5999 = vmatprep.subr.bf16.mxu1 %v7535_v46  ;;  %v7614_v46 = vld [vmem:[#allocation6 + $0x250] ss:$8 sps:$4 sm:$0xff]  }
 0x3bc   :  { %6000 = vmatpush1.bf16.msra.mxu1 %v7533_v25  ;;  %v7620_v25 = vld [vmem:[#allocation6 + $0x260] ss:$8 sps:$4 sm:$0xff]  }
 0x3bd   :  { %6010 = vmatprep.subr.bf16.mxu1 %v7538_v27  ;;  %v7626_v27 = vld [vmem:[#allocation6 + $0x270] ss:$8 sps:$4 sm:$0xff]  }
 0x3bf   :  { %6002 = vmatmul.mubr.bf16.vlgmr.msra.gmra.mrb[16].mxu1 %v5134_v30  ;;  %v7640_v30 = vld [vmem:[#allocation6 + $0x294] ss:$8 sps:$4 sm:$0xff]  }
 0x3c0   :  { %6011 = vmatpush1.bf16.msra.mxu1 %v7536_v43  ;;  %6042 = vmatprep.mubr.bf16.mxu1 %v5137_v32  ;;  %v7632_v43 = vld [vmem:[#allocation6 + $0x280] ss:$8 sps:$4 sm:$0xff]   ;;  %v7646_v32 = vld [vmem:[#allocation6 + $0x2a4] ss:$8 sps:$4 sm:$0xff]  }
 0x3c1   :  { %6012 = vmatprep.subr.bf16.mxu1 %v7541_v31  ;;  %v7638_v31 = vld [vmem:[#allocation6 + $0x290] ss:$8 sps:$4 sm:$0xff]  }
 0x3c4   :  { %6013 = vmatpush1.bf16.msra.mxu1 %v7539_v35  ;;  %v7644_v35 = vld [vmem:[#allocation6 + $0x2a0] ss:$8 sps:$4 sm:$0xff]  }
 0x3c5   :  { %6014 = vmatprep.subr.bf16.mxu1 %v7544_v33  ;;  %v7652_v33 = vld [vmem:[#allocation6 + $0x2b4] ss:$8 sps:$4 sm:$0xff]  }
 0x3c8   :  { %6015 = vmatpush1.bf16.msra.mxu1 %v7542_v20  ;;  %v7650_v20 = vld [vmem:[#allocation6 + $0x2b0] ss:$8 sps:$4 sm:$0xff]  }
 0x3c9   :  { %6016 = vmatprep.subr.bf16.mxu1 %v7547_v52  ;;  %v7658_v52 = vld [vmem:[#allocation6 + $0x2c4] ss:$8 sps:$4 sm:$0xff]  }
 0x3cc   :  { %6017 = vmatpush1.bf16.msra.mxu1 %v7545_v23  ;;  %v7656_v23 = vld [vmem:[#allocation6 + $0x2c0] ss:$8 sps:$4 sm:$0xff]  }
 0x3cd   :  { %6018 = vmatprep.subr.bf16.mxu1 %v7550_v24  ;;  %v7664_v24 = vld [vmem:[#allocation6 + $0x2d4] ss:$8 sps:$4 sm:$0xff]  }
 0x3d0   :  { %6019 = vmatpush1.bf16.msra.mxu1 %v7548_v34  ;;  %v7670_v34 = vld [vmem:[#allocation6 + $0x2e4] ss:$8 sps:$4 sm:$0xff]  }
 0x3d1   :  { %6020 = vmatprep.subr.bf16.mxu1 %v7553_v39  ;;  %v7676_v39 = vld [vmem:[#allocation6 + $0x2f4] ss:$8 sps:$4 sm:$0xff]  }
 0x3d4   :  { %6021 = vmatpush1.bf16.msra.mxu1 %v7551_v45  ;;  %v2700_v45 = vsub.s32 6, %v7909_v42 }
 0x3d5   :  { %6022 = vmatprep.subr.bf16.mxu1 %v7556_v7  ;;  %v2693_v7 = vrot.slane %v8041_v11, %v402_v60 }
 0x3d8   :  { %6023 = vmatpush1.bf16.msra.mxu1 %v7554_v49  ;;  %v2701_v49 = vrot.slane %v8041_v11, %v2700_v45 }
 0x3d9   :  { %6024 = vmatprep.subr.bf16.mxu1 %v7559_v50  ;;  %v2697_v50 = vrot.slane %v8041_v11, %v406_v47 }
 0x3dc   :  { %6025 = vmatpush1.bf16.msra.mxu1 %v7557_v51  ;;  %v2705_v51 = vrot.slane %v8041_v11, %v2704_v48 }
 0x3dd   :  { %6026 = vmatprep.subr.bf16.mxu1 %v7562_v53 }
 0x3e0   :  { %6027 = vmatpush1.bf16.msra.mxu1 %v7560_v54 }
 0x3e1   :  { %6028 = vmatprep.subr.bf16.mxu1 %v7565_v10 }
 0x3e4   :  { %6029 = vmatpush1.bf16.msra.mxu1 %v7563_v55 }
 0x3e5   :  { %6030 = vmatprep.subr.bf16.mxu1 %v7568_v26 }
 0x3e8   :  { %6031 = vmatpush1.bf16.msra.mxu1 %v7566_v56 }
 0x3e9   :  { %6032 = vmatprep.subr.bf16.mxu1 %v7571_v18 }
 0x3ec   :  { %6033 = vmatpush1.bf16.msra.mxu1 %v7569_v58 }
 0x3ed   :  { %6034 = vmatprep.subr.bf16.mxu1 %v7574_v16 }
 0x3f0   :  { %6035 = vmatpush1.bf16.msra.mxu1 %v7572_v59 }
 0x3f1   :  { %6036 = vmatprep.subr.bf16.mxu1 %v7577_v61 }
 0x3f4   :  { %6037 = vmatpush1.bf16.msra.mxu1 %v7575_v62 }
 0x3f5   :  { %6038 = vmatprep.subr.bf16.mxu1 %v7580_v40 }
 0x3f8   :  { %6039 = vmatpush1.bf16.msra.mxu1 %v7578_v1 }
 0x3f9   :  { %6040 = vmatprep.subr.bf16.mxu1 %v7583_v3 }
 0x3fc   :  { %6041 = vmatpush1.bf16.msra.mxu1 %v7581_v37 }
 0x3fd   :  { %6051 = vmatprep.subr.bf16.mxu1 %v7586_v5 }
 0x3ff   :  { %6043 = vmatmul.mubr.bf16.vlgmr.msra.gmra.mrb[20].mxu1 %v5136_v8 }
 0x400   :  { %6052 = vmatpush1.bf16.msra.mxu1 %v7584_v63 }
 0x401   :  { %6053 = vmatprep.subr.bf16.mxu1 %v7592_v9 }
 0x404   :  { %6054 = vmatpush1.bf16.msra.mxu1 %v7590_v57 }
 0x405   :  { %6055 = vmatprep.subr.bf16.mxu1 %v7598_v12 }
 0x408   :  { %6056 = vmatpush1.bf16.msra.mxu1 %v7596_v22 }
 0x409   :  { %6057 = vmatprep.subr.bf16.mxu1 %v7604_v36 }
 0x40c   :  { %6058 = vmatpush1.bf16.msra.mxu1 %v7602_v13 }
 0x40d   :  { %6059 = vmatprep.subr.bf16.mxu1 %v7610_v14 }
 0x410   :  { %6060 = vmatpush1.bf16.msra.mxu1 %v7608_v15 }
 0x411   :  { %6061 = vmatprep.subr.bf16.mxu1 %v7616_v17 }
 0x414   :  { %6062 = vmatpush1.bf16.msra.mxu1 %v7614_v46 }
 0x415   :  { %6063 = vmatprep.subr.bf16.mxu1 %v7622_v21  ;;  %v93_v21 = vld [vmem:[#allocation9 + $0xe] sm:$0x3] }
 0x418   :  { %6064 = vmatpush1.bf16.msra.mxu1 %v7620_v25 }
 0x419   :  { %6065 = vmatprep.subr.bf16.mxu1 %v7628_v6 }
 0x41c   :  { %6066 = vmatpush1.bf16.msra.mxu1 %v7626_v27 }
 0x41d   :  { %6067 = vmatprep.subr.bf16.mxu1 %v7634_v28  ;;  %v6137_v28 = vrot.slane %v93_v21, %v7958_v19 }
 0x420   :  { %6068 = vmatpush1.bf16.msra.mxu1 %v7632_v43 }
 0x421   :  { %6069 = vmatprep.subr.bf16.mxu1 %v7640_v30 }
 0x424   :  { %6070 = vmatpush1.bf16.msra.mxu1 %v7638_v31 }
 0x425   :  { %6071 = vmatprep.subr.bf16.mxu1 %v7646_v32  ;;  %v6141_v32 = vrot.slane %v93_v21, %v7963_v41 }
 0x428   :  { %6072 = vmatpush1.bf16.msra.mxu1 %v7644_v35 }
 0x429   :  { %6073 = vmatprep.subr.bf16.mxu1 %v7652_v33 }
 0x42c   :  { %6074 = vmatpush1.bf16.msra.mxu1 %v7650_v20 }
 0x42d   :  { %6075 = vmatprep.subr.bf16.mxu1 %v7658_v52 }
 0x430   :  { %6076 = vmatpush1.bf16.msra.mxu1 %v7656_v23 }
 0x431   :  { %6077 = vmatprep.subr.bf16.mxu1 %v7664_v24 }
 0x434   :  { %6078 = vmatpush1.bf16.msra.mxu1 %v7662_v29 }
 0x435   :  { %6079 = vmatprep.subr.bf16.mxu1 %v7670_v34 }
 0x438   :  { %6080 = vmatpush1.bf16.msra.mxu1 %v7668_v38 }
 0x439   :  { %6081 = vmatprep.subr.bf16.mxu1 %v7676_v39 }
 0x43c   :  { %6082 = vmatpush1.bf16.msra.mxu1 %v7674_v44 }
 0x44a   :  { %v4996_v53 = vpop.f32.mrb[8].mxu1 }
 0x44b   :  { %v6980_v54 = vadd.f32 %v4996_v53, %v2693_v7  ;;  %v5119_v10 = vpop.f32.mrb[12].mxu0  ;;  %v4998_v55 = vpop.f32.mrb[9].mxu1 }
 0x44c   :  { %v6982_v26 = vadd.f32 %v5119_v10, %v2701_v49  ;;  %v6981_v56 = vadd.f32 %v4998_v55, %v2697_v50  ;;  %v5121_v18 = vpop.f32.mrb[13].mxu0  ;;  %v5000_v58 = vpop.f32.mrb[10].mxu1 }
 0x44d   :  { %v5130_v16 = vmax.f32 %v6980_v54, 0.0  ;;  %v6983_v59 = vadd.f32 %v5121_v18, %v2705_v51  ;;  %v5123_v61 = vpop.f32.mrb[14].mxu0  ;;  %v5001_v60 = vpop.f32.mrb[11].mxu1 }
 0x44e   :  { %v5132_v62 = vmax.f32 %v6982_v26, 0.0  ;;  %v5131_v0 = vmax.f32 %v6981_v56, 0.0  ;;  %v5124_v40 = vpop.f32.mrb[15].mxu0 }
 0x44f   :  { %v5133_v42 = vmax.f32 %v6983_v59, 0.0  ;;  %v5138_v47 = vpack.c.bf16 %v5130_v16, %v5130_v16 }
 0x450   :  { %v5139_v1 = vpack.c.bf16 %v5131_v0, %v5131_v0  ;;  %v5140_v11 = vpack.c.bf16 %v5132_v62, %v5132_v62 }
 0x451   :  { %v5141_v2 = vpack.c.bf16 %v5133_v42, %v5133_v42 }
 0x452   :  { %6083 = vmatprep.mubr.bf16.mxu1 %v5139_v1  ;;  %v5322_v3 = vpop.f32.mrb[12].mxu1 }
 0x453   :  { %6124 = vmatprep.mubr.bf16.mxu0 %v5141_v2  ;;  %6084 = vmatmul.mubr.bf16.vlgmr.msra.gmra.mrb[24].mxu1 %v5138_v47  ;;  %v5324_v37 = vpop.f32.mrb[13].mxu1 }
 0x454   :  { %6125 = vmatmul.mubr.bf16.vlgmr.msra.gmra.mrb[16].mxu0 %v5140_v11  ;;  %v5326_v4 = vpop.f32.mrb[14].mxu1 }
 0x455   :  { %v5327_v5 = vpop.f32.mrb[15].mxu1 }
 0x492   :  { %v6003_v63 = vpop.f32.mrb[16].mxu1 }
 0x493   :  { %v6004_v8 = vadd.f32 %v6003_v63, %v5322_v3  ;;  %v6005_v9 = vpop.f32.mrb[17].mxu1 }
 0x494   :  { %v6006_v57 = vadd.f32 %v6005_v9, %v5324_v37  ;;  %v6007_v12 = vpop.f32.mrb[18].mxu1 }
 0x495   :  { %v6008_v22 = vpop.f32.mrb[19].mxu1 }
 0x4d2   :  { %v6044_v36 = vpop.f32.mrb[20].mxu1 }
 0x4d3   :  { %v6045_v13 = vadd.f32 %v6044_v36, %v6004_v8  ;;  %v6046_v14 = vpop.f32.mrb[21].mxu1 }
 0x4d4   :  { %v6047_v15 = vadd.f32 %v6046_v14, %v6006_v57  ;;  %v6048_v17 = vpop.f32.mrb[22].mxu1 }
 0x4d5   :  { %v6049_v46 = vpop.f32.mrb[23].mxu1 }
 0x526   :  { %v6085_v25 = vpop.f32.mrb[24].mxu1 }
 0x527   :  { %v6086_v6 = vadd.f32 %v6085_v25, %v6045_v13  ;;  %v6126_v27 = vpop.f32.mrb[16].mxu0  ;;  %v6087_v43 = vpop.f32.mrb[25].mxu1 }
 0x528   :  { %v6088_v30 = vadd.f32 %v6087_v43, %v6047_v15  ;;  %v6128_v31 = vpop.f32.mrb[17].mxu0  ;;  %v6089_v35 = vpop.f32.mrb[26].mxu1 }
 0x529   :  { %v6127_v33 = vadd.f32 %v6126_v27, %v6086_v6  ;;  %v6130_v20 = vpop.f32.mrb[18].mxu0  ;;  %v6090_v52 = vpop.f32.mrb[27].mxu1 }
 0x52a   :  { %v6129_v23 = vadd.f32 %v6128_v31, %v6088_v30  ;;  %v6131_v24 = vpop.f32.mrb[19].mxu0 }
 0x52b   :  { %v6144_v29 = vadd.f32 %v6137_v28, %v6127_v33 }
 0x52c   :  { %v6145_v34 = vadd.f32 %v6141_v32, %v6129_v23 }
 0x52e   :  { %v6148_v38 = vcombine.low %v6144_v29, %v6145_v34 }
 0x530   :  { %6969 = vst.sshfl [vmem:[%s8084_s7] sm:$0x33 pattern:$0x76325410] %v6148_v38 }
 0x531   :  { %6162 = vsyncpa [#allocation3], 1 }
 0x532   :  { %6163 = vsyncpa [#allocation5], 1 }
 0x533   :  { %6164 = vsyncpa [#allocation8], 1 }

</bundles_post_ra>
